<compile_context>
chip_gen: v5e
topology: v5e:2x2
jax: 0.10.0
libtpu: 0.0.40
codegen_flags: <defaults>
</compile_context>

<pallas_src>
import functools

import jax
import jax.numpy as jnp
from jax.experimental import pallas as pl
from jax.experimental.pallas import tpu as pltpu

LANE = 128     # output channels always live in one 128-lane block (OC <= 128)
EPS = 1e-5     # PyTorch BatchNorm2d default


# ------------------------------- small helpers ------------------------------- #

def _round_up(x, m):
    return (x + m - 1) // m * m


def _choose_bm(Mp, cap):
    """Largest multiple-of-8 divisor of Mp <= cap; <= Mp//2 when Mp >= 256 so the
    'parallel' grid axis has >=2 blocks (v7x has 2 TensorCores per chip)."""
    limit = min(cap, Mp)
    if Mp >= 256:
        limit = min(limit, Mp // 2)
    bm = max(8, (limit // 8) * 8)
    while Mp % bm != 0:
        bm -= 8
    return bm


def _mm_bm(Mp, Kp):
    """M tile for the full-K matmul: keep the double-buffered bf16 A tile <= ~8 MiB
    (guards the no-accumulator full-K collapse on v5e/v7x VMEM budgets)."""
    cap = max(8, min(512, ((8 << 20) // (4 * max(Kp, 1))) // 8 * 8))
    return _choose_bm(Mp, cap)


def _cparams(est_bytes):
    limit = 32 << 20
    if est_bytes > 24 << 20:
        limit = 56 << 20          # stays below v7x's 64 MiB physical VMEM
    return pltpu.CompilerParams(dimension_semantics=("parallel",),
                                vmem_limit_bytes=limit)


def _pad_vec(v):
    v = jnp.asarray(v, jnp.float32).reshape(1, -1)
    return jnp.pad(v, ((0, 0), (0, LANE - v.shape[1])))


def _apply_act(y, act):
    if act == "relu":
        return jnp.maximum(y, 0.0)
    if act == "tanh":
        return jnp.tanh(y)
    return y


# ------------------------------ Pallas kernels ------------------------------ #

def _mm_stats_kernel(a_ref, b_ref, o_ref, st_ref):
    """Full-K single-block matmul (bf16 in, f32 acc) + per-channel sum / sumsq.
    Only stats rows 0..1 are written; rows 2..7 of the tile stay unwritten."""
    acc = jnp.dot(a_ref[...], b_ref[...], preferred_element_type=jnp.float32)
    o_ref[...] = acc.astype(o_ref.dtype)
    st_ref[0, 0:1, :] = jnp.sum(acc, axis=0, keepdims=True)
    st_ref[0, 1:2, :] = jnp.sum(acc * acc, axis=0, keepdims=True)


def _mm_bias_tanh_kernel(a_ref, b_ref, bias_ref, o_ref):
    """Head conv: matmul + bias + tanh fully fused (single pass)."""
    acc = jnp.dot(a_ref[...], b_ref[...], preferred_element_type=jnp.float32)
    o_ref[...] = jnp.tanh(acc + bias_ref[...])


def _bn_act_kernel(x_ref, st_ref, g_ref, b_ref, o_ref, *, act, inv_count):
    """BN (batch stats) + activation, with the stat folding done in-kernel."""
    st = st_ref[...]                                     # (nblk, 8, 128) f32
    s1 = jnp.sum(st[:, 0:1, :], axis=0)                  # (1, 128)
    s2 = jnp.sum(st[:, 1:2, :], axis=0)                  # (1, 128)
    mean = s1 * inv_count
    var = jnp.maximum(s2 * inv_count - mean * mean, 0.0)
    scale = g_ref[...] * jax.lax.rsqrt(var + EPS)        # EUP rsqrt, free slot
    shift = b_ref[...] - mean * scale
    y = x_ref[...].astype(jnp.float32) * scale + shift
    o_ref[...] = _apply_act(y, act).astype(o_ref.dtype)


def _bn_act_res_kernel(x_ref, r_ref, st_ref, g_ref, b_ref, o_ref, *, act, inv_count):
    st = st_ref[...]
    s1 = jnp.sum(st[:, 0:1, :], axis=0)
    s2 = jnp.sum(st[:, 1:2, :], axis=0)
    mean = s1 * inv_count
    var = jnp.maximum(s2 * inv_count - mean * mean, 0.0)
    scale = g_ref[...] * jax.lax.rsqrt(var + EPS)
    shift = b_ref[...] - mean * scale
    y = x_ref[...].astype(jnp.float32) * scale + shift
    y = _apply_act(y, act) + r_ref[...].astype(jnp.float32)
    o_ref[...] = y.astype(o_ref.dtype)


def _affine_kernel(x_ref, s_ref, t_ref, o_ref, *, act):
    """Per-lane affine + activation with precomputed scale/shift (transposed conv)."""
    y = x_ref[...].astype(jnp.float32) * s_ref[...] + t_ref[...]
    o_ref[...] = _apply_act(y, act).astype(o_ref.dtype)


# ------------------------------ Pallas wrappers ------------------------------ #

def matmul_stats(cols, w_pad):
    """(M,Kp)bf16 @ (Kp,128)bf16 -> bf16 (Mp,128) slab + per-block f32 stats."""
    M, Kp = cols.shape
    Mp = _round_up(M, 8)
    if Mp != M:
        cols = jnp.pad(cols, ((0, Mp - M), (0, 0)))
    bm = _mm_bm(Mp, Kp)
    nblk = Mp // bm
    est = 2 * (bm * Kp + Kp * LANE + bm * LANE) * 2 + 2 * 8 * LANE * 4
    out, stats = pl.pallas_call(
        _mm_stats_kernel,
        out_shape=(jax.ShapeDtypeStruct((Mp, LANE), jnp.bfloat16),
                   jax.ShapeDtypeStruct((nblk, 8, LANE), jnp.float32)),
        grid=(nblk,),
        in_specs=[pl.BlockSpec((bm, Kp), lambda i: (i, 0)),
                  pl.BlockSpec((Kp, LANE), lambda i: (0, 0))],   # grid-invariant
        out_specs=(pl.BlockSpec((bm, LANE), lambda i: (i, 0)),
                   pl.BlockSpec((1, 8, LANE), lambda i: (i, 0, 0))),
        compiler_params=_cparams(est),
    )(cols, w_pad)
    return out, stats, M


def matmul_bias_tanh(cols, w_pad, bias_pad):
    M, Kp = cols.shape
    Mp = _round_up(M, 8)
    if Mp != M:
        cols = jnp.pad(cols, ((0, Mp - M), (0, 0)))
    bm = _mm_bm(Mp, Kp)
    est = 2 * (bm * Kp + Kp * LANE) * 2 + 2 * bm * LANE * 4 + LANE * 4
    out = pl.pallas_call(
        _mm_bias_tanh_kernel,
        out_shape=jax.ShapeDtypeStruct((Mp, LANE), jnp.float32),
        grid=(Mp // bm,),
        in_specs=[pl.BlockSpec((bm, Kp), lambda i: (i, 0)),
                  pl.BlockSpec((Kp, LANE), lambda i: (0, 0)),
                  pl.BlockSpec((1, LANE), lambda i: (0, 0))],
        out_specs=pl.BlockSpec((bm, LANE), lambda i: (i, 0)),
        compiler_params=_cparams(est),
    )(cols, w_pad, bias_pad)
    return out, M


def bn_act(x_slab, stats, g_pad, b_pad, count, act, residual_slab=None):
    """y = act((x - mean)/std * gamma + beta) [+ residual]; bf16 out, f32 math."""
    Mp = x_slab.shape[0]
    nb = stats.shape[0]
    bm = _choose_bm(Mp, 2048)                       # big epilogue tile (vld/vst bound)
    inv_count = 1.0 / float(count)
    x_spec = pl.BlockSpec((bm, LANE), lambda i: (i, 0))
    st_spec = pl.BlockSpec((nb, 8, LANE), lambda i: (0, 0, 0))
    v_spec = pl.BlockSpec((1, LANE), lambda i: (0, 0))
    n_slabs = 3 if residual_slab is not None else 2
    est = 2 * n_slabs * bm * LANE * 2 + 2 * nb * 8 * LANE * 4 + 4 * LANE * 4
    common = dict(
        out_shape=jax.ShapeDtypeStruct((Mp, LANE), jnp.bfloat16),
        grid=(Mp // bm,),
        out_specs=pl.BlockSpec((bm, LANE), lambda i: (i, 0)),
        compiler_params=_cparams(est),
    )
    if residual_slab is None:
        return pl.pallas_call(
            functools.partial(_bn_act_kernel, act=act, inv_count=inv_count),
            in_specs=[x_spec, st_spec, v_spec, v_spec], **common,
        )(x_slab, stats, g_pad, b_pad)
    return pl.pallas_call(
        functools.partial(_bn_act_res_kernel, act=act, inv_count=inv_count),
        in_specs=[x_spec, x_spec, st_spec, v_spec, v_spec], **common,
    )(x_slab, residual_slab, stats, g_pad, b_pad)


def affine_act(x_slab, scale, shift, act):
    Mp = x_slab.shape[0]
    bm = _choose_bm(Mp, 2048)
    s, t = _pad_vec(scale), _pad_vec(shift)
    est = 2 * 2 * bm * LANE * 2 + 4 * LANE * 4
    return pl.pallas_call(
        functools.partial(_affine_kernel, act=act),
        out_shape=jax.ShapeDtypeStruct((Mp, LANE), jnp.bfloat16),
        grid=(Mp // bm,),
        in_specs=[pl.BlockSpec((bm, LANE), lambda i: (i, 0)),
                  pl.BlockSpec((1, LANE), lambda i: (0, 0)),
                  pl.BlockSpec((1, LANE), lambda i: (0, 0))],
        out_specs=pl.BlockSpec((bm, LANE), lambda i: (i, 0)),
        compiler_params=_cparams(est),
    )(x_slab, s, t)


# --------------------------------- JAX glue --------------------------------- #

def reflect_pad(x, p):  # NHWC, keeps dtype (bf16)
    return jnp.pad(x, ((0, 0), (p, p), (p, p), (0, 0)), mode="reflect")


def zero_pad(x, p):
    return jnp.pad(x, ((0, 0), (p, p), (p, p), (0, 0)))


def im2col(x, kh, kw, stride, k_pad_to):
    """x NHWC (already spatially padded, bf16) -> (N*OH*OW, k_pad_to) bf16.
    K padding to a lane multiple is folded into the single concatenate here, so no
    second full copy of the patch matrix is made."""
    N, H, W, C = x.shape
    OH = (H - kh) // stride + 1
    OW = (W - kw) // stride + 1
    pieces = [x[:, i:i + stride * OH:stride, j:j + stride * OW:stride, :]
              for i in range(kh) for j in range(kw)]
    K = kh * kw * C
    if k_pad_to > K:
        pieces.append(jnp.zeros((N, OH, OW, k_pad_to - K), x.dtype))
    cols = jnp.concatenate(pieces, axis=-1).reshape(N * OH * OW, k_pad_to)
    return cols, (N, OH, OW)


def conv_transpose_weight_matrix(w):
    """ConvTranspose2d(k3,s2,p1,op1) as one combined (4*IC, 4*OC) matrix over a
    2x2 window of the un-dilated input.  Columns ordered phase-major (a*2+b)."""
    IC, OC = w.shape[0], w.shape[1]
    Wc = jnp.zeros((4 * IC, 4 * OC), jnp.float32)
    # (di, dj, a, b, ki, kj): x[i+di, j+dj] * w[:, :, ki, kj] -> y[2i+a, 2j+b]
    taps = [(0, 0, 0, 0, 1, 1),
            (0, 0, 0, 1, 1, 2), (0, 1, 0, 1, 1, 0),
            (0, 0, 1, 0, 2, 1), (1, 0, 1, 0, 0, 1),
            (0, 0, 1, 1, 2, 2), (0, 1, 1, 1, 2, 0),
            (1, 0, 1, 1, 0, 2), (1, 1, 1, 1, 0, 0)]
    for di, dj, a, b, ki, kj in taps:
        r = (di * 2 + dj) * IC
        c = (a * 2 + b) * OC
        Wc = Wc.at[r:r + IC, c:c + OC].set(w[:, :, ki, kj])
    return Wc


# ---------------------------- parameter preparation --------------------------- #

def _prep_conv(w_oihw, gamma, beta):
    OC, IC, kh, kw = w_oihw.shape
    assert OC <= LANE  # TODO(synk): N-tile (multiple 128-lane blocks) for OC > 128
    K = kh * kw * IC
    Kp = _round_up(K, LANE)
    wm = jnp.transpose(w_oihw, (2, 3, 1, 0)).reshape(K, OC)
    wm = jnp.pad(wm, ((0, Kp - K), (0, LANE - OC))).astype(jnp.bfloat16)
    return {"w": wm, "g": _pad_vec(gamma), "b": _pad_vec(beta),
            "k": (kh, kw), "oc": OC, "kdim": Kp}


def _prep_up(w_iohw, gamma, beta):
    IC, OC = w_iohw.shape[0], w_iohw.shape[1]
    assert 4 * OC <= LANE
    K = 4 * IC
    Kp = _round_up(K, LANE)
    Wc = conv_transpose_weight_matrix(w_iohw)
    Wc = jnp.pad(Wc, ((0, Kp - K), (0, LANE - 4 * OC))).astype(jnp.bfloat16)
    return {"w": Wc, "g": jnp.asarray(gamma, jnp.float32),
            "b": jnp.asarray(beta, jnp.float32), "oc": OC, "kdim": Kp}


def _prep_head(w_oihw, bias):
    OC, IC, kh, kw = w_oihw.shape
    assert OC <= LANE
    K = kh * kw * IC
    Kp = _round_up(K, LANE)
    wm = jnp.transpose(w_oihw, (2, 3, 1, 0)).reshape(K, OC)
    wm = jnp.pad(wm, ((0, Kp - K), (0, LANE - OC))).astype(jnp.bfloat16)
    return {"w": wm, "bias": _pad_vec(bias), "k": (kh, kw), "oc": OC, "kdim": Kp}


def prepare_params(p):
    """One-off layout/dtype preparation of weights (done outside the jitted forward)."""
    return {
        "stem": _prep_conv(p["stem_w"], *p["stem_bn"]),
        "down": [_prep_conv(l["w"], *l["bn"]) for l in p["down"]],
        "blocks": [{"c1": _prep_conv(b["w1"], *b["bn1"]),
                    "c2": _prep_conv(b["w2"], *b["bn2"])} for b in p["blocks"]],
        "up": [_prep_up(l["w"], *l["bn"]) for l in p["up"]],
        "head": _prep_head(p["out_w"], p["out_b"]),
    }


# ------------------------------ fused layer ops ------------------------------ #

def conv_bn_act(x_pad_nhwc, layer, stride, act, residual_slab=None):
    """Conv2d(bias=False) + BatchNorm2d (batch stats) + activation [+ residual].
    Returns (NHWC view, padded (Mp,128) bf16 slab) — the slab is reused as the
    residual input of the next ResNet block without any re-pad copy."""
    kh, kw = layer["k"]
    OC = layer["oc"]
    cols, (N, OH, OW) = im2col(x_pad_nhwc, kh, kw, stride, layer["kdim"])
    out_slab, stats, M = matmul_stats(cols, layer["w"])
    y_slab = bn_act(out_slab, stats, layer["g"], layer["b"], M, act, residual_slab)
    return y_slab[:M, :OC].reshape(N, OH, OW, OC), y_slab


def conv_transpose_bn_relu(x_nhwc, layer):
    """ConvTranspose2d(k3,s2,p1,op1,bias=False) + BN + ReLU via sub-pixel
    decomposition: one (N*H*W, 4*Cin) x (4*Cin, 4*Cout) GEMM + phase interleave."""
    OC = layer["oc"]
    N, H, W, _ = x_nhwc.shape
    xp = jnp.pad(x_nhwc, ((0, 0), (0, 1), (0, 1), (0, 0)))      # bottom/right halo
    cols, _ = im2col(xp, 2, 2, 1, layer["kdim"])                # (N*H*W, Kp)
    out_slab, stats, M = matmul_stats(cols, layer["w"])
    # Phase-stat fold stays on host (phases share the BN channel), tiny per layer.
    s_all = jnp.sum(stats[:, 0, :], axis=0)
    ss_all = jnp.sum(stats[:, 1, :], axis=0)
    s = jnp.sum(s_all[:4 * OC].reshape(4, OC), axis=0)
    ss = jnp.sum(ss_all[:4 * OC].reshape(4, OC), axis=0)
    cnt = 4.0 * M
    mean = s / cnt
    var = jnp.maximum(ss / cnt - mean * mean, 0.0)
    scale = layer["g"] * jax.lax.rsqrt(var + EPS)
    shift = layer["b"] - mean * scale
    y_slab = affine_act(out_slab, jnp.tile(scale, 4), jnp.tile(shift, 4), "relu")
    y = y_slab[:M, :4 * OC].reshape(N, H, W, 2, 2, OC)
    y = jnp.transpose(y, (0, 1, 3, 2, 4, 5)).reshape(N, 2 * H, 2 * W, OC)
    return y


def conv_bias_tanh(x_pad_nhwc, layer):
    """Head: Conv2d(bias=True) + Tanh fused into one Pallas matmul pass."""
    kh, kw = layer["k"]
    OC = layer["oc"]
    cols, (N, OH, OW) = im2col(x_pad_nhwc, kh, kw, 1, layer["kdim"])
    out, M = matmul_bias_tanh(cols, layer["w"], layer["bias"])
    return out[:M, :OC].reshape(N, OH, OW, OC)


# --------------------------- model params / forward -------------------------- #

def init_params(key, input_nc, output_nc, ngf, n_blocks):
    keys = iter(jax.random.split(key, 256))

    def nrm(shape, scale=0.05):
        return scale * jax.random.normal(next(keys), shape, dtype=jnp.float32)

    def bn(c):
        return (1.0 + nrm((c,)), nrm((c,)))

    params = {"stem_w": nrm((ngf, input_nc, 7, 7)), "stem_bn": bn(ngf),
              "down": [], "blocks": [], "up": []}
    for i in range(3):
        cin = ngf * (2 ** i)
        params["down"].append({"w": nrm((cin * 2, cin, 3, 3)), "bn": bn(cin * 2)})
    d = ngf * 8
    for _ in range(n_blocks):
        params["blocks"].append({"w1": nrm((d, d, 3, 3)), "bn1": bn(d),
                                 "w2": nrm((d, d, 3, 3)), "bn2": bn(d)})
    for i in range(3):
        cin = ngf * (2 ** (3 - i))
        # ConvTranspose2d weight layout: (in_channels, out_channels, kh, kw)
        params["up"].append({"w": nrm((cin, cin // 2, 3, 3)), "bn": bn(cin // 2)})
    params["out_w"] = nrm((output_nc, ngf, 7, 7))
    params["out_b"] = nrm((output_nc,))
    return params


def forward(prep, x_nchw):
    # bf16 activations everywhere between layers; f32 only for accumulation/stats.
    x = jnp.transpose(x_nchw, (0, 2, 3, 1)).astype(jnp.bfloat16)    # NCHW -> NHWC

    # stem: ReflectionPad(3) + Conv7x7 + BN + ReLU
    h, h_slab = conv_bn_act(reflect_pad(x, 3), prep["stem"], 1, "relu")

    # 3x downsample: Conv3x3 stride2 pad1 + BN + ReLU
    for lyr in prep["down"]:
        h, h_slab = conv_bn_act(zero_pad(h, 1), lyr, 2, "relu")

    # ResNet blocks (reflect padding, no dropout, no bias); the residual add is
    # fused into the second conv's epilogue, reusing the previous padded slab.
    for blk in prep["blocks"]:
        r, _ = conv_bn_act(reflect_pad(h, 1), blk["c1"], 1, "relu")
        h, h_slab = conv_bn_act(reflect_pad(r, 1), blk["c2"], 1, "none",
                                residual_slab=h_slab)

    # 3x upsample: ConvTranspose3x3 stride2 pad1 outpad1 + BN + ReLU
    for lyr in prep["up"]:
        h = conv_transpose_bn_relu(h, lyr)

    # head: ReflectionPad(3) + Conv7x7 (bias) + Tanh fused in one matmul
    h = conv_bias_tanh(reflect_pad(h, 3), prep["head"])

    return jnp.transpose(h, (0, 3, 1, 2))                           # NHWC -> NCHW


if __name__ == "__main__":
    key = jax.random.PRNGKey(0)
    pkey, xkey = jax.random.split(key)

    # Small, shape-consistent config (n_blocks reduced from the default 6 for speed).
    input_nc, output_nc, ngf, n_blocks = 3, 3, 8, 2
    raw_params = init_params(pkey, input_nc, output_nc, ngf, n_blocks)
    prep = prepare_params(raw_params)                 # one-off weight layout prep

    x = jax.random.normal(xkey, (2, input_nc, 16, 16), dtype=jnp.float32)

    run = jax.jit(lambda inp: forward(prep, inp))
    y = run(x)
    jax.block_until_ready(y)
    assert y.shape == (2, output_nc, 16, 16), y.shape
    assert bool(jnp.all(jnp.isfinite(y)))
    print("KERNEL_OK")
</pallas_src>

<mosaic_0001>
module attributes {stable_mosaic.version = 11 : i64} {
  func.func @_mm_stats_kernel(%arg0: i32, %arg1: memref<256x256xbf16, #tpu.memory_space<vmem>>, %arg2: memref<256x128xbf16, #tpu.memory_space<vmem>>, %arg3: memref<256x128xbf16, #tpu.memory_space<vmem>>, %arg4: memref<1x8x128xf32, #tpu.memory_space<vmem>>) attributes {dimension_semantics = [#tpu.dimension_semantics<parallel>], iteration_bounds = array<i64: 2>, scalar_prefetch = 0 : i64, scratch_operands = 0 : i64, tpu.core_type = #tpu.core_type<tc>, window_params = [{transform_indices = @transform_0, window_bounds = array<i64: 256, 256>}, {pipeline_mode = #tpu.pipeline_mode<synchronous>, transform_indices = @transform_1, window_bounds = array<i64: 256, 128>}, {transform_indices = @transform_2, window_bounds = array<i64: 256, 128>}, {transform_indices = @transform_3, window_bounds = array<i64: 1, 8, 128>}]} {
    %c0 = arith.constant 0 : index
    %c0_0 = arith.constant 0 : index
    %0 = vector.load %arg1[%c0, %c0_0] : memref<256x256xbf16, #tpu.memory_space<vmem>>, vector<256x256xbf16>
    %c0_1 = arith.constant 0 : index
    %c0_2 = arith.constant 0 : index
    %1 = vector.load %arg2[%c0_1, %c0_2] : memref<256x128xbf16, #tpu.memory_space<vmem>>, vector<256x128xbf16>
    %cst = arith.constant dense<0.000000e+00> : vector<256x128xf32>
    %2 = tpu.matmul %0, %1, %cst {dimension_numbers = #tpu.dot_dimension_numbers<[1], [0], [0], [1], [0, 0, 1, 1], [], []>} : vector<256x256xbf16>, vector<256x128xbf16>, vector<256x128xf32> -> vector<256x128xf32>
    %3 = arith.truncf %2 : vector<256x128xf32> to vector<256x128xbf16>
    %c0_3 = arith.constant 0 : index
    %c0_4 = arith.constant 0 : index
    %4 = vector.load %arg3[%c0_3, %c0_4] : memref<256x128xbf16, #tpu.memory_space<vmem>>, vector<256x128xbf16>
    tpu.vector_store %arg3[%c0_3, %c0_4], %3 {strides = array<i32>} : memref<256x128xbf16, #tpu.memory_space<vmem>>, vector<256x128xbf16>,
    %cst_5 = arith.constant dense<0.000000e+00> : vector<128xf32>
    %5 = vector.multi_reduction <add>, %2, %cst_5 [0] : vector<256x128xf32> to vector<128xf32>
    %6 = vector.shape_cast %5 : vector<128xf32> to vector<1x128xf32>
    %c0_6 = arith.constant 0 : index
    %c0_7 = arith.constant 0 : index
    %c0_8 = arith.constant 0 : index
    %7 = vector.load %arg4[%c0_6, %c0_7, %c0_8] : memref<1x8x128xf32, #tpu.memory_space<vmem>>, vector<1x1x128xf32>
    %8 = vector.shape_cast %7 : vector<1x1x128xf32> to vector<1x128xf32>
    %9 = vector.shape_cast %6 : vector<1x128xf32> to vector<1x1x128xf32>
    tpu.vector_store %arg4[%c0_6, %c0_7, %c0_8], %9 {strides = array<i32>} : memref<1x8x128xf32, #tpu.memory_space<vmem>>, vector<1x1x128xf32>,
    %10 = arith.mulf %2, %2 : vector<256x128xf32>
    %cst_9 = arith.constant dense<0.000000e+00> : vector<128xf32>
    %11 = vector.multi_reduction <add>, %10, %cst_9 [0] : vector<256x128xf32> to vector<128xf32>
    %12 = vector.shape_cast %11 : vector<128xf32> to vector<1x128xf32>
    %c0_10 = arith.constant 0 : index
    %c1 = arith.constant 1 : index
    %c0_11 = arith.constant 0 : index
    %13 = vector.load %arg4[%c0_10, %c1, %c0_11] : memref<1x8x128xf32, #tpu.memory_space<vmem>>, vector<1x1x128xf32>
    %14 = vector.shape_cast %13 : vector<1x1x128xf32> to vector<1x128xf32>
    %15 = vector.shape_cast %12 : vector<1x128xf32> to vector<1x1x128xf32>
    tpu.vector_store %arg4[%c0_10, %c1, %c0_11], %15 {strides = array<i32>} : memref<1x8x128xf32, #tpu.memory_space<vmem>>, vector<1x1x128xf32>,
    return
  }
  func.func @transform_0(%arg0: i32) -> (i32, i32) {
    %c0_i32 = arith.constant 0 : i32
    %c0_i32_0 = arith.constant 0 : i32
    return %arg0, %c0_i32 : i32, i32
  }
  func.func @transform_1(%arg0: i32) -> (i32, i32) {
    %c0_i32 = arith.constant 0 : i32
    %c0_i32_0 = arith.constant 0 : i32
    %c0_i32_1 = arith.constant 0 : i32
    return %c0_i32, %c0_i32_0 : i32, i32
  }
  func.func @transform_2(%arg0: i32) -> (i32, i32) {
    %c0_i32 = arith.constant 0 : i32
    %c0_i32_0 = arith.constant 0 : i32
    return %arg0, %c0_i32 : i32, i32
  }
  func.func @transform_3(%arg0: i32) -> (i32, i32, i32) {
    %c0_i32 = arith.constant 0 : i32
    %c0_i32_0 = arith.constant 0 : i32
    %c0_i32_1 = arith.constant 0 : i32
    return %arg0, %c0_i32, %c0_i32_0 : i32, i32, i32
  }
}

module attributes {stable_mosaic.version = 11 : i64} {
  func.func @_bn_act_kernel(%arg0: i32, %arg1: memref<256x128xbf16, #tpu.memory_space<vmem>>, %arg2: memref<2x8x128xf32, #tpu.memory_space<vmem>>, %arg3: memref<1x128xf32, #tpu.memory_space<vmem>>, %arg4: memref<1x128xf32, #tpu.memory_space<vmem>>, %arg5: memref<256x128xbf16, #tpu.memory_space<vmem>>) attributes {dimension_semantics = [#tpu.dimension_semantics<parallel>], iteration_bounds = array<i64: 2>, scalar_prefetch = 0 : i64, scratch_operands = 0 : i64, tpu.core_type = #tpu.core_type<tc>, window_params = [{transform_indices = @transform_0, window_bounds = array<i64: 256, 128>}, {pipeline_mode = #tpu.pipeline_mode<synchronous>, transform_indices = @transform_1, window_bounds = array<i64: 2, 8, 128>}, {pipeline_mode = #tpu.pipeline_mode<synchronous>, transform_indices = @transform_2, window_bounds = array<i64: 1, 128>}, {pipeline_mode = #tpu.pipeline_mode<synchronous>, transform_indices = @transform_3, window_bounds = array<i64: 1, 128>}, {transform_indices = @transform_4, window_bounds = array<i64: 256, 128>}]} {
    %c0 = arith.constant 0 : index
    %c0_0 = arith.constant 0 : index
    %c0_1 = arith.constant 0 : index
    %0 = vector.load %arg2[%c0, %c0_0, %c0_1] : memref<2x8x128xf32, #tpu.memory_space<vmem>>, vector<2x8x128xf32>
    %1 = vector.extract_strided_slice %0 {offsets = [0, 0, 0], sizes = [2, 1, 128], strides = [1, 1, 1]} : vector<2x8x128xf32> to vector<2x1x128xf32>
    %cst = arith.constant dense<0.000000e+00> : vector<1x128xf32>
    %2 = vector.multi_reduction <add>, %1, %cst [0] : vector<2x1x128xf32> to vector<1x128xf32>
    %3 = vector.extract_strided_slice %0 {offsets = [0, 1, 0], sizes = [2, 1, 128], strides = [1, 1, 1]} : vector<2x8x128xf32> to vector<2x1x128xf32>
    %cst_2 = arith.constant dense<0.000000e+00> : vector<1x128xf32>
    %4 = vector.multi_reduction <add>, %3, %cst_2 [0] : vector<2x1x128xf32> to vector<1x128xf32>
    %cst_3 = arith.constant 0.001953125 : f32
    %5 = vector.broadcast %cst_3 : f32 to vector<1x128xf32>
    %6 = arith.mulf %2, %5 : vector<1x128xf32>
    %cst_4 = arith.constant 0.001953125 : f32
    %7 = vector.broadcast %cst_4 : f32 to vector<1x128xf32>
    %8 = arith.mulf %4, %7 : vector<1x128xf32>
    %9 = arith.mulf %6, %6 : vector<1x128xf32>
    %10 = arith.subf %8, %9 : vector<1x128xf32>
    %cst_5 = arith.constant 0.000000e+00 : f32
    %11 = vector.broadcast %cst_5 : f32 to vector<1x128xf32>
    %12 = arith.maximumf %10, %11 : vector<1x128xf32>
    %c0_6 = arith.constant 0 : index
    %c0_7 = arith.constant 0 : index
    %13 = vector.load %arg3[%c0_6, %c0_7] : memref<1x128xf32, #tpu.memory_space<vmem>>, vector<1x128xf32>
    %cst_8 = arith.constant 9.99999974E-6 : f32
    %14 = vector.broadcast %cst_8 : f32 to vector<1x128xf32>
    %15 = arith.addf %12, %14 : vector<1x128xf32>
    %16 = math.rsqrt %15 : vector<1x128xf32>
    %17 = arith.mulf %13, %16 : vector<1x128xf32>
    %c0_9 = arith.constant 0 : index
    %c0_10 = arith.constant 0 : index
    %18 = vector.load %arg4[%c0_9, %c0_10] : memref<1x128xf32, #tpu.memory_space<vmem>>, vector<1x128xf32>
    %19 = arith.mulf %6, %17 : vector<1x128xf32>
    %20 = arith.subf %18, %19 : vector<1x128xf32>
    %c0_11 = arith.constant 0 : index
    %c0_12 = arith.constant 0 : index
    %21 = vector.load %arg1[%c0_11, %c0_12] : memref<256x128xbf16, #tpu.memory_space<vmem>>, vector<256x128xbf16>
    %22 = arith.extf %21 : vector<256x128xbf16> to vector<256x128xf32>
    %23 = vector.broadcast %17 : vector<1x128xf32> to vector<256x128xf32>
    %24 = arith.mulf %22, %23 : vector<256x128xf32>
    %25 = vector.broadcast %20 : vector<1x128xf32> to vector<256x128xf32>
    %26 = arith.addf %24, %25 : vector<256x128xf32>
    %cst_13 = arith.constant 0.000000e+00 : f32
    %27 = vector.broadcast %cst_13 : f32 to vector<256x128xf32>
    %28 = arith.maximumf %26, %27 : vector<256x128xf32>
    %29 = arith.truncf %28 : vector<256x128xf32> to vector<256x128xbf16>
    %c0_14 = arith.constant 0 : index
    %c0_15 = arith.constant 0 : index
    %30 = vector.load %arg5[%c0_14, %c0_15] : memref<256x128xbf16, #tpu.memory_space<vmem>>, vector<256x128xbf16>
    tpu.vector_store %arg5[%c0_14, %c0_15], %29 {strides = array<i32>} : memref<256x128xbf16, #tpu.memory_space<vmem>>, vector<256x128xbf16>,
    return
  }
  func.func @transform_0(%arg0: i32) -> (i32, i32) {
    %c0_i32 = arith.constant 0 : i32
    %c0_i32_0 = arith.constant 0 : i32
    return %arg0, %c0_i32 : i32, i32
  }
  func.func @transform_1(%arg0: i32) -> (i32, i32, i32) {
    %c0_i32 = arith.constant 0 : i32
    %c0_i32_0 = arith.constant 0 : i32
    %c0_i32_1 = arith.constant 0 : i32
    %c0_i32_2 = arith.constant 0 : i32
    return %c0_i32, %c0_i32_0, %c0_i32_1 : i32, i32, i32
  }
  func.func @transform_2(%arg0: i32) -> (i32, i32) {
    %c0_i32 = arith.constant 0 : i32
    %c0_i32_0 = arith.constant 0 : i32
    %c0_i32_1 = arith.constant 0 : i32
    return %c0_i32, %c0_i32_0 : i32, i32
  }
  func.func @transform_3(%arg0: i32) -> (i32, i32) {
    %c0_i32 = arith.constant 0 : i32
    %c0_i32_0 = arith.constant 0 : i32
    %c0_i32_1 = arith.constant 0 : i32
    return %c0_i32, %c0_i32_0 : i32, i32
  }
  func.func @transform_4(%arg0: i32) -> (i32, i32) {
    %c0_i32 = arith.constant 0 : i32
    %c0_i32_0 = arith.constant 0 : i32
    return %arg0, %c0_i32 : i32, i32
  }
}

module attributes {stable_mosaic.version = 11 : i64} {
  func.func @_mm_stats_kernel(%arg0: i32, %arg1: memref<128x128xbf16, #tpu.memory_space<vmem>>, %arg2: memref<128x128xbf16, #tpu.memory_space<vmem>>, %arg3: memref<128x128xbf16, #tpu.memory_space<vmem>>, %arg4: memref<1x8x128xf32, #tpu.memory_space<vmem>>) attributes {dimension_semantics = [#tpu.dimension_semantics<parallel>], iteration_bounds = array<i64: 1>, scalar_prefetch = 0 : i64, scratch_operands = 0 : i64, tpu.core_type = #tpu.core_type<tc>, window_params = [{transform_indices = @transform_0, window_bounds = array<i64: 128, 128>}, {pipeline_mode = #tpu.pipeline_mode<synchronous>, transform_indices = @transform_1, window_bounds = array<i64: 128, 128>}, {transform_indices = @transform_2, window_bounds = array<i64: 128, 128>}, {transform_indices = @transform_3, window_bounds = array<i64: 1, 8, 128>}]} {
    %c0 = arith.constant 0 : index
    %c0_0 = arith.constant 0 : index
    %0 = vector.load %arg1[%c0, %c0_0] : memref<128x128xbf16, #tpu.memory_space<vmem>>, vector<128x128xbf16>
    %c0_1 = arith.constant 0 : index
    %c0_2 = arith.constant 0 : index
    %1 = vector.load %arg2[%c0_1, %c0_2] : memref<128x128xbf16, #tpu.memory_space<vmem>>, vector<128x128xbf16>
    %cst = arith.constant dense<0.000000e+00> : vector<128x128xf32>
    %2 = tpu.matmul %0, %1, %cst {dimension_numbers = #tpu.dot_dimension_numbers<[1], [0], [0], [1], [0, 0, 1, 1], [], []>} : vector<128x128xbf16>, vector<128x128xbf16>, vector<128x128xf32> -> vector<128x128xf32>
    %3 = arith.truncf %2 : vector<128x128xf32> to vector<128x128xbf16>
    %c0_3 = arith.constant 0 : index
    %c0_4 = arith.constant 0 : index
    %4 = vector.load %arg3[%c0_3, %c0_4] : memref<128x128xbf16, #tpu.memory_space<vmem>>, vector<128x128xbf16>
    tpu.vector_store %arg3[%c0_3, %c0_4], %3 {strides = array<i32>} : memref<128x128xbf16, #tpu.memory_space<vmem>>, vector<128x128xbf16>,
    %cst_5 = arith.constant dense<0.000000e+00> : vector<128xf32>
    %5 = vector.multi_reduction <add>, %2, %cst_5 [0] : vector<128x128xf32> to vector<128xf32>
    %6 = vector.shape_cast %5 : vector<128xf32> to vector<1x128xf32>
    %c0_6 = arith.constant 0 : index
    %c0_7 = arith.constant 0 : index
    %c0_8 = arith.constant 0 : index
    %7 = vector.load %arg4[%c0_6, %c0_7, %c0_8] : memref<1x8x128xf32, #tpu.memory_space<vmem>>, vector<1x1x128xf32>
    %8 = vector.shape_cast %7 : vector<1x1x128xf32> to vector<1x128xf32>
    %9 = vector.shape_cast %6 : vector<1x128xf32> to vector<1x1x128xf32>
    tpu.vector_store %arg4[%c0_6, %c0_7, %c0_8], %9 {strides = array<i32>} : memref<1x8x128xf32, #tpu.memory_space<vmem>>, vector<1x1x128xf32>,
    %10 = arith.mulf %2, %2 : vector<128x128xf32>
    %cst_9 = arith.constant dense<0.000000e+00> : vector<128xf32>
    %11 = vector.multi_reduction <add>, %10, %cst_9 [0] : vector<128x128xf32> to vector<128xf32>
    %12 = vector.shape_cast %11 : vector<128xf32> to vector<1x128xf32>
    %c0_10 = arith.constant 0 : index
    %c1 = arith.constant 1 : index
    %c0_11 = arith.constant 0 : index
    %13 = vector.load %arg4[%c0_10, %c1, %c0_11] : memref<1x8x128xf32, #tpu.memory_space<vmem>>, vector<1x1x128xf32>
    %14 = vector.shape_cast %13 : vector<1x1x128xf32> to vector<1x128xf32>
    %15 = vector.shape_cast %12 : vector<1x128xf32> to vector<1x1x128xf32>
    tpu.vector_store %arg4[%c0_10, %c1, %c0_11], %15 {strides = array<i32>} : memref<1x8x128xf32, #tpu.memory_space<vmem>>, vector<1x1x128xf32>,
    return
  }
  func.func @transform_0(%arg0: i32) -> (i32, i32) {
    %c0_i32 = arith.constant 0 : i32
    %c0_i32_0 = arith.constant 0 : i32
    return %arg0, %c0_i32 : i32, i32
  }
  func.func @transform_1(%arg0: i32) -> (i32, i32) {
    %c0_i32 = arith.constant 0 : i32
    %c0_i32_0 = arith.constant 0 : i32
    %c0_i32_1 = arith.constant 0 : i32
    return %c0_i32, %c0_i32_0 : i32, i32
  }
  func.func @transform_2(%arg0: i32) -> (i32, i32) {
    %c0_i32 = arith.constant 0 : i32
    %c0_i32_0 = arith.constant 0 : i32
    return %arg0, %c0_i32 : i32, i32
  }
  func.func @transform_3(%arg0: i32) -> (i32, i32, i32) {
    %c0_i32 = arith.constant 0 : i32
    %c0_i32_0 = arith.constant 0 : i32
    %c0_i32_1 = arith.constant 0 : i32
    return %arg0, %c0_i32, %c0_i32_0 : i32, i32, i32
  }
}

module attributes {stable_mosaic.version = 11 : i64} {
  func.func @_bn_act_kernel(%arg0: i32, %arg1: memref<128x128xbf16, #tpu.memory_space<vmem>>, %arg2: memref<1x8x128xf32, #tpu.memory_space<vmem>>, %arg3: memref<1x128xf32, #tpu.memory_space<vmem>>, %arg4: memref<1x128xf32, #tpu.memory_space<vmem>>, %arg5: memref<128x128xbf16, #tpu.memory_space<vmem>>) attributes {dimension_semantics = [#tpu.dimension_semantics<parallel>], iteration_bounds = array<i64: 1>, scalar_prefetch = 0 : i64, scratch_operands = 0 : i64, tpu.core_type = #tpu.core_type<tc>, window_params = [{transform_indices = @transform_0, window_bounds = array<i64: 128, 128>}, {pipeline_mode = #tpu.pipeline_mode<synchronous>, transform_indices = @transform_1, window_bounds = array<i64: 1, 8, 128>}, {pipeline_mode = #tpu.pipeline_mode<synchronous>, transform_indices = @transform_2, window_bounds = array<i64: 1, 128>}, {pipeline_mode = #tpu.pipeline_mode<synchronous>, transform_indices = @transform_3, window_bounds = array<i64: 1, 128>}, {transform_indices = @transform_4, window_bounds = array<i64: 128, 128>}]} {
    %c0 = arith.constant 0 : index
    %c0_0 = arith.constant 0 : index
    %c0_1 = arith.constant 0 : index
    %0 = vector.load %arg2[%c0, %c0_0, %c0_1] : memref<1x8x128xf32, #tpu.memory_space<vmem>>, vector<1x8x128xf32>
    %1 = vector.extract_strided_slice %0 {offsets = [0, 0, 0], sizes = [1, 1, 128], strides = [1, 1, 1]} : vector<1x8x128xf32> to vector<1x1x128xf32>
    %cst = arith.constant dense<0.000000e+00> : vector<1x128xf32>
    %2 = vector.multi_reduction <add>, %1, %cst [0] : vector<1x1x128xf32> to vector<1x128xf32>
    %3 = vector.extract_strided_slice %0 {offsets = [0, 1, 0], sizes = [1, 1, 128], strides = [1, 1, 1]} : vector<1x8x128xf32> to vector<1x1x128xf32>
    %cst_2 = arith.constant dense<0.000000e+00> : vector<1x128xf32>
    %4 = vector.multi_reduction <add>, %3, %cst_2 [0] : vector<1x1x128xf32> to vector<1x128xf32>
    %cst_3 = arith.constant 7.812500e-03 : f32
    %5 = vector.broadcast %cst_3 : f32 to vector<1x128xf32>
    %6 = arith.mulf %2, %5 : vector<1x128xf32>
    %cst_4 = arith.constant 7.812500e-03 : f32
    %7 = vector.broadcast %cst_4 : f32 to vector<1x128xf32>
    %8 = arith.mulf %4, %7 : vector<1x128xf32>
    %9 = arith.mulf %6, %6 : vector<1x128xf32>
    %10 = arith.subf %8, %9 : vector<1x128xf32>
    %cst_5 = arith.constant 0.000000e+00 : f32
    %11 = vector.broadcast %cst_5 : f32 to vector<1x128xf32>
    %12 = arith.maximumf %10, %11 : vector<1x128xf32>
    %c0_6 = arith.constant 0 : index
    %c0_7 = arith.constant 0 : index
    %13 = vector.load %arg3[%c0_6, %c0_7] : memref<1x128xf32, #tpu.memory_space<vmem>>, vector<1x128xf32>
    %cst_8 = arith.constant 9.99999974E-6 : f32
    %14 = vector.broadcast %cst_8 : f32 to vector<1x128xf32>
    %15 = arith.addf %12, %14 : vector<1x128xf32>
    %16 = math.rsqrt %15 : vector<1x128xf32>
    %17 = arith.mulf %13, %16 : vector<1x128xf32>
    %c0_9 = arith.constant 0 : index
    %c0_10 = arith.constant 0 : index
    %18 = vector.load %arg4[%c0_9, %c0_10] : memref<1x128xf32, #tpu.memory_space<vmem>>, vector<1x128xf32>
    %19 = arith.mulf %6, %17 : vector<1x128xf32>
    %20 = arith.subf %18, %19 : vector<1x128xf32>
    %c0_11 = arith.constant 0 : index
    %c0_12 = arith.constant 0 : index
    %21 = vector.load %arg1[%c0_11, %c0_12] : memref<128x128xbf16, #tpu.memory_space<vmem>>, vector<128x128xbf16>
    %22 = arith.extf %21 : vector<128x128xbf16> to vector<128x128xf32>
    %23 = vector.broadcast %17 : vector<1x128xf32> to vector<128x128xf32>
    %24 = arith.mulf %22, %23 : vector<128x128xf32>
    %25 = vector.broadcast %20 : vector<1x128xf32> to vector<128x128xf32>
    %26 = arith.addf %24, %25 : vector<128x128xf32>
    %cst_13 = arith.constant 0.000000e+00 : f32
    %27 = vector.broadcast %cst_13 : f32 to vector<128x128xf32>
    %28 = arith.maximumf %26, %27 : vector<128x128xf32>
    %29 = arith.truncf %28 : vector<128x128xf32> to vector<128x128xbf16>
    %c0_14 = arith.constant 0 : index
    %c0_15 = arith.constant 0 : index
    %30 = vector.load %arg5[%c0_14, %c0_15] : memref<128x128xbf16, #tpu.memory_space<vmem>>, vector<128x128xbf16>
    tpu.vector_store %arg5[%c0_14, %c0_15], %29 {strides = array<i32>} : memref<128x128xbf16, #tpu.memory_space<vmem>>, vector<128x128xbf16>,
    return
  }
  func.func @transform_0(%arg0: i32) -> (i32, i32) {
    %c0_i32 = arith.constant 0 : i32
    %c0_i32_0 = arith.constant 0 : i32
    return %arg0, %c0_i32 : i32, i32
  }
  func.func @transform_1(%arg0: i32) -> (i32, i32, i32) {
    %c0_i32 = arith.constant 0 : i32
    %c0_i32_0 = arith.constant 0 : i32
    %c0_i32_1 = arith.constant 0 : i32
    %c0_i32_2 = arith.constant 0 : i32
    return %c0_i32, %c0_i32_0, %c0_i32_1 : i32, i32, i32
  }
  func.func @transform_2(%arg0: i32) -> (i32, i32) {
    %c0_i32 = arith.constant 0 : i32
    %c0_i32_0 = arith.constant 0 : i32
    %c0_i32_1 = arith.constant 0 : i32
    return %c0_i32, %c0_i32_0 : i32, i32
  }
  func.func @transform_3(%arg0: i32) -> (i32, i32) {
    %c0_i32 = arith.constant 0 : i32
    %c0_i32_0 = arith.constant 0 : i32
    %c0_i32_1 = arith.constant 0 : i32
    return %c0_i32, %c0_i32_0 : i32, i32
  }
  func.func @transform_4(%arg0: i32) -> (i32, i32) {
    %c0_i32 = arith.constant 0 : i32
    %c0_i32_0 = arith.constant 0 : i32
    return %arg0, %c0_i32 : i32, i32
  }
}

module attributes {stable_mosaic.version = 11 : i64} {
  func.func @_mm_stats_kernel(%arg0: i32, %arg1: memref<32x256xbf16, #tpu.memory_space<vmem>>, %arg2: memref<256x128xbf16, #tpu.memory_space<vmem>>, %arg3: memref<32x128xbf16, #tpu.memory_space<vmem>>, %arg4: memref<1x8x128xf32, #tpu.memory_space<vmem>>) attributes {dimension_semantics = [#tpu.dimension_semantics<parallel>], iteration_bounds = array<i64: 1>, scalar_prefetch = 0 : i64, scratch_operands = 0 : i64, tpu.core_type = #tpu.core_type<tc>, window_params = [{transform_indices = @transform_0, window_bounds = array<i64: 32, 256>}, {pipeline_mode = #tpu.pipeline_mode<synchronous>, transform_indices = @transform_1, window_bounds = array<i64: 256, 128>}, {transform_indices = @transform_2, window_bounds = array<i64: 32, 128>}, {transform_indices = @transform_3, window_bounds = array<i64: 1, 8, 128>}]} {
    %c0 = arith.constant 0 : index
    %c0_0 = arith.constant 0 : index
    %0 = vector.load %arg1[%c0, %c0_0] : memref<32x256xbf16, #tpu.memory_space<vmem>>, vector<32x256xbf16>
    %c0_1 = arith.constant 0 : index
    %c0_2 = arith.constant 0 : index
    %1 = vector.load %arg2[%c0_1, %c0_2] : memref<256x128xbf16, #tpu.memory_space<vmem>>, vector<256x128xbf16>
    %cst = arith.constant dense<0.000000e+00> : vector<32x128xf32>
    %2 = tpu.matmul %0, %1, %cst {dimension_numbers = #tpu.dot_dimension_numbers<[1], [0], [0], [1], [0, 0, 1, 1], [], []>} : vector<32x256xbf16>, vector<256x128xbf16>, vector<32x128xf32> -> vector<32x128xf32>
    %3 = arith.truncf %2 : vector<32x128xf32> to vector<32x128xbf16>
    %c0_3 = arith.constant 0 : index
    %c0_4 = arith.constant 0 : index
    %4 = vector.load %arg3[%c0_3, %c0_4] : memref<32x128xbf16, #tpu.memory_space<vmem>>, vector<32x128xbf16>
    tpu.vector_store %arg3[%c0_3, %c0_4], %3 {strides = array<i32>} : memref<32x128xbf16, #tpu.memory_space<vmem>>, vector<32x128xbf16>,
    %cst_5 = arith.constant dense<0.000000e+00> : vector<128xf32>
    %5 = vector.multi_reduction <add>, %2, %cst_5 [0] : vector<32x128xf32> to vector<128xf32>
    %6 = vector.shape_cast %5 : vector<128xf32> to vector<1x128xf32>
    %c0_6 = arith.constant 0 : index
    %c0_7 = arith.constant 0 : index
    %c0_8 = arith.constant 0 : index
    %7 = vector.load %arg4[%c0_6, %c0_7, %c0_8] : memref<1x8x128xf32, #tpu.memory_space<vmem>>, vector<1x1x128xf32>
    %8 = vector.shape_cast %7 : vector<1x1x128xf32> to vector<1x128xf32>
    %9 = vector.shape_cast %6 : vector<1x128xf32> to vector<1x1x128xf32>
    tpu.vector_store %arg4[%c0_6, %c0_7, %c0_8], %9 {strides = array<i32>} : memref<1x8x128xf32, #tpu.memory_space<vmem>>, vector<1x1x128xf32>,
    %10 = arith.mulf %2, %2 : vector<32x128xf32>
    %cst_9 = arith.constant dense<0.000000e+00> : vector<128xf32>
    %11 = vector.multi_reduction <add>, %10, %cst_9 [0] : vector<32x128xf32> to vector<128xf32>
    %12 = vector.shape_cast %11 : vector<128xf32> to vector<1x128xf32>
    %c0_10 = arith.constant 0 : index
    %c1 = arith.constant 1 : index
    %c0_11 = arith.constant 0 : index
    %13 = vector.load %arg4[%c0_10, %c1, %c0_11] : memref<1x8x128xf32, #tpu.memory_space<vmem>>, vector<1x1x128xf32>
    %14 = vector.shape_cast %13 : vector<1x1x128xf32> to vector<1x128xf32>
    %15 = vector.shape_cast %12 : vector<1x128xf32> to vector<1x1x128xf32>
    tpu.vector_store %arg4[%c0_10, %c1, %c0_11], %15 {strides = array<i32>} : memref<1x8x128xf32, #tpu.memory_space<vmem>>, vector<1x1x128xf32>,
    return
  }
  func.func @transform_0(%arg0: i32) -> (i32, i32) {
    %c0_i32 = arith.constant 0 : i32
    %c0_i32_0 = arith.constant 0 : i32
    return %arg0, %c0_i32 : i32, i32
  }
  func.func @transform_1(%arg0: i32) -> (i32, i32) {
    %c0_i32 = arith.constant 0 : i32
    %c0_i32_0 = arith.constant 0 : i32
    %c0_i32_1 = arith.constant 0 : i32
    return %c0_i32, %c0_i32_0 : i32, i32
  }
  func.func @transform_2(%arg0: i32) -> (i32, i32) {
    %c0_i32 = arith.constant 0 : i32
    %c0_i32_0 = arith.constant 0 : i32
    return %arg0, %c0_i32 : i32, i32
  }
  func.func @transform_3(%arg0: i32) -> (i32, i32, i32) {
    %c0_i32 = arith.constant 0 : i32
    %c0_i32_0 = arith.constant 0 : i32
    %c0_i32_1 = arith.constant 0 : i32
    return %arg0, %c0_i32, %c0_i32_0 : i32, i32, i32
  }
}

module attributes {stable_mosaic.version = 11 : i64} {
  func.func @_bn_act_kernel(%arg0: i32, %arg1: memref<32x128xbf16, #tpu.memory_space<vmem>>, %arg2: memref<1x8x128xf32, #tpu.memory_space<vmem>>, %arg3: memref<1x128xf32, #tpu.memory_space<vmem>>, %arg4: memref<1x128xf32, #tpu.memory_space<vmem>>, %arg5: memref<32x128xbf16, #tpu.memory_space<vmem>>) attributes {dimension_semantics = [#tpu.dimension_semantics<parallel>], iteration_bounds = array<i64: 1>, scalar_prefetch = 0 : i64, scratch_operands = 0 : i64, tpu.core_type = #tpu.core_type<tc>, window_params = [{transform_indices = @transform_0, window_bounds = array<i64: 32, 128>}, {pipeline_mode = #tpu.pipeline_mode<synchronous>, transform_indices = @transform_1, window_bounds = array<i64: 1, 8, 128>}, {pipeline_mode = #tpu.pipeline_mode<synchronous>, transform_indices = @transform_2, window_bounds = array<i64: 1, 128>}, {pipeline_mode = #tpu.pipeline_mode<synchronous>, transform_indices = @transform_3, window_bounds = array<i64: 1, 128>}, {transform_indices = @transform_4, window_bounds = array<i64: 32, 128>}]} {
    %c0 = arith.constant 0 : index
    %c0_0 = arith.constant 0 : index
    %c0_1 = arith.constant 0 : index
    %0 = vector.load %arg2[%c0, %c0_0, %c0_1] : memref<1x8x128xf32, #tpu.memory_space<vmem>>, vector<1x8x128xf32>
    %1 = vector.extract_strided_slice %0 {offsets = [0, 0, 0], sizes = [1, 1, 128], strides = [1, 1, 1]} : vector<1x8x128xf32> to vector<1x1x128xf32>
    %cst = arith.constant dense<0.000000e+00> : vector<1x128xf32>
    %2 = vector.multi_reduction <add>, %1, %cst [0] : vector<1x1x128xf32> to vector<1x128xf32>
    %3 = vector.extract_strided_slice %0 {offsets = [0, 1, 0], sizes = [1, 1, 128], strides = [1, 1, 1]} : vector<1x8x128xf32> to vector<1x1x128xf32>
    %cst_2 = arith.constant dense<0.000000e+00> : vector<1x128xf32>
    %4 = vector.multi_reduction <add>, %3, %cst_2 [0] : vector<1x1x128xf32> to vector<1x128xf32>
    %cst_3 = arith.constant 3.125000e-02 : f32
    %5 = vector.broadcast %cst_3 : f32 to vector<1x128xf32>
    %6 = arith.mulf %2, %5 : vector<1x128xf32>
    %cst_4 = arith.constant 3.125000e-02 : f32
    %7 = vector.broadcast %cst_4 : f32 to vector<1x128xf32>
    %8 = arith.mulf %4, %7 : vector<1x128xf32>
    %9 = arith.mulf %6, %6 : vector<1x128xf32>
    %10 = arith.subf %8, %9 : vector<1x128xf32>
    %cst_5 = arith.constant 0.000000e+00 : f32
    %11 = vector.broadcast %cst_5 : f32 to vector<1x128xf32>
    %12 = arith.maximumf %10, %11 : vector<1x128xf32>
    %c0_6 = arith.constant 0 : index
    %c0_7 = arith.constant 0 : index
    %13 = vector.load %arg3[%c0_6, %c0_7] : memref<1x128xf32, #tpu.memory_space<vmem>>, vector<1x128xf32>
    %cst_8 = arith.constant 9.99999974E-6 : f32
    %14 = vector.broadcast %cst_8 : f32 to vector<1x128xf32>
    %15 = arith.addf %12, %14 : vector<1x128xf32>
    %16 = math.rsqrt %15 : vector<1x128xf32>
    %17 = arith.mulf %13, %16 : vector<1x128xf32>
    %c0_9 = arith.constant 0 : index
    %c0_10 = arith.constant 0 : index
    %18 = vector.load %arg4[%c0_9, %c0_10] : memref<1x128xf32, #tpu.memory_space<vmem>>, vector<1x128xf32>
    %19 = arith.mulf %6, %17 : vector<1x128xf32>
    %20 = arith.subf %18, %19 : vector<1x128xf32>
    %c0_11 = arith.constant 0 : index
    %c0_12 = arith.constant 0 : index
    %21 = vector.load %arg1[%c0_11, %c0_12] : memref<32x128xbf16, #tpu.memory_space<vmem>>, vector<32x128xbf16>
    %22 = arith.extf %21 : vector<32x128xbf16> to vector<32x128xf32>
    %23 = vector.broadcast %17 : vector<1x128xf32> to vector<32x128xf32>
    %24 = arith.mulf %22, %23 : vector<32x128xf32>
    %25 = vector.broadcast %20 : vector<1x128xf32> to vector<32x128xf32>
    %26 = arith.addf %24, %25 : vector<32x128xf32>
    %cst_13 = arith.constant 0.000000e+00 : f32
    %27 = vector.broadcast %cst_13 : f32 to vector<32x128xf32>
    %28 = arith.maximumf %26, %27 : vector<32x128xf32>
    %29 = arith.truncf %28 : vector<32x128xf32> to vector<32x128xbf16>
    %c0_14 = arith.constant 0 : index
    %c0_15 = arith.constant 0 : index
    %30 = vector.load %arg5[%c0_14, %c0_15] : memref<32x128xbf16, #tpu.memory_space<vmem>>, vector<32x128xbf16>
    tpu.vector_store %arg5[%c0_14, %c0_15], %29 {strides = array<i32>} : memref<32x128xbf16, #tpu.memory_space<vmem>>, vector<32x128xbf16>,
    return
  }
  func.func @transform_0(%arg0: i32) -> (i32, i32) {
    %c0_i32 = arith.constant 0 : i32
    %c0_i32_0 = arith.constant 0 : i32
    return %arg0, %c0_i32 : i32, i32
  }
  func.func @transform_1(%arg0: i32) -> (i32, i32, i32) {
    %c0_i32 = arith.constant 0 : i32
    %c0_i32_0 = arith.constant 0 : i32
    %c0_i32_1 = arith.constant 0 : i32
    %c0_i32_2 = arith.constant 0 : i32
    return %c0_i32, %c0_i32_0, %c0_i32_1 : i32, i32, i32
  }
  func.func @transform_2(%arg0: i32) -> (i32, i32) {
    %c0_i32 = arith.constant 0 : i32
    %c0_i32_0 = arith.constant 0 : i32
    %c0_i32_1 = arith.constant 0 : i32
    return %c0_i32, %c0_i32_0 : i32, i32
  }
  func.func @transform_3(%arg0: i32) -> (i32, i32) {
    %c0_i32 = arith.constant 0 : i32
    %c0_i32_0 = arith.constant 0 : i32
    %c0_i32_1 = arith.constant 0 : i32
    return %c0_i32, %c0_i32_0 : i32, i32
  }
  func.func @transform_4(%arg0: i32) -> (i32, i32) {
    %c0_i32 = arith.constant 0 : i32
    %c0_i32_0 = arith.constant 0 : i32
    return %arg0, %c0_i32 : i32, i32
  }
}

module attributes {stable_mosaic.version = 11 : i64} {
  func.func @_bn_act_kernel(%arg0: i32, %arg1: memref<8x128xbf16, #tpu.memory_space<vmem>>, %arg2: memref<1x8x128xf32, #tpu.memory_space<vmem>>, %arg3: memref<1x128xf32, #tpu.memory_space<vmem>>, %arg4: memref<1x128xf32, #tpu.memory_space<vmem>>, %arg5: memref<8x128xbf16, #tpu.memory_space<vmem>>) attributes {dimension_semantics = [#tpu.dimension_semantics<parallel>], iteration_bounds = array<i64: 1>, scalar_prefetch = 0 : i64, scratch_operands = 0 : i64, tpu.core_type = #tpu.core_type<tc>, window_params = [{transform_indices = @transform_0, window_bounds = array<i64: 8, 128>}, {pipeline_mode = #tpu.pipeline_mode<synchronous>, transform_indices = @transform_1, window_bounds = array<i64: 1, 8, 128>}, {pipeline_mode = #tpu.pipeline_mode<synchronous>, transform_indices = @transform_2, window_bounds = array<i64: 1, 128>}, {pipeline_mode = #tpu.pipeline_mode<synchronous>, transform_indices = @transform_3, window_bounds = array<i64: 1, 128>}, {transform_indices = @transform_4, window_bounds = array<i64: 8, 128>}]} {
    %c0 = arith.constant 0 : index
    %c0_0 = arith.constant 0 : index
    %c0_1 = arith.constant 0 : index
    %0 = vector.load %arg2[%c0, %c0_0, %c0_1] : memref<1x8x128xf32, #tpu.memory_space<vmem>>, vector<1x8x128xf32>
    %1 = vector.extract_strided_slice %0 {offsets = [0, 0, 0], sizes = [1, 1, 128], strides = [1, 1, 1]} : vector<1x8x128xf32> to vector<1x1x128xf32>
    %cst = arith.constant dense<0.000000e+00> : vector<1x128xf32>
    %2 = vector.multi_reduction <add>, %1, %cst [0] : vector<1x1x128xf32> to vector<1x128xf32>
    %3 = vector.extract_strided_slice %0 {offsets = [0, 1, 0], sizes = [1, 1, 128], strides = [1, 1, 1]} : vector<1x8x128xf32> to vector<1x1x128xf32>
    %cst_2 = arith.constant dense<0.000000e+00> : vector<1x128xf32>
    %4 = vector.multi_reduction <add>, %3, %cst_2 [0] : vector<1x1x128xf32> to vector<1x128xf32>
    %cst_3 = arith.constant 1.250000e-01 : f32
    %5 = vector.broadcast %cst_3 : f32 to vector<1x128xf32>
    %6 = arith.mulf %2, %5 : vector<1x128xf32>
    %cst_4 = arith.constant 1.250000e-01 : f32
    %7 = vector.broadcast %cst_4 : f32 to vector<1x128xf32>
    %8 = arith.mulf %4, %7 : vector<1x128xf32>
    %9 = arith.mulf %6, %6 : vector<1x128xf32>
    %10 = arith.subf %8, %9 : vector<1x128xf32>
    %cst_5 = arith.constant 0.000000e+00 : f32
    %11 = vector.broadcast %cst_5 : f32 to vector<1x128xf32>
    %12 = arith.maximumf %10, %11 : vector<1x128xf32>
    %c0_6 = arith.constant 0 : index
    %c0_7 = arith.constant 0 : index
    %13 = vector.load %arg3[%c0_6, %c0_7] : memref<1x128xf32, #tpu.memory_space<vmem>>, vector<1x128xf32>
    %cst_8 = arith.constant 9.99999974E-6 : f32
    %14 = vector.broadcast %cst_8 : f32 to vector<1x128xf32>
    %15 = arith.addf %12, %14 : vector<1x128xf32>
    %16 = math.rsqrt %15 : vector<1x128xf32>
    %17 = arith.mulf %13, %16 : vector<1x128xf32>
    %c0_9 = arith.constant 0 : index
    %c0_10 = arith.constant 0 : index
    %18 = vector.load %arg4[%c0_9, %c0_10] : memref<1x128xf32, #tpu.memory_space<vmem>>, vector<1x128xf32>
    %19 = arith.mulf %6, %17 : vector<1x128xf32>
    %20 = arith.subf %18, %19 : vector<1x128xf32>
    %c0_11 = arith.constant 0 : index
    %c0_12 = arith.constant 0 : index
    %21 = vector.load %arg1[%c0_11, %c0_12] : memref<8x128xbf16, #tpu.memory_space<vmem>>, vector<8x128xbf16>
    %22 = arith.extf %21 : vector<8x128xbf16> to vector<8x128xf32>
    %23 = vector.broadcast %17 : vector<1x128xf32> to vector<8x128xf32>
    %24 = arith.mulf %22, %23 : vector<8x128xf32>
    %25 = vector.broadcast %20 : vector<1x128xf32> to vector<8x128xf32>
    %26 = arith.addf %24, %25 : vector<8x128xf32>
    %cst_13 = arith.constant 0.000000e+00 : f32
    %27 = vector.broadcast %cst_13 : f32 to vector<8x128xf32>
    %28 = arith.maximumf %26, %27 : vector<8x128xf32>
    %29 = arith.truncf %28 : vector<8x128xf32> to vector<8x128xbf16>
    %c0_14 = arith.constant 0 : index
    %c0_15 = arith.constant 0 : index
    %30 = vector.load %arg5[%c0_14, %c0_15] : memref<8x128xbf16, #tpu.memory_space<vmem>>, vector<8x128xbf16>
    tpu.vector_store %arg5[%c0_14, %c0_15], %29 {strides = array<i32>} : memref<8x128xbf16, #tpu.memory_space<vmem>>, vector<8x128xbf16>,
    return
  }
  func.func @transform_0(%arg0: i32) -> (i32, i32) {
    %c0_i32 = arith.constant 0 : i32
    %c0_i32_0 = arith.constant 0 : i32
    return %arg0, %c0_i32 : i32, i32
  }
  func.func @transform_1(%arg0: i32) -> (i32, i32, i32) {
    %c0_i32 = arith.constant 0 : i32
    %c0_i32_0 = arith.constant 0 : i32
    %c0_i32_1 = arith.constant 0 : i32
    %c0_i32_2 = arith.constant 0 : i32
    return %c0_i32, %c0_i32_0, %c0_i32_1 : i32, i32, i32
  }
  func.func @transform_2(%arg0: i32) -> (i32, i32) {
    %c0_i32 = arith.constant 0 : i32
    %c0_i32_0 = arith.constant 0 : i32
    %c0_i32_1 = arith.constant 0 : i32
    return %c0_i32, %c0_i32_0 : i32, i32
  }
  func.func @transform_3(%arg0: i32) -> (i32, i32) {
    %c0_i32 = arith.constant 0 : i32
    %c0_i32_0 = arith.constant 0 : i32
    %c0_i32_1 = arith.constant 0 : i32
    return %c0_i32, %c0_i32_0 : i32, i32
  }
  func.func @transform_4(%arg0: i32) -> (i32, i32) {
    %c0_i32 = arith.constant 0 : i32
    %c0_i32_0 = arith.constant 0 : i32
    return %arg0, %c0_i32 : i32, i32
  }
}

module attributes {stable_mosaic.version = 11 : i64} {
  func.func @_mm_stats_kernel(%arg0: i32, %arg1: memref<8x384xbf16, #tpu.memory_space<vmem>>, %arg2: memref<384x128xbf16, #tpu.memory_space<vmem>>, %arg3: memref<8x128xbf16, #tpu.memory_space<vmem>>, %arg4: memref<1x8x128xf32, #tpu.memory_space<vmem>>) attributes {dimension_semantics = [#tpu.dimension_semantics<parallel>], iteration_bounds = array<i64: 1>, scalar_prefetch = 0 : i64, scratch_operands = 0 : i64, tpu.core_type = #tpu.core_type<tc>, window_params = [{transform_indices = @transform_0, window_bounds = array<i64: 8, 384>}, {pipeline_mode = #tpu.pipeline_mode<synchronous>, transform_indices = @transform_1, window_bounds = array<i64: 384, 128>}, {transform_indices = @transform_2, window_bounds = array<i64: 8, 128>}, {transform_indices = @transform_3, window_bounds = array<i64: 1, 8, 128>}]} {
    %c0 = arith.constant 0 : index
    %c0_0 = arith.constant 0 : index
    %0 = vector.load %arg1[%c0, %c0_0] : memref<8x384xbf16, #tpu.memory_space<vmem>>, vector<8x384xbf16>
    %c0_1 = arith.constant 0 : index
    %c0_2 = arith.constant 0 : index
    %1 = vector.load %arg2[%c0_1, %c0_2] : memref<384x128xbf16, #tpu.memory_space<vmem>>, vector<384x128xbf16>
    %cst = arith.constant dense<0.000000e+00> : vector<8x128xf32>
    %2 = tpu.matmul %0, %1, %cst {dimension_numbers = #tpu.dot_dimension_numbers<[1], [0], [0], [1], [0, 0, 1, 1], [], []>} : vector<8x384xbf16>, vector<384x128xbf16>, vector<8x128xf32> -> vector<8x128xf32>
    %3 = arith.truncf %2 : vector<8x128xf32> to vector<8x128xbf16>
    %c0_3 = arith.constant 0 : index
    %c0_4 = arith.constant 0 : index
    %4 = vector.load %arg3[%c0_3, %c0_4] : memref<8x128xbf16, #tpu.memory_space<vmem>>, vector<8x128xbf16>
    tpu.vector_store %arg3[%c0_3, %c0_4], %3 {strides = array<i32>} : memref<8x128xbf16, #tpu.memory_space<vmem>>, vector<8x128xbf16>,
    %cst_5 = arith.constant dense<0.000000e+00> : vector<128xf32>
    %5 = vector.multi_reduction <add>, %2, %cst_5 [0] : vector<8x128xf32> to vector<128xf32>
    %6 = vector.shape_cast %5 : vector<128xf32> to vector<1x128xf32>
    %c0_6 = arith.constant 0 : index
    %c0_7 = arith.constant 0 : index
    %c0_8 = arith.constant 0 : index
    %7 = vector.load %arg4[%c0_6, %c0_7, %c0_8] : memref<1x8x128xf32, #tpu.memory_space<vmem>>, vector<1x1x128xf32>
    %8 = vector.shape_cast %7 : vector<1x1x128xf32> to vector<1x128xf32>
    %9 = vector.shape_cast %6 : vector<1x128xf32> to vector<1x1x128xf32>
    tpu.vector_store %arg4[%c0_6, %c0_7, %c0_8], %9 {strides = array<i32>} : memref<1x8x128xf32, #tpu.memory_space<vmem>>, vector<1x1x128xf32>,
    %10 = arith.mulf %2, %2 : vector<8x128xf32>
    %cst_9 = arith.constant dense<0.000000e+00> : vector<128xf32>
    %11 = vector.multi_reduction <add>, %10, %cst_9 [0] : vector<8x128xf32> to vector<128xf32>
    %12 = vector.shape_cast %11 : vector<128xf32> to vector<1x128xf32>
    %c0_10 = arith.constant 0 : index
    %c1 = arith.constant 1 : index
    %c0_11 = arith.constant 0 : index
    %13 = vector.load %arg4[%c0_10, %c1, %c0_11] : memref<1x8x128xf32, #tpu.memory_space<vmem>>, vector<1x1x128xf32>
    %14 = vector.shape_cast %13 : vector<1x1x128xf32> to vector<1x128xf32>
    %15 = vector.shape_cast %12 : vector<1x128xf32> to vector<1x1x128xf32>
    tpu.vector_store %arg4[%c0_10, %c1, %c0_11], %15 {strides = array<i32>} : memref<1x8x128xf32, #tpu.memory_space<vmem>>, vector<1x1x128xf32>,
    return
  }
  func.func @transform_0(%arg0: i32) -> (i32, i32) {
    %c0_i32 = arith.constant 0 : i32
    %c0_i32_0 = arith.constant 0 : i32
    return %arg0, %c0_i32 : i32, i32
  }
  func.func @transform_1(%arg0: i32) -> (i32, i32) {
    %c0_i32 = arith.constant 0 : i32
    %c0_i32_0 = arith.constant 0 : i32
    %c0_i32_1 = arith.constant 0 : i32
    return %c0_i32, %c0_i32_0 : i32, i32
  }
  func.func @transform_2(%arg0: i32) -> (i32, i32) {
    %c0_i32 = arith.constant 0 : i32
    %c0_i32_0 = arith.constant 0 : i32
    return %arg0, %c0_i32 : i32, i32
  }
  func.func @transform_3(%arg0: i32) -> (i32, i32, i32) {
    %c0_i32 = arith.constant 0 : i32
    %c0_i32_0 = arith.constant 0 : i32
    %c0_i32_1 = arith.constant 0 : i32
    return %arg0, %c0_i32, %c0_i32_0 : i32, i32, i32
  }
}

module attributes {stable_mosaic.version = 11 : i64} {
  func.func @_bn_act_res_kernel(%arg0: i32, %arg1: memref<8x128xbf16, #tpu.memory_space<vmem>>, %arg2: memref<8x128xbf16, #tpu.memory_space<vmem>>, %arg3: memref<1x8x128xf32, #tpu.memory_space<vmem>>, %arg4: memref<1x128xf32, #tpu.memory_space<vmem>>, %arg5: memref<1x128xf32, #tpu.memory_space<vmem>>, %arg6: memref<8x128xbf16, #tpu.memory_space<vmem>>) attributes {dimension_semantics = [#tpu.dimension_semantics<parallel>], iteration_bounds = array<i64: 1>, scalar_prefetch = 0 : i64, scratch_operands = 0 : i64, tpu.core_type = #tpu.core_type<tc>, window_params = [{transform_indices = @transform_0, window_bounds = array<i64: 8, 128>}, {transform_indices = @transform_1, window_bounds = array<i64: 8, 128>}, {pipeline_mode = #tpu.pipeline_mode<synchronous>, transform_indices = @transform_2, window_bounds = array<i64: 1, 8, 128>}, {pipeline_mode = #tpu.pipeline_mode<synchronous>, transform_indices = @transform_3, window_bounds = array<i64: 1, 128>}, {pipeline_mode = #tpu.pipeline_mode<synchronous>, transform_indices = @transform_4, window_bounds = array<i64: 1, 128>}, {transform_indices = @transform_5, window_bounds = array<i64: 8, 128>}]} {
    %c0 = arith.constant 0 : index
    %c0_0 = arith.constant 0 : index
    %c0_1 = arith.constant 0 : index
    %0 = vector.load %arg3[%c0, %c0_0, %c0_1] : memref<1x8x128xf32, #tpu.memory_space<vmem>>, vector<1x8x128xf32>
    %1 = vector.extract_strided_slice %0 {offsets = [0, 0, 0], sizes = [1, 1, 128], strides = [1, 1, 1]} : vector<1x8x128xf32> to vector<1x1x128xf32>
    %cst = arith.constant dense<0.000000e+00> : vector<1x128xf32>
    %2 = vector.multi_reduction <add>, %1, %cst [0] : vector<1x1x128xf32> to vector<1x128xf32>
    %3 = vector.extract_strided_slice %0 {offsets = [0, 1, 0], sizes = [1, 1, 128], strides = [1, 1, 1]} : vector<1x8x128xf32> to vector<1x1x128xf32>
    %cst_2 = arith.constant dense<0.000000e+00> : vector<1x128xf32>
    %4 = vector.multi_reduction <add>, %3, %cst_2 [0] : vector<1x1x128xf32> to vector<1x128xf32>
    %cst_3 = arith.constant 1.250000e-01 : f32
    %5 = vector.broadcast %cst_3 : f32 to vector<1x128xf32>
    %6 = arith.mulf %2, %5 : vector<1x128xf32>
    %cst_4 = arith.constant 1.250000e-01 : f32
    %7 = vector.broadcast %cst_4 : f32 to vector<1x128xf32>
    %8 = arith.mulf %4, %7 : vector<1x128xf32>
    %9 = arith.mulf %6, %6 : vector<1x128xf32>
    %10 = arith.subf %8, %9 : vector<1x128xf32>
    %cst_5 = arith.constant 0.000000e+00 : f32
    %11 = vector.broadcast %cst_5 : f32 to vector<1x128xf32>
    %12 = arith.maximumf %10, %11 : vector<1x128xf32>
    %c0_6 = arith.constant 0 : index
    %c0_7 = arith.constant 0 : index
    %13 = vector.load %arg4[%c0_6, %c0_7] : memref<1x128xf32, #tpu.memory_space<vmem>>, vector<1x128xf32>
    %cst_8 = arith.constant 9.99999974E-6 : f32
    %14 = vector.broadcast %cst_8 : f32 to vector<1x128xf32>
    %15 = arith.addf %12, %14 : vector<1x128xf32>
    %16 = math.rsqrt %15 : vector<1x128xf32>
    %17 = arith.mulf %13, %16 : vector<1x128xf32>
    %c0_9 = arith.constant 0 : index
    %c0_10 = arith.constant 0 : index
    %18 = vector.load %arg5[%c0_9, %c0_10] : memref<1x128xf32, #tpu.memory_space<vmem>>, vector<1x128xf32>
    %19 = arith.mulf %6, %17 : vector<1x128xf32>
    %20 = arith.subf %18, %19 : vector<1x128xf32>
    %c0_11 = arith.constant 0 : index
    %c0_12 = arith.constant 0 : index
    %21 = vector.load %arg1[%c0_11, %c0_12] : memref<8x128xbf16, #tpu.memory_space<vmem>>, vector<8x128xbf16>
    %22 = arith.extf %21 : vector<8x128xbf16> to vector<8x128xf32>
    %23 = vector.broadcast %17 : vector<1x128xf32> to vector<8x128xf32>
    %24 = arith.mulf %22, %23 : vector<8x128xf32>
    %25 = vector.broadcast %20 : vector<1x128xf32> to vector<8x128xf32>
    %26 = arith.addf %24, %25 : vector<8x128xf32>
    %c0_13 = arith.constant 0 : index
    %c0_14 = arith.constant 0 : index
    %27 = vector.load %arg2[%c0_13, %c0_14] : memref<8x128xbf16, #tpu.memory_space<vmem>>, vector<8x128xbf16>
    %28 = arith.extf %27 : vector<8x128xbf16> to vector<8x128xf32>
    %29 = arith.addf %26, %28 : vector<8x128xf32>
    %30 = arith.truncf %29 : vector<8x128xf32> to vector<8x128xbf16>
    %c0_15 = arith.constant 0 : index
    %c0_16 = arith.constant 0 : index
    %31 = vector.load %arg6[%c0_15, %c0_16] : memref<8x128xbf16, #tpu.memory_space<vmem>>, vector<8x128xbf16>
    tpu.vector_store %arg6[%c0_15, %c0_16], %30 {strides = array<i32>} : memref<8x128xbf16, #tpu.memory_space<vmem>>, vector<8x128xbf16>,
    return
  }
  func.func @transform_0(%arg0: i32) -> (i32, i32) {
    %c0_i32 = arith.constant 0 : i32
    %c0_i32_0 = arith.constant 0 : i32
    return %arg0, %c0_i32 : i32, i32
  }
  func.func @transform_1(%arg0: i32) -> (i32, i32) {
    %c0_i32 = arith.constant 0 : i32
    %c0_i32_0 = arith.constant 0 : i32
    return %arg0, %c0_i32 : i32, i32
  }
  func.func @transform_2(%arg0: i32) -> (i32, i32, i32) {
    %c0_i32 = arith.constant 0 : i32
    %c0_i32_0 = arith.constant 0 : i32
    %c0_i32_1 = arith.constant 0 : i32
    %c0_i32_2 = arith.constant 0 : i32
    return %c0_i32, %c0_i32_0, %c0_i32_1 : i32, i32, i32
  }
  func.func @transform_3(%arg0: i32) -> (i32, i32) {
    %c0_i32 = arith.constant 0 : i32
    %c0_i32_0 = arith.constant 0 : i32
    %c0_i32_1 = arith.constant 0 : i32
    return %c0_i32, %c0_i32_0 : i32, i32
  }
  func.func @transform_4(%arg0: i32) -> (i32, i32) {
    %c0_i32 = arith.constant 0 : i32
    %c0_i32_0 = arith.constant 0 : i32
    %c0_i32_1 = arith.constant 0 : i32
    return %c0_i32, %c0_i32_0 : i32, i32
  }
  func.func @transform_5(%arg0: i32) -> (i32, i32) {
    %c0_i32 = arith.constant 0 : i32
    %c0_i32_0 = arith.constant 0 : i32
    return %arg0, %c0_i32 : i32, i32
  }
}

module attributes {stable_mosaic.version = 11 : i64} {
  func.func @_mm_stats_kernel(%arg0: i32, %arg1: memref<8x640xbf16, #tpu.memory_space<vmem>>, %arg2: memref<640x128xbf16, #tpu.memory_space<vmem>>, %arg3: memref<8x128xbf16, #tpu.memory_space<vmem>>, %arg4: memref<1x8x128xf32, #tpu.memory_space<vmem>>) attributes {dimension_semantics = [#tpu.dimension_semantics<parallel>], iteration_bounds = array<i64: 1>, scalar_prefetch = 0 : i64, scratch_operands = 0 : i64, tpu.core_type = #tpu.core_type<tc>, window_params = [{transform_indices = @transform_0, window_bounds = array<i64: 8, 640>}, {pipeline_mode = #tpu.pipeline_mode<synchronous>, transform_indices = @transform_1, window_bounds = array<i64: 640, 128>}, {transform_indices = @transform_2, window_bounds = array<i64: 8, 128>}, {transform_indices = @transform_3, window_bounds = array<i64: 1, 8, 128>}]} {
    %c0 = arith.constant 0 : index
    %c0_0 = arith.constant 0 : index
    %0 = vector.load %arg1[%c0, %c0_0] : memref<8x640xbf16, #tpu.memory_space<vmem>>, vector<8x640xbf16>
    %c0_1 = arith.constant 0 : index
    %c0_2 = arith.constant 0 : index
    %1 = vector.load %arg2[%c0_1, %c0_2] : memref<640x128xbf16, #tpu.memory_space<vmem>>, vector<640x128xbf16>
    %cst = arith.constant dense<0.000000e+00> : vector<8x128xf32>
    %2 = tpu.matmul %0, %1, %cst {dimension_numbers = #tpu.dot_dimension_numbers<[1], [0], [0], [1], [0, 0, 1, 1], [], []>} : vector<8x640xbf16>, vector<640x128xbf16>, vector<8x128xf32> -> vector<8x128xf32>
    %3 = arith.truncf %2 : vector<8x128xf32> to vector<8x128xbf16>
    %c0_3 = arith.constant 0 : index
    %c0_4 = arith.constant 0 : index
    %4 = vector.load %arg3[%c0_3, %c0_4] : memref<8x128xbf16, #tpu.memory_space<vmem>>, vector<8x128xbf16>
    tpu.vector_store %arg3[%c0_3, %c0_4], %3 {strides = array<i32>} : memref<8x128xbf16, #tpu.memory_space<vmem>>, vector<8x128xbf16>,
    %cst_5 = arith.constant dense<0.000000e+00> : vector<128xf32>
    %5 = vector.multi_reduction <add>, %2, %cst_5 [0] : vector<8x128xf32> to vector<128xf32>
    %6 = vector.shape_cast %5 : vector<128xf32> to vector<1x128xf32>
    %c0_6 = arith.constant 0 : index
    %c0_7 = arith.constant 0 : index
    %c0_8 = arith.constant 0 : index
    %7 = vector.load %arg4[%c0_6, %c0_7, %c0_8] : memref<1x8x128xf32, #tpu.memory_space<vmem>>, vector<1x1x128xf32>
    %8 = vector.shape_cast %7 : vector<1x1x128xf32> to vector<1x128xf32>
    %9 = vector.shape_cast %6 : vector<1x128xf32> to vector<1x1x128xf32>
    tpu.vector_store %arg4[%c0_6, %c0_7, %c0_8], %9 {strides = array<i32>} : memref<1x8x128xf32, #tpu.memory_space<vmem>>, vector<1x1x128xf32>,
    %10 = arith.mulf %2, %2 : vector<8x128xf32>
    %cst_9 = arith.constant dense<0.000000e+00> : vector<128xf32>
    %11 = vector.multi_reduction <add>, %10, %cst_9 [0] : vector<8x128xf32> to vector<128xf32>
    %12 = vector.shape_cast %11 : vector<128xf32> to vector<1x128xf32>
    %c0_10 = arith.constant 0 : index
    %c1 = arith.constant 1 : index
    %c0_11 = arith.constant 0 : index
    %13 = vector.load %arg4[%c0_10, %c1, %c0_11] : memref<1x8x128xf32, #tpu.memory_space<vmem>>, vector<1x1x128xf32>
    %14 = vector.shape_cast %13 : vector<1x1x128xf32> to vector<1x128xf32>
    %15 = vector.shape_cast %12 : vector<1x128xf32> to vector<1x1x128xf32>
    tpu.vector_store %arg4[%c0_10, %c1, %c0_11], %15 {strides = array<i32>} : memref<1x8x128xf32, #tpu.memory_space<vmem>>, vector<1x1x128xf32>,
    return
  }
  func.func @transform_0(%arg0: i32) -> (i32, i32) {
    %c0_i32 = arith.constant 0 : i32
    %c0_i32_0 = arith.constant 0 : i32
    return %arg0, %c0_i32 : i32, i32
  }
  func.func @transform_1(%arg0: i32) -> (i32, i32) {
    %c0_i32 = arith.constant 0 : i32
    %c0_i32_0 = arith.constant 0 : i32
    %c0_i32_1 = arith.constant 0 : i32
    return %c0_i32, %c0_i32_0 : i32, i32
  }
  func.func @transform_2(%arg0: i32) -> (i32, i32) {
    %c0_i32 = arith.constant 0 : i32
    %c0_i32_0 = arith.constant 0 : i32
    return %arg0, %c0_i32 : i32, i32
  }
  func.func @transform_3(%arg0: i32) -> (i32, i32, i32) {
    %c0_i32 = arith.constant 0 : i32
    %c0_i32_0 = arith.constant 0 : i32
    %c0_i32_1 = arith.constant 0 : i32
    return %arg0, %c0_i32, %c0_i32_0 : i32, i32, i32
  }
}

module attributes {stable_mosaic.version = 11 : i64} {
  func.func @_mm_stats_kernel(%arg0: i32, %arg1: memref<8x256xbf16, #tpu.memory_space<vmem>>, %arg2: memref<256x128xbf16, #tpu.memory_space<vmem>>, %arg3: memref<8x128xbf16, #tpu.memory_space<vmem>>, %arg4: memref<1x8x128xf32, #tpu.memory_space<vmem>>) attributes {dimension_semantics = [#tpu.dimension_semantics<parallel>], iteration_bounds = array<i64: 1>, scalar_prefetch = 0 : i64, scratch_operands = 0 : i64, tpu.core_type = #tpu.core_type<tc>, window_params = [{transform_indices = @transform_0, window_bounds = array<i64: 8, 256>}, {pipeline_mode = #tpu.pipeline_mode<synchronous>, transform_indices = @transform_1, window_bounds = array<i64: 256, 128>}, {transform_indices = @transform_2, window_bounds = array<i64: 8, 128>}, {transform_indices = @transform_3, window_bounds = array<i64: 1, 8, 128>}]} {
    %c0 = arith.constant 0 : index
    %c0_0 = arith.constant 0 : index
    %0 = vector.load %arg1[%c0, %c0_0] : memref<8x256xbf16, #tpu.memory_space<vmem>>, vector<8x256xbf16>
    %c0_1 = arith.constant 0 : index
    %c0_2 = arith.constant 0 : index
    %1 = vector.load %arg2[%c0_1, %c0_2] : memref<256x128xbf16, #tpu.memory_space<vmem>>, vector<256x128xbf16>
    %cst = arith.constant dense<0.000000e+00> : vector<8x128xf32>
    %2 = tpu.matmul %0, %1, %cst {dimension_numbers = #tpu.dot_dimension_numbers<[1], [0], [0], [1], [0, 0, 1, 1], [], []>} : vector<8x256xbf16>, vector<256x128xbf16>, vector<8x128xf32> -> vector<8x128xf32>
    %3 = arith.truncf %2 : vector<8x128xf32> to vector<8x128xbf16>
    %c0_3 = arith.constant 0 : index
    %c0_4 = arith.constant 0 : index
    %4 = vector.load %arg3[%c0_3, %c0_4] : memref<8x128xbf16, #tpu.memory_space<vmem>>, vector<8x128xbf16>
    tpu.vector_store %arg3[%c0_3, %c0_4], %3 {strides = array<i32>} : memref<8x128xbf16, #tpu.memory_space<vmem>>, vector<8x128xbf16>,
    %cst_5 = arith.constant dense<0.000000e+00> : vector<128xf32>
    %5 = vector.multi_reduction <add>, %2, %cst_5 [0] : vector<8x128xf32> to vector<128xf32>
    %6 = vector.shape_cast %5 : vector<128xf32> to vector<1x128xf32>
    %c0_6 = arith.constant 0 : index
    %c0_7 = arith.constant 0 : index
    %c0_8 = arith.constant 0 : index
    %7 = vector.load %arg4[%c0_6, %c0_7, %c0_8] : memref<1x8x128xf32, #tpu.memory_space<vmem>>, vector<1x1x128xf32>
    %8 = vector.shape_cast %7 : vector<1x1x128xf32> to vector<1x128xf32>
    %9 = vector.shape_cast %6 : vector<1x128xf32> to vector<1x1x128xf32>
    tpu.vector_store %arg4[%c0_6, %c0_7, %c0_8], %9 {strides = array<i32>} : memref<1x8x128xf32, #tpu.memory_space<vmem>>, vector<1x1x128xf32>,
    %10 = arith.mulf %2, %2 : vector<8x128xf32>
    %cst_9 = arith.constant dense<0.000000e+00> : vector<128xf32>
    %11 = vector.multi_reduction <add>, %10, %cst_9 [0] : vector<8x128xf32> to vector<128xf32>
    %12 = vector.shape_cast %11 : vector<128xf32> to vector<1x128xf32>
    %c0_10 = arith.constant 0 : index
    %c1 = arith.constant 1 : index
    %c0_11 = arith.constant 0 : index
    %13 = vector.load %arg4[%c0_10, %c1, %c0_11] : memref<1x8x128xf32, #tpu.memory_space<vmem>>, vector<1x1x128xf32>
    %14 = vector.shape_cast %13 : vector<1x1x128xf32> to vector<1x128xf32>
    %15 = vector.shape_cast %12 : vector<1x128xf32> to vector<1x1x128xf32>
    tpu.vector_store %arg4[%c0_10, %c1, %c0_11], %15 {strides = array<i32>} : memref<1x8x128xf32, #tpu.memory_space<vmem>>, vector<1x1x128xf32>,
    return
  }
  func.func @transform_0(%arg0: i32) -> (i32, i32) {
    %c0_i32 = arith.constant 0 : i32
    %c0_i32_0 = arith.constant 0 : i32
    return %arg0, %c0_i32 : i32, i32
  }
  func.func @transform_1(%arg0: i32) -> (i32, i32) {
    %c0_i32 = arith.constant 0 : i32
    %c0_i32_0 = arith.constant 0 : i32
    %c0_i32_1 = arith.constant 0 : i32
    return %c0_i32, %c0_i32_0 : i32, i32
  }
  func.func @transform_2(%arg0: i32) -> (i32, i32) {
    %c0_i32 = arith.constant 0 : i32
    %c0_i32_0 = arith.constant 0 : i32
    return %arg0, %c0_i32 : i32, i32
  }
  func.func @transform_3(%arg0: i32) -> (i32, i32, i32) {
    %c0_i32 = arith.constant 0 : i32
    %c0_i32_0 = arith.constant 0 : i32
    %c0_i32_1 = arith.constant 0 : i32
    return %arg0, %c0_i32, %c0_i32_0 : i32, i32, i32
  }
}

module attributes {stable_mosaic.version = 11 : i64} {
  func.func @_affine_kernel(%arg0: i32, %arg1: memref<8x128xbf16, #tpu.memory_space<vmem>>, %arg2: memref<1x128xf32, #tpu.memory_space<vmem>>, %arg3: memref<1x128xf32, #tpu.memory_space<vmem>>, %arg4: memref<8x128xbf16, #tpu.memory_space<vmem>>) attributes {dimension_semantics = [#tpu.dimension_semantics<parallel>], iteration_bounds = array<i64: 1>, scalar_prefetch = 0 : i64, scratch_operands = 0 : i64, tpu.core_type = #tpu.core_type<tc>, window_params = [{transform_indices = @transform_0, window_bounds = array<i64: 8, 128>}, {pipeline_mode = #tpu.pipeline_mode<synchronous>, transform_indices = @transform_1, window_bounds = array<i64: 1, 128>}, {pipeline_mode = #tpu.pipeline_mode<synchronous>, transform_indices = @transform_2, window_bounds = array<i64: 1, 128>}, {transform_indices = @transform_3, window_bounds = array<i64: 8, 128>}]} {
    %c0 = arith.constant 0 : index
    %c0_0 = arith.constant 0 : index
    %0 = vector.load %arg1[%c0, %c0_0] : memref<8x128xbf16, #tpu.memory_space<vmem>>, vector<8x128xbf16>
    %1 = arith.extf %0 : vector<8x128xbf16> to vector<8x128xf32>
    %c0_1 = arith.constant 0 : index
    %c0_2 = arith.constant 0 : index
    %2 = vector.load %arg2[%c0_1, %c0_2] : memref<1x128xf32, #tpu.memory_space<vmem>>, vector<1x128xf32>
    %3 = vector.broadcast %2 : vector<1x128xf32> to vector<8x128xf32>
    %4 = arith.mulf %1, %3 : vector<8x128xf32>
    %c0_3 = arith.constant 0 : index
    %c0_4 = arith.constant 0 : index
    %5 = vector.load %arg3[%c0_3, %c0_4] : memref<1x128xf32, #tpu.memory_space<vmem>>, vector<1x128xf32>
    %6 = vector.broadcast %5 : vector<1x128xf32> to vector<8x128xf32>
    %7 = arith.addf %4, %6 : vector<8x128xf32>
    %cst = arith.constant 0.000000e+00 : f32
    %8 = vector.broadcast %cst : f32 to vector<8x128xf32>
    %9 = arith.maximumf %7, %8 : vector<8x128xf32>
    %10 = arith.truncf %9 : vector<8x128xf32> to vector<8x128xbf16>
    %c0_5 = arith.constant 0 : index
    %c0_6 = arith.constant 0 : index
    %11 = vector.load %arg4[%c0_5, %c0_6] : memref<8x128xbf16, #tpu.memory_space<vmem>>, vector<8x128xbf16>
    tpu.vector_store %arg4[%c0_5, %c0_6], %10 {strides = array<i32>} : memref<8x128xbf16, #tpu.memory_space<vmem>>, vector<8x128xbf16>,
    return
  }
  func.func @transform_0(%arg0: i32) -> (i32, i32) {
    %c0_i32 = arith.constant 0 : i32
    %c0_i32_0 = arith.constant 0 : i32
    return %arg0, %c0_i32 : i32, i32
  }
  func.func @transform_1(%arg0: i32) -> (i32, i32) {
    %c0_i32 = arith.constant 0 : i32
    %c0_i32_0 = arith.constant 0 : i32
    %c0_i32_1 = arith.constant 0 : i32
    return %c0_i32, %c0_i32_0 : i32, i32
  }
  func.func @transform_2(%arg0: i32) -> (i32, i32) {
    %c0_i32 = arith.constant 0 : i32
    %c0_i32_0 = arith.constant 0 : i32
    %c0_i32_1 = arith.constant 0 : i32
    return %c0_i32, %c0_i32_0 : i32, i32
  }
  func.func @transform_3(%arg0: i32) -> (i32, i32) {
    %c0_i32 = arith.constant 0 : i32
    %c0_i32_0 = arith.constant 0 : i32
    return %arg0, %c0_i32 : i32, i32
  }
}

module attributes {stable_mosaic.version = 11 : i64} {
  func.func @_mm_stats_kernel(%arg0: i32, %arg1: memref<32x128xbf16, #tpu.memory_space<vmem>>, %arg2: memref<128x128xbf16, #tpu.memory_space<vmem>>, %arg3: memref<32x128xbf16, #tpu.memory_space<vmem>>, %arg4: memref<1x8x128xf32, #tpu.memory_space<vmem>>) attributes {dimension_semantics = [#tpu.dimension_semantics<parallel>], iteration_bounds = array<i64: 1>, scalar_prefetch = 0 : i64, scratch_operands = 0 : i64, tpu.core_type = #tpu.core_type<tc>, window_params = [{transform_indices = @transform_0, window_bounds = array<i64: 32, 128>}, {pipeline_mode = #tpu.pipeline_mode<synchronous>, transform_indices = @transform_1, window_bounds = array<i64: 128, 128>}, {transform_indices = @transform_2, window_bounds = array<i64: 32, 128>}, {transform_indices = @transform_3, window_bounds = array<i64: 1, 8, 128>}]} {
    %c0 = arith.constant 0 : index
    %c0_0 = arith.constant 0 : index
    %0 = vector.load %arg1[%c0, %c0_0] : memref<32x128xbf16, #tpu.memory_space<vmem>>, vector<32x128xbf16>
    %c0_1 = arith.constant 0 : index
    %c0_2 = arith.constant 0 : index
    %1 = vector.load %arg2[%c0_1, %c0_2] : memref<128x128xbf16, #tpu.memory_space<vmem>>, vector<128x128xbf16>
    %cst = arith.constant dense<0.000000e+00> : vector<32x128xf32>
    %2 = tpu.matmul %0, %1, %cst {dimension_numbers = #tpu.dot_dimension_numbers<[1], [0], [0], [1], [0, 0, 1, 1], [], []>} : vector<32x128xbf16>, vector<128x128xbf16>, vector<32x128xf32> -> vector<32x128xf32>
    %3 = arith.truncf %2 : vector<32x128xf32> to vector<32x128xbf16>
    %c0_3 = arith.constant 0 : index
    %c0_4 = arith.constant 0 : index
    %4 = vector.load %arg3[%c0_3, %c0_4] : memref<32x128xbf16, #tpu.memory_space<vmem>>, vector<32x128xbf16>
    tpu.vector_store %arg3[%c0_3, %c0_4], %3 {strides = array<i32>} : memref<32x128xbf16, #tpu.memory_space<vmem>>, vector<32x128xbf16>,
    %cst_5 = arith.constant dense<0.000000e+00> : vector<128xf32>
    %5 = vector.multi_reduction <add>, %2, %cst_5 [0] : vector<32x128xf32> to vector<128xf32>
    %6 = vector.shape_cast %5 : vector<128xf32> to vector<1x128xf32>
    %c0_6 = arith.constant 0 : index
    %c0_7 = arith.constant 0 : index
    %c0_8 = arith.constant 0 : index
    %7 = vector.load %arg4[%c0_6, %c0_7, %c0_8] : memref<1x8x128xf32, #tpu.memory_space<vmem>>, vector<1x1x128xf32>
    %8 = vector.shape_cast %7 : vector<1x1x128xf32> to vector<1x128xf32>
    %9 = vector.shape_cast %6 : vector<1x128xf32> to vector<1x1x128xf32>
    tpu.vector_store %arg4[%c0_6, %c0_7, %c0_8], %9 {strides = array<i32>} : memref<1x8x128xf32, #tpu.memory_space<vmem>>, vector<1x1x128xf32>,
    %10 = arith.mulf %2, %2 : vector<32x128xf32>
    %cst_9 = arith.constant dense<0.000000e+00> : vector<128xf32>
    %11 = vector.multi_reduction <add>, %10, %cst_9 [0] : vector<32x128xf32> to vector<128xf32>
    %12 = vector.shape_cast %11 : vector<128xf32> to vector<1x128xf32>
    %c0_10 = arith.constant 0 : index
    %c1 = arith.constant 1 : index
    %c0_11 = arith.constant 0 : index
    %13 = vector.load %arg4[%c0_10, %c1, %c0_11] : memref<1x8x128xf32, #tpu.memory_space<vmem>>, vector<1x1x128xf32>
    %14 = vector.shape_cast %13 : vector<1x1x128xf32> to vector<1x128xf32>
    %15 = vector.shape_cast %12 : vector<1x128xf32> to vector<1x1x128xf32>
    tpu.vector_store %arg4[%c0_10, %c1, %c0_11], %15 {strides = array<i32>} : memref<1x8x128xf32, #tpu.memory_space<vmem>>, vector<1x1x128xf32>,
    return
  }
  func.func @transform_0(%arg0: i32) -> (i32, i32) {
    %c0_i32 = arith.constant 0 : i32
    %c0_i32_0 = arith.constant 0 : i32
    return %arg0, %c0_i32 : i32, i32
  }
  func.func @transform_1(%arg0: i32) -> (i32, i32) {
    %c0_i32 = arith.constant 0 : i32
    %c0_i32_0 = arith.constant 0 : i32
    %c0_i32_1 = arith.constant 0 : i32
    return %c0_i32, %c0_i32_0 : i32, i32
  }
  func.func @transform_2(%arg0: i32) -> (i32, i32) {
    %c0_i32 = arith.constant 0 : i32
    %c0_i32_0 = arith.constant 0 : i32
    return %arg0, %c0_i32 : i32, i32
  }
  func.func @transform_3(%arg0: i32) -> (i32, i32, i32) {
    %c0_i32 = arith.constant 0 : i32
    %c0_i32_0 = arith.constant 0 : i32
    %c0_i32_1 = arith.constant 0 : i32
    return %arg0, %c0_i32, %c0_i32_0 : i32, i32, i32
  }
}

module attributes {stable_mosaic.version = 11 : i64} {
  func.func @_affine_kernel(%arg0: i32, %arg1: memref<32x128xbf16, #tpu.memory_space<vmem>>, %arg2: memref<1x128xf32, #tpu.memory_space<vmem>>, %arg3: memref<1x128xf32, #tpu.memory_space<vmem>>, %arg4: memref<32x128xbf16, #tpu.memory_space<vmem>>) attributes {dimension_semantics = [#tpu.dimension_semantics<parallel>], iteration_bounds = array<i64: 1>, scalar_prefetch = 0 : i64, scratch_operands = 0 : i64, tpu.core_type = #tpu.core_type<tc>, window_params = [{transform_indices = @transform_0, window_bounds = array<i64: 32, 128>}, {pipeline_mode = #tpu.pipeline_mode<synchronous>, transform_indices = @transform_1, window_bounds = array<i64: 1, 128>}, {pipeline_mode = #tpu.pipeline_mode<synchronous>, transform_indices = @transform_2, window_bounds = array<i64: 1, 128>}, {transform_indices = @transform_3, window_bounds = array<i64: 32, 128>}]} {
    %c0 = arith.constant 0 : index
    %c0_0 = arith.constant 0 : index
    %0 = vector.load %arg1[%c0, %c0_0] : memref<32x128xbf16, #tpu.memory_space<vmem>>, vector<32x128xbf16>
    %1 = arith.extf %0 : vector<32x128xbf16> to vector<32x128xf32>
    %c0_1 = arith.constant 0 : index
    %c0_2 = arith.constant 0 : index
    %2 = vector.load %arg2[%c0_1, %c0_2] : memref<1x128xf32, #tpu.memory_space<vmem>>, vector<1x128xf32>
    %3 = vector.broadcast %2 : vector<1x128xf32> to vector<32x128xf32>
    %4 = arith.mulf %1, %3 : vector<32x128xf32>
    %c0_3 = arith.constant 0 : index
    %c0_4 = arith.constant 0 : index
    %5 = vector.load %arg3[%c0_3, %c0_4] : memref<1x128xf32, #tpu.memory_space<vmem>>, vector<1x128xf32>
    %6 = vector.broadcast %5 : vector<1x128xf32> to vector<32x128xf32>
    %7 = arith.addf %4, %6 : vector<32x128xf32>
    %cst = arith.constant 0.000000e+00 : f32
    %8 = vector.broadcast %cst : f32 to vector<32x128xf32>
    %9 = arith.maximumf %7, %8 : vector<32x128xf32>
    %10 = arith.truncf %9 : vector<32x128xf32> to vector<32x128xbf16>
    %c0_5 = arith.constant 0 : index
    %c0_6 = arith.constant 0 : index
    %11 = vector.load %arg4[%c0_5, %c0_6] : memref<32x128xbf16, #tpu.memory_space<vmem>>, vector<32x128xbf16>
    tpu.vector_store %arg4[%c0_5, %c0_6], %10 {strides = array<i32>} : memref<32x128xbf16, #tpu.memory_space<vmem>>, vector<32x128xbf16>,
    return
  }
  func.func @transform_0(%arg0: i32) -> (i32, i32) {
    %c0_i32 = arith.constant 0 : i32
    %c0_i32_0 = arith.constant 0 : i32
    return %arg0, %c0_i32 : i32, i32
  }
  func.func @transform_1(%arg0: i32) -> (i32, i32) {
    %c0_i32 = arith.constant 0 : i32
    %c0_i32_0 = arith.constant 0 : i32
    %c0_i32_1 = arith.constant 0 : i32
    return %c0_i32, %c0_i32_0 : i32, i32
  }
  func.func @transform_2(%arg0: i32) -> (i32, i32) {
    %c0_i32 = arith.constant 0 : i32
    %c0_i32_0 = arith.constant 0 : i32
    %c0_i32_1 = arith.constant 0 : i32
    return %c0_i32, %c0_i32_0 : i32, i32
  }
  func.func @transform_3(%arg0: i32) -> (i32, i32) {
    %c0_i32 = arith.constant 0 : i32
    %c0_i32_0 = arith.constant 0 : i32
    return %arg0, %c0_i32 : i32, i32
  }
}

module attributes {stable_mosaic.version = 11 : i64} {
  func.func @_affine_kernel(%arg0: i32, %arg1: memref<128x128xbf16, #tpu.memory_space<vmem>>, %arg2: memref<1x128xf32, #tpu.memory_space<vmem>>, %arg3: memref<1x128xf32, #tpu.memory_space<vmem>>, %arg4: memref<128x128xbf16, #tpu.memory_space<vmem>>) attributes {dimension_semantics = [#tpu.dimension_semantics<parallel>], iteration_bounds = array<i64: 1>, scalar_prefetch = 0 : i64, scratch_operands = 0 : i64, tpu.core_type = #tpu.core_type<tc>, window_params = [{transform_indices = @transform_0, window_bounds = array<i64: 128, 128>}, {pipeline_mode = #tpu.pipeline_mode<synchronous>, transform_indices = @transform_1, window_bounds = array<i64: 1, 128>}, {pipeline_mode = #tpu.pipeline_mode<synchronous>, transform_indices = @transform_2, window_bounds = array<i64: 1, 128>}, {transform_indices = @transform_3, window_bounds = array<i64: 128, 128>}]} {
    %c0 = arith.constant 0 : index
    %c0_0 = arith.constant 0 : index
    %0 = vector.load %arg1[%c0, %c0_0] : memref<128x128xbf16, #tpu.memory_space<vmem>>, vector<128x128xbf16>
    %1 = arith.extf %0 : vector<128x128xbf16> to vector<128x128xf32>
    %c0_1 = arith.constant 0 : index
    %c0_2 = arith.constant 0 : index
    %2 = vector.load %arg2[%c0_1, %c0_2] : memref<1x128xf32, #tpu.memory_space<vmem>>, vector<1x128xf32>
    %3 = vector.broadcast %2 : vector<1x128xf32> to vector<128x128xf32>
    %4 = arith.mulf %1, %3 : vector<128x128xf32>
    %c0_3 = arith.constant 0 : index
    %c0_4 = arith.constant 0 : index
    %5 = vector.load %arg3[%c0_3, %c0_4] : memref<1x128xf32, #tpu.memory_space<vmem>>, vector<1x128xf32>
    %6 = vector.broadcast %5 : vector<1x128xf32> to vector<128x128xf32>
    %7 = arith.addf %4, %6 : vector<128x128xf32>
    %cst = arith.constant 0.000000e+00 : f32
    %8 = vector.broadcast %cst : f32 to vector<128x128xf32>
    %9 = arith.maximumf %7, %8 : vector<128x128xf32>
    %10 = arith.truncf %9 : vector<128x128xf32> to vector<128x128xbf16>
    %c0_5 = arith.constant 0 : index
    %c0_6 = arith.constant 0 : index
    %11 = vector.load %arg4[%c0_5, %c0_6] : memref<128x128xbf16, #tpu.memory_space<vmem>>, vector<128x128xbf16>
    tpu.vector_store %arg4[%c0_5, %c0_6], %10 {strides = array<i32>} : memref<128x128xbf16, #tpu.memory_space<vmem>>, vector<128x128xbf16>,
    return
  }
  func.func @transform_0(%arg0: i32) -> (i32, i32) {
    %c0_i32 = arith.constant 0 : i32
    %c0_i32_0 = arith.constant 0 : i32
    return %arg0, %c0_i32 : i32, i32
  }
  func.func @transform_1(%arg0: i32) -> (i32, i32) {
    %c0_i32 = arith.constant 0 : i32
    %c0_i32_0 = arith.constant 0 : i32
    %c0_i32_1 = arith.constant 0 : i32
    return %c0_i32, %c0_i32_0 : i32, i32
  }
  func.func @transform_2(%arg0: i32) -> (i32, i32) {
    %c0_i32 = arith.constant 0 : i32
    %c0_i32_0 = arith.constant 0 : i32
    %c0_i32_1 = arith.constant 0 : i32
    return %c0_i32, %c0_i32_0 : i32, i32
  }
  func.func @transform_3(%arg0: i32) -> (i32, i32) {
    %c0_i32 = arith.constant 0 : i32
    %c0_i32_0 = arith.constant 0 : i32
    return %arg0, %c0_i32 : i32, i32
  }
}

module attributes {stable_mosaic.version = 11 : i64} {
  func.func @_mm_bias_tanh_kernel(%arg0: i32, %arg1: memref<256x512xbf16, #tpu.memory_space<vmem>>, %arg2: memref<512x128xbf16, #tpu.memory_space<vmem>>, %arg3: memref<1x128xf32, #tpu.memory_space<vmem>>, %arg4: memref<256x128xf32, #tpu.memory_space<vmem>>) attributes {dimension_semantics = [#tpu.dimension_semantics<parallel>], iteration_bounds = array<i64: 2>, scalar_prefetch = 0 : i64, scratch_operands = 0 : i64, tpu.core_type = #tpu.core_type<tc>, window_params = [{transform_indices = @transform_0, window_bounds = array<i64: 256, 512>}, {pipeline_mode = #tpu.pipeline_mode<synchronous>, transform_indices = @transform_1, window_bounds = array<i64: 512, 128>}, {pipeline_mode = #tpu.pipeline_mode<synchronous>, transform_indices = @transform_2, window_bounds = array<i64: 1, 128>}, {transform_indices = @transform_3, window_bounds = array<i64: 256, 128>}]} {
    %c0 = arith.constant 0 : index
    %c0_0 = arith.constant 0 : index
    %0 = vector.load %arg1[%c0, %c0_0] : memref<256x512xbf16, #tpu.memory_space<vmem>>, vector<256x512xbf16>
    %c0_1 = arith.constant 0 : index
    %c0_2 = arith.constant 0 : index
    %1 = vector.load %arg2[%c0_1, %c0_2] : memref<512x128xbf16, #tpu.memory_space<vmem>>, vector<512x128xbf16>
    %cst = arith.constant dense<0.000000e+00> : vector<256x128xf32>
    %2 = tpu.matmul %0, %1, %cst {dimension_numbers = #tpu.dot_dimension_numbers<[1], [0], [0], [1], [0, 0, 1, 1], [], []>} : vector<256x512xbf16>, vector<512x128xbf16>, vector<256x128xf32> -> vector<256x128xf32>
    %c0_3 = arith.constant 0 : index
    %c0_4 = arith.constant 0 : index
    %3 = vector.load %arg3[%c0_3, %c0_4] : memref<1x128xf32, #tpu.memory_space<vmem>>, vector<1x128xf32>
    %4 = vector.broadcast %3 : vector<1x128xf32> to vector<256x128xf32>
    %5 = arith.addf %2, %4 : vector<256x128xf32>
    %6 = math.tanh %5 : vector<256x128xf32>
    %c0_5 = arith.constant 0 : index
    %c0_6 = arith.constant 0 : index
    %7 = vector.load %arg4[%c0_5, %c0_6] : memref<256x128xf32, #tpu.memory_space<vmem>>, vector<256x128xf32>
    tpu.vector_store %arg4[%c0_5, %c0_6], %6 {strides = array<i32>} : memref<256x128xf32, #tpu.memory_space<vmem>>, vector<256x128xf32>,
    return
  }
  func.func @transform_0(%arg0: i32) -> (i32, i32) {
    %c0_i32 = arith.constant 0 : i32
    %c0_i32_0 = arith.constant 0 : i32
    return %arg0, %c0_i32 : i32, i32
  }
  func.func @transform_1(%arg0: i32) -> (i32, i32) {
    %c0_i32 = arith.constant 0 : i32
    %c0_i32_0 = arith.constant 0 : i32
    %c0_i32_1 = arith.constant 0 : i32
    return %c0_i32, %c0_i32_0 : i32, i32
  }
  func.func @transform_2(%arg0: i32) -> (i32, i32) {
    %c0_i32 = arith.constant 0 : i32
    %c0_i32_0 = arith.constant 0 : i32
    %c0_i32_1 = arith.constant 0 : i32
    return %c0_i32, %c0_i32_0 : i32, i32
  }
  func.func @transform_3(%arg0: i32) -> (i32, i32) {
    %c0_i32 = arith.constant 0 : i32
    %c0_i32_0 = arith.constant 0 : i32
    return %arg0, %c0_i32 : i32, i32
  }
}

</mosaic_0001>

<bundles_post_ra>
// kernel: _lambda_.24
= control target key start
LH: loop header
LB: loop body
LE: loop exit
PB: predicated region body
PF: predicated region fallthrough
CT: control target
= control target key end

     0   :  { %s754_s15 = smov 0   ;;  %s975_s0 = inlined_call_operand.vmem [shape: bf16[512,128], index: 0, kind: input, shape index: {}]   ;;  %s976_s1 = inlined_call_operand.vmem [shape: f32[2,8,128], index: 1, kind: input, shape index: {}]   ;;  %s977_s2 = inlined_call_operand.vmem [shape: f32[1,128], index: 2, kind: input, shape index: {}]   ;;  %s978_s3 = inlined_call_operand.vmem [shape: f32[1,128], index: 3, kind: input, shape index: {}]   ;;  %s979_s4 = inlined_call_operand.vmem [shape: bf16[512,128], index: 4, kind: output, shape index: {}]  }
   0x1 LB: > { %s526_s16 = sadd.s32 4294967295, %s727_s15   ;;  %p530_p0 = scmp.ge.s32.totalorder %s727_s15, 1  ;;  %s727_s15 = sphi %s754_s15, %s14_s15  }
   0x2   : > { %p163_p1 = scmp.lt.s32.totalorder %s727_s15, 3 }
   0x4   : > { %p164_p2 = pnand %p530_p0, %p163_p1 }
   0x5   : > { %s531_s21 = sshll.u32 (!%p164_p2), %s526_s16, 5 }
   0x6   : > { %167 = sbr.rel (%p164_p2) target bundleno = 91 (0x5b), region = 36  ;;  %p190_p3 = scmp.lt.s32.totalorder (!%p164_p2), %s531_s21, 63 }
   0xb   : > { %v201_v0 = vld [vmem:[%s976_s1] sm:$0xff]  ;;  %v202_v1 = vld [vmem:[%s976_s1 + $0x8] sm:$0xff]  ;;  %vm203_vm0 = vcmask 1040384   ;;  %vm207_vm1 = vcmask 1041409   ;;  %s981_s21 = smov (!%p190_p3, %s531_s21), 63 }
   0xc   : > { %v204_v2 = vsel %vm203_vm0, %v201_v0, 0.0  ;;  %v205_v3 = vsel %vm203_vm0, %v202_v1, 0.0  ;;  %v208_v4 = vsel %vm207_vm1, %v201_v0, 0.0  ;;  %v209_v5 = vsel %vm207_vm1, %v202_v1, 0.0  ;;  %s532_s22 = sshll.u32 %s981_s21, 2 }
   0xd   : > { %v206_v6 = vadd.f32 %v205_v3, %v204_v2  ;;  %v210_v7 = vadd.f32 %v209_v5, %v208_v4  ;;  %s780_s25 = scalar_lea.vmem %s975_s0, %s532_s22  ;;  %v219_v39 = vld [vmem:[%s977_s2] sm:$0x1]  ;;  %s876_s6 = scalar_lea.vmem %s979_s4, %s532_s22 }
   0xe   : > { %v538_v22 = vld [vmem:[%s780_s25] sm:$0xff]   ;;  %v681_v23 = vld [vmem:[%s780_s25 + $0x8] sm:$0xff]   ;;  %v682_v24 = vld [vmem:[%s780_s25 + $0x10] sm:$0xff]  }
   0xf   : > { %v768_v8 = vmul.f32 0.001953125, %v206_v6  ;;  %v212_v9 = vmul.f32 0.001953125, %v210_v7  ;;  %v683_v25 = vld [vmem:[%s780_s25 + $0x18] sm:$0xff]   ;;  %v684_v26 = vld [vmem:[%s780_s25 + $0x20] sm:$0xff]   ;;  %v788_v27 = vld [vmem:[%s780_s25 + $0x28] sm:$0xff]   ;;  %v539_v28 = vunpack.c.l.bf16 %v538_v22  ;;  %v540_v29 = vunpack.c.h.bf16 %v538_v22 }
  0x10   : > { %v543_v30 = vunpack.c.l.bf16 %v681_v23  ;;  %v686_v31 = vld [vmem:[%s780_s25 + $0x30] sm:$0xff]   ;;  %v792_v32 = vld [vmem:[%s780_s25 + $0x38] sm:$0xff]   ;;  %v544_v33 = vunpack.c.h.bf16 %v681_v23  ;;  %v547_v34 = vunpack.c.l.bf16 %v682_v24  ;;  %v548_v35 = vunpack.c.h.bf16 %v682_v24  ;;  %v795_v37 = vld [vmem:[%s780_s25 + $0x40] sm:$0xff]  }
  0x11   : > { %v213_v10 = vmul.f32 %v768_v8, %v768_v8  ;;  %v551_v36 = vunpack.c.l.bf16 %v683_v25  ;;  %v798_v38 = vld [vmem:[%s780_s25 + $0x48] sm:$0xff]   ;;  %v552_v40 = vunpack.c.h.bf16 %v683_v25  ;;  %v555_v41 = vunpack.c.l.bf16 %v684_v26  ;;  %v805_v44 = vld [vmem:[%s780_s25 + $0x50] sm:$0xff]   ;;  %v810_v49 = vld [vmem:[%s780_s25 + $0x58] sm:$0xff]  }
  0x12   : > { %v556_v42 = vunpack.c.h.bf16 %v684_v26  ;;  %v559_v43 = vunpack.c.l.bf16 %v788_v27  ;;  %v560_v45 = vunpack.c.h.bf16 %v788_v27  ;;  %v563_v46 = vunpack.c.l.bf16 %v686_v31  ;;  %v813_v50 = vld [vmem:[%s780_s25 + $0x60] sm:$0xff]   ;;  %v820_v56 = vld [vmem:[%s780_s25 + $0x68] sm:$0xff]   ;;  %v826_v61 = vld [vmem:[%s780_s25 + $0x70] sm:$0xff]  }
  0x13   : > { %v215_v11 = vrot.slane %v213_v10, 7  ;;  %v564_v47 = vunpack.c.h.bf16 %v686_v31  ;;  %v567_v48 = vunpack.c.l.bf16 %v792_v32  ;;  %v568_v52 = vunpack.c.h.bf16 %v792_v32  ;;  %v829_v62 = vld [vmem:[%s780_s25 + $0x78] sm:$0xff]   ;;  %v237_v63 = vld [vmem:[%s978_s3] sm:$0x1] }
  0x14   : > { %v571_v53 = vunpack.c.l.bf16 %v795_v37  ;;  %v572_v54 = vunpack.c.h.bf16 %v795_v37  ;;  %v575_v55 = vunpack.c.l.bf16 %v798_v38  ;;  %v576_v58 = vunpack.c.h.bf16 %v798_v38 }
  0x15   : > { %v217_v12 = vsub.f32 %v212_v9, %v215_v11  ;;  %v579_v59 = vunpack.c.l.bf16 %v805_v44  ;;  %v580_v60 = vunpack.c.h.bf16 %v805_v44  ;;  %v583_v0 = vunpack.c.l.bf16 %v810_v49 }
  0x16   : > { %v584_v1 = vunpack.c.h.bf16 %v810_v49  ;;  %v587_v2 = vunpack.c.l.bf16 %v813_v50  ;;  %v588_v3 = vunpack.c.h.bf16 %v813_v50  ;;  %v591_v6 = vunpack.c.l.bf16 %v820_v56 }
  0x17   : > { %v218_v13 = vmax.f32 %v217_v12, 0.0  ;;  %v592_v7 = vunpack.c.h.bf16 %v820_v56  ;;  %v595_v9 = vunpack.c.l.bf16 %v826_v61  ;;  %v596_v10 = vunpack.c.h.bf16 %v826_v61 }
  0x18   : > { %v599_v11 = vunpack.c.l.bf16 %v829_v62  ;;  %v600_v12 = vunpack.c.h.bf16 %v829_v62 }
  0x19   : > { %v220_v14 = vadd.f32 1e-05, %v218_v13 }
  0x1b   : > { %719 = vrsqrt.f32 %v220_v14  ;;  %vm227_vm2 = vweird.f32 %v220_v14 }
  0x21   : > { %v720_v15 = vpop.eup %719 }
  0x22   : > { %v222_v16 = vmul.f32 %v720_v15, %v220_v14  ;;  %vm228_vm3 = vweird.f32 %v720_v15 }
  0x23   : > { %vm229_vm4 = vmor %vm227_vm2, %vm228_vm3 }
  0x24   : > { %v223_v17 = vmul.f32 %v720_v15, %v222_v16 }
  0x26   : > { %v224_v18 = vmul.f32 0.5, %v223_v17 }
  0x28   : > { %v225_v19 = vsub.f32 1.5, %v224_v18 }
  0x2a   : > { %v226_v20 = vmul.f32 %v720_v15, %v225_v19 }
  0x2c   : > { %v230_v21 = vsel %vm229_vm4, %v720_v15, %v226_v20 }
  0x2d   : > { %232 = vst [vmem:[#allocation1] sm:$0xff] %v230_v21 }
  0x34   : > { %v234_v51 = vld [vmem:[#allocation1 + $0x1] ss:$9 sm:$0xff] }
  0x35   : > { %v236_v57 = vmul.f32 %v234_v51, %v219_v39 }
  0x37   : > { %v238_v4 = vmul.f32 %v236_v57, %v768_v8  ;;  %v839_v5 = vperm.slane %v236_v57, 0 }
  0x39   : > { %v239_v13 = vsub.f32 %v237_v63, %v238_v4  ;;  %v307_v14 = vmul.f32 %v539_v28, %v839_v5  ;;  %v308_v15 = vmul.f32 %v540_v29, %v839_v5  ;;  %v309_v8 = vmul.f32 %v543_v30, %v839_v5 }
  0x3a   : > { %v310_v16 = vmul.f32 %v544_v33, %v839_v5  ;;  %v311_v17 = vmul.f32 %v547_v34, %v839_v5  ;;  %v312_v18 = vmul.f32 %v548_v35, %v839_v5  ;;  %v313_v19 = vmul.f32 %v551_v36, %v839_v5 }
  0x3b   : > { %v854_v20 = vperm.slane %v239_v13, 0  ;;  %v314_v21 = vmul.f32 %v552_v40, %v839_v5  ;;  %v315_v22 = vmul.f32 %v555_v41, %v839_v5  ;;  %v316_v23 = vmul.f32 %v556_v42, %v839_v5 }
  0x3c   : > { %v317_v24 = vmul.f32 %v559_v43, %v839_v5  ;;  %v318_v25 = vmul.f32 %v560_v45, %v839_v5  ;;  %v319_v26 = vmul.f32 %v563_v46, %v839_v5  ;;  %v320_v27 = vmul.f32 %v564_v47, %v839_v5 }
  0x3d   : > { %v342_v28 = vadd.f32 %v854_v20, %v307_v14  ;;  %v343_v29 = vadd.f32 %v854_v20, %v308_v15  ;;  %v344_v30 = vadd.f32 %v854_v20, %v309_v8  ;;  %v345_v31 = vadd.f32 %v854_v20, %v310_v16 }
  0x3e   : > { %v346_v33 = vadd.f32 %v854_v20, %v311_v17  ;;  %v347_v34 = vadd.f32 %v854_v20, %v312_v18  ;;  %v348_v35 = vadd.f32 %v854_v20, %v313_v19  ;;  %v349_v36 = vadd.f32 %v854_v20, %v314_v21 }
  0x3f   : > { %v374_v39 = vmax.f32 %v342_v28, 0.0  ;;  %v375_v40 = vmax.f32 %v343_v29, 0.0  ;;  %v376_v41 = vmax.f32 %v344_v30, 0.0  ;;  %v377_v42 = vmax.f32 %v345_v31, 0.0 }
  0x40   : > { %v378_v43 = vmax.f32 %v346_v33, 0.0  ;;  %v379_v45 = vmax.f32 %v347_v34, 0.0  ;;  %v380_v46 = vmax.f32 %v348_v35, 0.0  ;;  %v381_v47 = vmax.f32 %v349_v36, 0.0 }
  0x41   : > { %v604_v51 = vpack.c.bf16 %v375_v40, %v374_v39  ;;  %v609_v57 = vpack.c.bf16 %v377_v42, %v376_v41  ;;  %v350_v63 = vadd.f32 %v854_v20, %v315_v22  ;;  %v351_v4 = vadd.f32 %v854_v20, %v316_v23 }
  0x42   : > { %v614_v13 = vpack.c.bf16 %v379_v45, %v378_v43  ;;  %v619_v14 = vpack.c.bf16 %v381_v47, %v380_v46  ;;  %v352_v15 = vadd.f32 %v854_v20, %v317_v24  ;;  %v353_v8 = vadd.f32 %v854_v20, %v318_v25 }
  0x43   : > { %605 = vst [vmem:[%s876_s6] sm:$0xff] %v604_v51   ;;  %v382_v16 = vmax.f32 %v350_v63, 0.0  ;;  %v383_v17 = vmax.f32 %v351_v4, 0.0  ;;  %v354_v18 = vadd.f32 %v854_v20, %v319_v26  ;;  %v355_v19 = vadd.f32 %v854_v20, %v320_v27 }
  0x44   : > { %696 = vst [vmem:[%s876_s6 + $0x8] sm:$0xff] %v609_v57   ;;  %v384_v21 = vmax.f32 %v352_v15, 0.0  ;;  %v385_v22 = vmax.f32 %v353_v8, 0.0  ;;  %v321_v23 = vmul.f32 %v567_v48, %v839_v5  ;;  %v322_v24 = vmul.f32 %v568_v52, %v839_v5 }
  0x45   : > { %697 = vst [vmem:[%s876_s6 + $0x10] sm:$0xff] %v614_v13   ;;  %v624_v25 = vpack.c.bf16 %v383_v17, %v382_v16  ;;  %v386_v28 = vmax.f32 %v354_v18, 0.0  ;;  %v387_v29 = vmax.f32 %v355_v19, 0.0  ;;  %v323_v26 = vmul.f32 %v571_v53, %v839_v5 }
  0x46   : > { %698 = vst [vmem:[%s876_s6 + $0x18] sm:$0xff] %v619_v14   ;;  %v629_v27 = vpack.c.bf16 %v385_v22, %v384_v21  ;;  %v356_v30 = vadd.f32 %v854_v20, %v321_v23  ;;  %v357_v48 = vadd.f32 %v854_v20, %v322_v24  ;;  %v324_v32 = vmul.f32 %v572_v54, %v839_v5 }
  0x47   : > { %699 = vst [vmem:[%s876_s6 + $0x20] sm:$0xff] %v624_v25   ;;  %v634_v52 = vpack.c.bf16 %v387_v29, %v386_v28  ;;  %v358_v31 = vadd.f32 %v854_v20, %v323_v26  ;;  %v325_v33 = vmul.f32 %v575_v55, %v839_v5  ;;  %v326_v53 = vmul.f32 %v576_v58, %v839_v5 }
  0x48   : > { %700 = vst [vmem:[%s876_s6 + $0x28] sm:$0xff] %v629_v27   ;;  %v388_v34 = vmax.f32 %v356_v30, 0.0  ;;  %v389_v35 = vmax.f32 %v357_v48, 0.0  ;;  %v359_v36 = vadd.f32 %v854_v20, %v324_v32  ;;  %v327_v37 = vmul.f32 %v579_v59, %v839_v5 }
  0x49   : > { %701 = vst [vmem:[%s876_s6 + $0x30] sm:$0xff] %v634_v52   ;;  %v390_v54 = vmax.f32 %v358_v31, 0.0  ;;  %v360_v39 = vadd.f32 %v854_v20, %v325_v33  ;;  %v361_v55 = vadd.f32 %v854_v20, %v326_v53  ;;  %v328_v38 = vmul.f32 %v580_v60, %v839_v5 }
  0x4a   : > { %v639_v58 = vpack.c.bf16 %v389_v35, %v388_v34  ;;  %v391_v40 = vmax.f32 %v359_v36, 0.0  ;;  %v362_v41 = vadd.f32 %v854_v20, %v327_v37  ;;  %v329_v42 = vmul.f32 %v583_v0, %v839_v5 }
  0x4b   : > { %v392_v59 = vmax.f32 %v360_v39, 0.0  ;;  %v393_v43 = vmax.f32 %v361_v55, 0.0  ;;  %v363_v45 = vadd.f32 %v854_v20, %v328_v38  ;;  %v330_v46 = vmul.f32 %v584_v1, %v839_v5 }
  0x4c   : > { %702 = vst [vmem:[%s876_s6 + $0x38] sm:$0xff] %v639_v58   ;;  %v644_v44 = vpack.c.bf16 %v391_v40, %v390_v54  ;;  %v394_v60 = vmax.f32 %v362_v41, 0.0  ;;  %v364_v47 = vadd.f32 %v854_v20, %v329_v42  ;;  %v331_v51 = vmul.f32 %v587_v2, %v839_v5 }
  0x4d   : > { %v649_v57 = vpack.c.bf16 %v393_v43, %v392_v59  ;;  %v395_v0 = vmax.f32 %v363_v45, 0.0  ;;  %v365_v63 = vadd.f32 %v854_v20, %v330_v46  ;;  %v332_v49 = vmul.f32 %v588_v3, %v839_v5 }
  0x4e   : > { %703 = vst [vmem:[%s876_s6 + $0x40] sm:$0xff] %v644_v44   ;;  %v396_v1 = vmax.f32 %v364_v47, 0.0  ;;  %v366_v4 = vadd.f32 %v854_v20, %v331_v51  ;;  %v333_v13 = vmul.f32 %v591_v6, %v839_v5  ;;  %v334_v2 = vmul.f32 %v592_v7, %v839_v5 }
  0x4f   : > { %704 = vst [vmem:[%s876_s6 + $0x48] sm:$0xff] %v649_v57   ;;  %v654_v14 = vpack.c.bf16 %v395_v0, %v394_v60  ;;  %v397_v15 = vmax.f32 %v365_v63, 0.0  ;;  %v367_v50 = vadd.f32 %v854_v20, %v332_v49  ;;  %v335_v3 = vmul.f32 %v595_v9, %v839_v5 }
  0x50   : > { %v398_v8 = vmax.f32 %v366_v4, 0.0  ;;  %v368_v16 = vadd.f32 %v854_v20, %v333_v13  ;;  %v369_v17 = vadd.f32 %v854_v20, %v334_v2  ;;  %v336_v56 = vmul.f32 %v596_v10, %v839_v5 }
  0x51   : > { %705 = vst [vmem:[%s876_s6 + $0x50] sm:$0xff] %v654_v14   ;;  %v659_v6 = vpack.c.bf16 %v397_v15, %v396_v1  ;;  %v399_v7 = vmax.f32 %v367_v50, 0.0  ;;  %v370_v18 = vadd.f32 %v854_v20, %v335_v3  ;;  %v337_v9 = vmul.f32 %v599_v11, %v839_v5 }
  0x52   : > { %v400_v19 = vmax.f32 %v368_v16, 0.0  ;;  %v401_v21 = vmax.f32 %v369_v17, 0.0  ;;  %v371_v22 = vadd.f32 %v854_v20, %v336_v56  ;;  %v338_v61 = vmul.f32 %v600_v12, %v839_v5 }
  0x53   : > { %706 = vst [vmem:[%s876_s6 + $0x58] sm:$0xff] %v659_v6   ;;  %v664_v10 = vpack.c.bf16 %v399_v7, %v398_v8  ;;  %v402_v23 = vmax.f32 %v370_v18, 0.0  ;;  %v372_v24 = vadd.f32 %v854_v20, %v337_v9 }
  0x54   : > { %v669_v25 = vpack.c.bf16 %v401_v21, %v400_v19  ;;  %v403_v28 = vmax.f32 %v371_v22, 0.0  ;;  %v373_v29 = vadd.f32 %v854_v20, %v338_v61 }
  0x55   : > { %707 = vst [vmem:[%s876_s6 + $0x60] sm:$0xff] %v664_v10   ;;  %v404_v11 = vmax.f32 %v372_v24, 0.0 }
  0x56   : > { %708 = vst [vmem:[%s876_s6 + $0x68] sm:$0xff] %v669_v25   ;;  %v674_v26 = vpack.c.bf16 %v403_v28, %v402_v23  ;;  %v405_v27 = vmax.f32 %v373_v29, 0.0 }
  0x58   : > { %709 = vst [vmem:[%s876_s6 + $0x70] sm:$0xff] %v674_v26   ;;  %v679_v30 = vpack.c.bf16 %v405_v27, %v404_v11 }
  0x5a   : > { %710 = vst [vmem:[%s876_s6 + $0x78] sm:$0xff] %v679_v30  }
  0x5b PF: > { %s14_s15 = sadd.s32 1, %s727_s15  }
  0x5c   : > { %p11_p4 = scmp.ge.s32.totalorder %s14_s15, 4  }
  0x5e   :  { %13 = sbr.rel (!%p11_p4) target bundleno = 1 (0x1), region = 67 }

// kernel: _lambda_.23
= control target key start
LH: loop header
LB: loop body
LE: loop exit
PB: predicated region body
PF: predicated region fallthrough
CT: control target
= control target key end

     0   :  { %s1346_s12 = smov 0   ;;  %s1603_s0 = inlined_call_operand.vmem [shape: bf16[512,256], index: 0, kind: input, shape index: {}]   ;;  %s1604_s1 = inlined_call_operand.vmem [shape: bf16[256,128], index: 1, kind: input, shape index: {}]   ;;  %s1605_s2 = inlined_call_operand.vmem [shape: bf16[512,128], index: 2, kind: output, shape index: {0}]   ;;  %s1606_s3 = inlined_call_operand.vmem [shape: f32[2,8,128], index: 3, kind: output, shape index: {1}]  }
   0x1 LB: > { %s1352_s13 = sadd.s32 4294967295, %s1324_s12   ;;  %p949_p0 = scmp.ge.s32.totalorder %s1324_s12, 1  ;;  %s1324_s12 = sphi %s1346_s12, %s14_s12  }
   0x2   : > { %p142_p1 = scmp.lt.s32.totalorder %s1324_s12, 3 }
   0x4   : > { %p143_p2 = pnand %p949_p0, %p142_p1 }
   0x5   : > { %s950_s26 = sshll.u32 (!%p143_p2), %s1352_s13, 5  ;;  %p184_p4 = scmp.lt.s32.totalorder (!%p143_p2), %s1352_s13, 1 }
   0x6   : > { %146 = sbr.rel (%p143_p2) target bundleno = 341 (0x155), region = 28  ;;  %p172_p3 = scmp.lt.s32.totalorder (!%p143_p2), %s950_s26, 63 }
   0xb   : > { %v1190_v0 = vld [vmem:[%s1604_s1 + $0x38] sm:$0xff]  ;;  %v1189_v2 = vld [vmem:[%s1604_s1 + $0x30] sm:$0xff]  ;;  %v1188_v4 = vld [vmem:[%s1604_s1 + $0x28] sm:$0xff]  ;;  %s1608_s26 = smov (!%p172_p3, %s950_s26), 63  ;;  %s1610_s13 = smov (!%p184_p4, %s1352_s13), 1 }
   0xc   : > { %v1198_v1 = vld [vmem:[%s1604_s1 + $0x78] sm:$0xff]  ;;  %508 = vmatpush.bf16.msra.mxu0 %v1190_v0  ;;  %v1197_v3 = vld [vmem:[%s1604_s1 + $0x70] sm:$0xff]  ;;  %1294 = vmatpush.bf16.msra.mxu2 %v1190_v0  ;;  %v1196_v5 = vld [vmem:[%s1604_s1 + $0x68] sm:$0xff]  ;;  %s1150_s14 = sshll.u32 %s1608_s26, 3  ;;  %s954_s27 = sshll.u32 %s1608_s26, 2 }
   0xd   : > { %597 = vmatpush.bf16.msra.mxu1 %v1198_v1  ;;  %1302 = vmatpush.bf16.msra.mxu3 %v1198_v1  ;;  %v1187_v6 = vld [vmem:[%s1604_s1 + $0x20] sm:$0xff]  ;;  %v1186_v8 = vld [vmem:[%s1604_s1 + $0x18] sm:$0xff]  ;;  %v1185_v10 = vld [vmem:[%s1604_s1 + $0x10] sm:$0xff]  ;;  %s1405_s21 = scalar_lea.vmem %s1603_s0, %s1150_s14  ;;  %s1481_s30 = scalar_lea.vmem %s1605_s2, %s954_s27 }
   0xe   : > { %v1195_v7 = vld [vmem:[%s1604_s1 + $0x60] sm:$0xff]  ;;  %v1194_v9 = vld [vmem:[%s1604_s1 + $0x58] sm:$0xff]  ;;  %v1193_v11 = vld [vmem:[%s1604_s1 + $0x50] sm:$0xff]  ;;  %s955_s26 = sshll.u32 %s1610_s13, 3 }
   0xf   : > { %v1184_v12 = vld [vmem:[%s1604_s1 + $0x8] sm:$0xff]  ;;  %v1183_v14 = vld [vmem:[%s1604_s1] sm:$0xff]  ;;  %v966_v28 = vld [vmem:[%s1405_s21 + $0x10] sm:$0xf]  ;;  %s187_s6 = scalar_lea.vmem %s1606_s3, %s955_s26 }
  0x10   : > { %509 = vmatpush.bf16.msra.mxu0 %v1189_v2  ;;  %1295 = vmatpush.bf16.msra.mxu2 %v1189_v2  ;;  %v1192_v13 = vld [vmem:[%s1604_s1 + $0x48] sm:$0xff]  ;;  %v1191_v15 = vld [vmem:[%s1604_s1 + $0x40] sm:$0xff]  ;;  %v1154_v29 = vld [vmem:[%s1405_s21 + $0x14] sm:$0xf0] }
  0x11   : > { %598 = vmatpush.bf16.msra.mxu1 %v1197_v3  ;;  %1303 = vmatpush.bf16.msra.mxu3 %v1197_v3  ;;  %v958_v16 = vld [vmem:[%s1405_s21] sm:$0xf]  ;;  %v1152_v17 = vld [vmem:[%s1405_s21 + $0x4] sm:$0xf0]  ;;  %v1151_v18 = vld [vmem:[%s1405_s21 + $0x4] sm:$0xf]  ;;  %v967_v36 = vor.u32 %v1154_v29, %v966_v28 }
  0x12   : > { %v960_v19 = vld [vmem:[%s1405_s21 + $0x8] sm:$0xf0]  ;;  %v1022_v20 = vld [vmem:[%s1405_s21 + $0x80] sm:$0xf]  ;;  %v1168_v21 = vld [vmem:[%s1405_s21 + $0x84] sm:$0xf0]  ;;  %v959_v24 = vor.u32 %v1152_v17, %v958_v16 }
  0x13   : > { %v1167_v22 = vld [vmem:[%s1405_s21 + $0x84] sm:$0xf]  ;;  %v1024_v23 = vld [vmem:[%s1405_s21 + $0x88] sm:$0xf0]  ;;  %v963_v25 = vor.u32 %v1151_v18, %v960_v19  ;;  %v1023_v26 = vor.u32 %v1168_v21, %v1022_v20  ;;  %v1153_v30 = vld [vmem:[%s1405_s21 + $0x14] sm:$0xf] }
  0x14   : > { %510 = vmatpush.bf16.msra.mxu0 %v1188_v4  ;;  %1296 = vmatpush.bf16.msra.mxu2 %v1188_v4  ;;  %v1027_v27 = vor.u32 %v1167_v22, %v1024_v23  ;;  %v968_v31 = vld [vmem:[%s1405_s21 + $0x18] sm:$0xf0]  ;;  %v1030_v32 = vld [vmem:[%s1405_s21 + $0x90] sm:$0xf]  ;;  %v1170_v33 = vld [vmem:[%s1405_s21 + $0x94] sm:$0xf0] }
  0x15   : > { %599 = vmatpush.bf16.msra.mxu1 %v1196_v5  ;;  %1304 = vmatpush.bf16.msra.mxu3 %v1196_v5  ;;  %v1169_v34 = vld [vmem:[%s1405_s21 + $0x94] sm:$0xf]  ;;  %v1032_v35 = vld [vmem:[%s1405_s21 + $0x98] sm:$0xf0]  ;;  %v971_v37 = vor.u32 %v1153_v30, %v968_v31  ;;  %v1031_v38 = vor.u32 %v1170_v33, %v1030_v32  ;;  %v974_v40 = vld [vmem:[%s1405_s21 + $0x20] sm:$0xf] }
  0x16   : > { %v1035_v39 = vor.u32 %v1169_v34, %v1032_v35  ;;  %v1156_v41 = vld [vmem:[%s1405_s21 + $0x24] sm:$0xf0]  ;;  %v1155_v42 = vld [vmem:[%s1405_s21 + $0x24] sm:$0xf]  ;;  %v976_v43 = vld [vmem:[%s1405_s21 + $0x28] sm:$0xf0] }
  0x17   : > { %v1038_v44 = vld [vmem:[%s1405_s21 + $0xa0] sm:$0xf]  ;;  %v1172_v45 = vld [vmem:[%s1405_s21 + $0xa4] sm:$0xf0]  ;;  %v1171_v46 = vld [vmem:[%s1405_s21 + $0xa4] sm:$0xf]  ;;  %v975_v48 = vor.u32 %v1156_v41, %v974_v40  ;;  %v979_v49 = vor.u32 %v1155_v42, %v976_v43 }
  0x18   : > { %511 = vmatpush.bf16.msra.mxu0 %v1187_v6  ;;  %1297 = vmatpush.bf16.msra.mxu2 %v1187_v6  ;;  %v1040_v47 = vld [vmem:[%s1405_s21 + $0xa8] sm:$0xf0]  ;;  %v1039_v50 = vor.u32 %v1172_v45, %v1038_v44  ;;  %v982_v52 = vld [vmem:[%s1405_s21 + $0x30] sm:$0xf]  ;;  %v1158_v53 = vld [vmem:[%s1405_s21 + $0x34] sm:$0xf0] }
  0x19   : > { %600 = vmatpush.bf16.msra.mxu1 %v1195_v7  ;;  %1305 = vmatpush.bf16.msra.mxu3 %v1195_v7  ;;  %v1043_v51 = vor.u32 %v1171_v46, %v1040_v47  ;;  %v1157_v54 = vld [vmem:[%s1405_s21 + $0x34] sm:$0xf]  ;;  %v984_v55 = vld [vmem:[%s1405_s21 + $0x38] sm:$0xf0]  ;;  %v1046_v56 = vld [vmem:[%s1405_s21 + $0xb0] sm:$0xf]  ;;  %v983_v60 = vor.u32 %v1158_v53, %v982_v52 }
  0x1a   : > { %v1174_v57 = vld [vmem:[%s1405_s21 + $0xb4] sm:$0xf0]  ;;  %v1173_v58 = vld [vmem:[%s1405_s21 + $0xb4] sm:$0xf]  ;;  %v1048_v59 = vld [vmem:[%s1405_s21 + $0xb8] sm:$0xf0]  ;;  %v987_v61 = vor.u32 %v1157_v54, %v984_v55 }
  0x1b   : > { %v1047_v62 = vor.u32 %v1174_v57, %v1046_v56  ;;  %v1051_v63 = vor.u32 %v1173_v58, %v1048_v59  ;;  %v990_v0 = vld [vmem:[%s1405_s21 + $0x40] sm:$0xf]  ;;  %v1160_v1 = vld [vmem:[%s1405_s21 + $0x44] sm:$0xf0]  ;;  %v1159_v2 = vld [vmem:[%s1405_s21 + $0x44] sm:$0xf] }
  0x1c   : > { %512 = vmatpush.bf16.msra.mxu0 %v1186_v8  ;;  %1298 = vmatpush.bf16.msra.mxu2 %v1186_v8  ;;  %v992_v3 = vld [vmem:[%s1405_s21 + $0x48] sm:$0xf0]  ;;  %v1054_v4 = vld [vmem:[%s1405_s21 + $0xc0] sm:$0xf]  ;;  %v1176_v5 = vld [vmem:[%s1405_s21 + $0xc4] sm:$0xf0]  ;;  %v991_v8 = vor.u32 %v1160_v1, %v990_v0 }
  0x1d   : > { %601 = vmatpush.bf16.msra.mxu1 %v1194_v9  ;;  %1306 = vmatpush.bf16.msra.mxu3 %v1194_v9  ;;  %v1175_v6 = vld [vmem:[%s1405_s21 + $0xc4] sm:$0xf]  ;;  %v1056_v7 = vld [vmem:[%s1405_s21 + $0xc8] sm:$0xf0]  ;;  %v995_v9 = vor.u32 %v1159_v2, %v992_v3  ;;  %v1062_v16 = vld [vmem:[%s1405_s21 + $0xd0] sm:$0xf] }
  0x1e   : > { %v1178_v17 = vld [vmem:[%s1405_s21 + $0xd4] sm:$0xf0]  ;;  %v1177_v18 = vld [vmem:[%s1405_s21 + $0xd4] sm:$0xf]  ;;  %v1064_v19 = vld [vmem:[%s1405_s21 + $0xd8] sm:$0xf0] }
  0x1f   : > { %v1063_v22 = vor.u32 %v1178_v17, %v1062_v16  ;;  %v1067_v23 = vor.u32 %v1177_v18, %v1064_v19  ;;  %v1070_v28 = vld [vmem:[%s1405_s21 + $0xe0] sm:$0xf]  ;;  %v1180_v29 = vld [vmem:[%s1405_s21 + $0xe4] sm:$0xf0]  ;;  %v1179_v30 = vld [vmem:[%s1405_s21 + $0xe4] sm:$0xf] }
  0x20   : > { %513 = vmatpush.bf16.msra.mxu0 %v1185_v10  ;;  %1299 = vmatpush.bf16.msra.mxu2 %v1185_v10  ;;  %v1055_v10 = vor.u32 %v1176_v5, %v1054_v4  ;;  %v1072_v31 = vld [vmem:[%s1405_s21 + $0xe8] sm:$0xf0]  ;;  %v1071_v34 = vor.u32 %v1180_v29, %v1070_v28  ;;  %v1078_v40 = vld [vmem:[%s1405_s21 + $0xf0] sm:$0xf]  ;;  %v1182_v41 = vld [vmem:[%s1405_s21 + $0xf4] sm:$0xf0] }
  0x21   : > { %602 = vmatpush.bf16.msra.mxu1 %v1193_v11  ;;  %1307 = vmatpush.bf16.msra.mxu3 %v1193_v11  ;;  %v1059_v11 = vor.u32 %v1175_v6, %v1056_v7  ;;  %v1075_v35 = vor.u32 %v1179_v30, %v1072_v31  ;;  %v1181_v42 = vld [vmem:[%s1405_s21 + $0xf4] sm:$0xf]  ;;  %v1080_v43 = vld [vmem:[%s1405_s21 + $0xf8] sm:$0xf0]  ;;  %v1079_v46 = vor.u32 %v1182_v41, %v1078_v40 }
  0x22   : > { %v1083_v47 = vor.u32 %v1181_v42, %v1080_v43 }
  0x24   : > { %514 = vmatpush.bf16.msra.mxu0 %v1184_v12  ;;  %1300 = vmatpush.bf16.msra.mxu2 %v1184_v12  ;;  %v998_v12 = vld [vmem:[%s1405_s21 + $0x50] sm:$0xf] }
  0x25   : > { %603 = vmatpush.bf16.msra.mxu1 %v1192_v13  ;;  %1308 = vmatpush.bf16.msra.mxu3 %v1192_v13  ;;  %v1162_v13 = vld [vmem:[%s1405_s21 + $0x54] sm:$0xf0] }
  0x26   : > { %v999_v20 = vor.u32 %v1162_v13, %v998_v12 }
  0x28   : > { %515 = vmatpush.bf16.msra.mxu0 %v1183_v14  ;;  %1301 = vmatpush.bf16.msra.mxu2 %v1183_v14  ;;  %v1161_v14 = vld [vmem:[%s1405_s21 + $0x54] sm:$0xf] }
  0x29   : > { %604 = vmatpush.bf16.msra.mxu1 %v1191_v15  ;;  %1309 = vmatpush.bf16.msra.mxu3 %v1191_v15  ;;  %v1000_v15 = vld [vmem:[%s1405_s21 + $0x58] sm:$0xf0] }
  0x2a   : > { %v1003_v21 = vor.u32 %v1161_v14, %v1000_v15 }
  0x2b   : > { %516 = vmatmul.bf16.vlgmr.msra.gmra.mxu0 %v959_v24  ;;  %556 = vmatmul.bf16.vlgmr.msra.gmra.mxu2 %v1023_v26  ;;  %v1006_v24 = vld [vmem:[%s1405_s21 + $0x60] sm:$0xf]  ;;  %v1163_v26 = vld [vmem:[%s1405_s21 + $0x64] sm:$0xf] }
  0x2c   : > { %605 = vmatmul.bf16.vlgmr.msra.gmra.mxu1 %v963_v25  ;;  %645 = vmatmul.bf16.vlgmr.msra.gmra.mxu3 %v1027_v27  ;;  %v1164_v25 = vld [vmem:[%s1405_s21 + $0x64] sm:$0xf0]  ;;  %v1008_v27 = vld [vmem:[%s1405_s21 + $0x68] sm:$0xf0] }
  0x2d   : > { %v1007_v32 = vor.u32 %v1164_v25, %v1006_v24  ;;  %v1011_v33 = vor.u32 %v1163_v26, %v1008_v27 }
  0x3b   : > { %521 = vmatmul.bf16.gmra.mxu0 %v967_v36  ;;  %561 = vmatmul.bf16.gmra.mxu2 %v1031_v38  ;;  %v1014_v36 = vld [vmem:[%s1405_s21 + $0x70] sm:$0xf]  ;;  %v1165_v38 = vld [vmem:[%s1405_s21 + $0x74] sm:$0xf] }
  0x3c   : > { %610 = vmatmul.bf16.gmra.mxu1 %v971_v37  ;;  %650 = vmatmul.bf16.gmra.mxu3 %v1035_v39  ;;  %v1166_v37 = vld [vmem:[%s1405_s21 + $0x74] sm:$0xf0]  ;;  %v1016_v39 = vld [vmem:[%s1405_s21 + $0x78] sm:$0xf0] }
  0x3d   : > { %v1015_v44 = vor.u32 %v1166_v37, %v1014_v36  ;;  %v1019_v45 = vor.u32 %v1165_v38, %v1016_v39 }
  0x4b   : > { %526 = vmatmul.bf16.gmra.mxu0 %v975_v48  ;;  %566 = vmatmul.bf16.gmra.mxu2 %v1039_v50 }
  0x4c   : > { %615 = vmatmul.bf16.gmra.mxu1 %v979_v49  ;;  %655 = vmatmul.bf16.gmra.mxu3 %v1043_v51 }
  0x5b   : > { %531 = vmatmul.bf16.gmra.mxu0 %v983_v60  ;;  %571 = vmatmul.bf16.gmra.mxu2 %v1047_v62 }
  0x5c   : > { %620 = vmatmul.bf16.gmra.mxu1 %v987_v61  ;;  %660 = vmatmul.bf16.gmra.mxu3 %v1051_v63 }
  0x6b   : > { %536 = vmatmul.bf16.gmra.mxu0 %v991_v8  ;;  %576 = vmatmul.bf16.gmra.mxu2 %v1055_v10 }
  0x6c   : > { %625 = vmatmul.bf16.gmra.mxu1 %v995_v9  ;;  %665 = vmatmul.bf16.gmra.mxu3 %v1059_v11 }
  0x7b   : > { %541 = vmatmul.bf16.gmra.mxu0 %v999_v20  ;;  %581 = vmatmul.bf16.gmra.mxu2 %v1063_v22 }
  0x7c   : > { %630 = vmatmul.bf16.gmra.mxu1 %v1003_v21  ;;  %670 = vmatmul.bf16.gmra.mxu3 %v1067_v23 }
  0x8b   : > { %546 = vmatmul.bf16.gmra.mxu0 %v1007_v32  ;;  %586 = vmatmul.bf16.gmra.mxu2 %v1071_v34 }
  0x8c   : > { %635 = vmatmul.bf16.gmra.mxu1 %v1011_v33  ;;  %675 = vmatmul.bf16.gmra.mxu3 %v1075_v35 }
  0x9b   : > { %551 = vmatmul.bf16.gmra.mxu0 %v1015_v44  ;;  %591 = vmatmul.bf16.gmra.mxu2 %v1079_v46 }
  0x9c   : > { %640 = vmatmul.bf16.gmra.mxu1 %v1019_v45  ;;  %680 = vmatmul.bf16.gmra.mxu3 %v1083_v47 }
  0xa8   : > { %v517_v48 = vpop.f32.mrf.mxu0 }
  0xa9   : > { %v606_v49 = vpop.f32.mrf.mxu1 }
  0xaa   : > { %v607_v50 = vadd.f32 %v606_v49, %v517_v48 }
  0xac   : > { %v788_v56 = vmul.f32 %v607_v50, %v607_v50 }
  0xae   : > { %v557_v51 = vpop.f32.mrf.mxu2 }
  0xaf   : > { %v646_v52 = vpop.f32.mrf.mxu3 }
  0xb0   : > { %v519_v53 = vpop.f32.mrf.mxu0  ;;  %v1484_v61 = vadd.f32 %v646_v52, %v557_v51 }
  0xb1   : > { %v608_v54 = vpop.f32.mrf.mxu1 }
  0xb2   : > { %v609_v55 = vadd.f32 %v608_v54, %v519_v53 }
  0xb4   : > { %v1202_v57 = vpack.c.bf16 %v609_v55, %v607_v50  ;;  %v750_v58 = vadd.f32 %v609_v55, %v607_v50  ;;  %v789_v59 = vmul.f32 %v609_v55, %v609_v55 }
  0xb6   : > { %1203 = vst [vmem:[%s1481_s30] sm:$0xff] %v1202_v57   ;;  %v820_v60 = vadd.f32 %v789_v59, %v788_v56  ;;  %v559_v62 = vpop.f32.mrf.mxu2 }
  0xb7   : > { %v648_v63 = vpop.f32.mrf.mxu3 }
  0xb8   : > { %v522_v0 = vpop.f32.mrf.mxu0  ;;  %v1486_v2 = vadd.f32 %v648_v63, %v559_v62 }
  0xb9   : > { %v611_v1 = vpop.f32.mrf.mxu1 }
  0xba   : > { %v612_v3 = vadd.f32 %v611_v1, %v522_v0  ;;  %v1242_v4 = vpack.c.bf16 %v1486_v2, %v1484_v61 }
  0xbc   : > { %v751_v5 = vadd.f32 %v750_v58, %v612_v3  ;;  %v790_v6 = vmul.f32 %v612_v3, %v612_v3  ;;  %1286 = vst [vmem:[%s1481_s30 + $0x40] sm:$0xff] %v1242_v4  }
  0xbe   : > { %v821_v7 = vadd.f32 %v820_v60, %v790_v6  ;;  %v562_v8 = vpop.f32.mrf.mxu2 }
  0xbf   : > { %v651_v9 = vpop.f32.mrf.mxu3 }
  0xc0   : > { %v524_v10 = vpop.f32.mrf.mxu0  ;;  %v1496_v17 = vadd.f32 %v651_v9, %v562_v8 }
  0xc1   : > { %v613_v11 = vpop.f32.mrf.mxu1 }
  0xc2   : > { %v614_v12 = vadd.f32 %v613_v11, %v524_v10 }
  0xc4   : > { %v1207_v13 = vpack.c.bf16 %v614_v12, %v612_v3  ;;  %v1491_v14 = vadd.f32 %v751_v5, %v614_v12  ;;  %v791_v15 = vmul.f32 %v614_v12, %v614_v12 }
  0xc6   : > { %1279 = vst [vmem:[%s1481_s30 + $0x8] sm:$0xff] %v1207_v13   ;;  %v1494_v16 = vadd.f32 %v821_v7, %v791_v15  ;;  %v564_v18 = vpop.f32.mrf.mxu2 }
  0xc7   : > { %v653_v19 = vpop.f32.mrf.mxu3 }
  0xc8   : > { %v527_v20 = vpop.f32.mrf.mxu0  ;;  %v1498_v22 = vadd.f32 %v653_v19, %v564_v18 }
  0xc9   : > { %v616_v21 = vpop.f32.mrf.mxu1 }
  0xca   : > { %v1247_v23 = vpack.c.bf16 %v1498_v22, %v1496_v17  ;;  %v617_v28 = vadd.f32 %v616_v21, %v527_v20 }
  0xcc   : > { %1287 = vst [vmem:[%s1481_s30 + $0x48] sm:$0xff] %v1247_v23   ;;  %v792_v20 = vmul.f32 %v617_v28, %v617_v28 }
  0xce   : > { %v567_v24 = vpop.f32.mrf.mxu2 }
  0xcf   : > { %v656_v25 = vpop.f32.mrf.mxu3 }
  0xd0   : > { %v529_v26 = vpop.f32.mrf.mxu0  ;;  %v1507_v31 = vadd.f32 %v656_v25, %v567_v24  ;;  %v753_v24 = vadd.f32 %v1491_v14, %v617_v28  ;;  %v823_v25 = vadd.f32 %v1494_v16, %v792_v20 }
  0xd1   : > { %v618_v27 = vpop.f32.mrf.mxu1 }
  0xd2   : > { %v1503_v29 = vadd.f32 %v618_v27, %v529_v26 }
  0xd4   : > { %v1212_v30 = vpack.c.bf16 %v1503_v29, %v617_v28  ;;  %v793_v23 = vmul.f32 %v1503_v29, %v1503_v29  ;;  %v754_v26 = vadd.f32 %v753_v24, %v1503_v29 }
  0xd6   : > { %1280 = vst [vmem:[%s1481_s30 + $0x10] sm:$0xff] %v1212_v30   ;;  %v569_v32 = vpop.f32.mrf.mxu2 }
  0xd7   : > { %v658_v33 = vpop.f32.mrf.mxu3 }
  0xd8   : > { %v532_v34 = vpop.f32.mrf.mxu0  ;;  %v1509_v36 = vadd.f32 %v658_v33, %v569_v32  ;;  %v824_v33 = vadd.f32 %v823_v25, %v793_v23 }
  0xd9   : > { %v621_v35 = vpop.f32.mrf.mxu1 }
  0xda   : > { %v1252_v37 = vpack.c.bf16 %v1509_v36, %v1507_v31  ;;  %v622_v42 = vadd.f32 %v621_v35, %v532_v34 }
  0xdc   : > { %1288 = vst [vmem:[%s1481_s30 + $0x50] sm:$0xff] %v1252_v37   ;;  %v794_v27 = vmul.f32 %v622_v42, %v622_v42  ;;  %v755_v37 = vadd.f32 %v754_v26, %v622_v42  ;;  %v804_v26 = vmul.f32 %v1484_v61, %v1484_v61 }
  0xde   : > { %v572_v38 = vpop.f32.mrf.mxu2 }
  0xdf   : > { %v661_v39 = vpop.f32.mrf.mxu3 }
  0xe0   : > { %v534_v40 = vpop.f32.mrf.mxu0  ;;  %v1515_v45 = vadd.f32 %v661_v39, %v572_v38 }
  0xe1   : > { %v623_v41 = vpop.f32.mrf.mxu1 }
  0xe2   : > { %v624_v43 = vadd.f32 %v623_v41, %v534_v40  ;;  %v825_v41 = vadd.f32 %v824_v33, %v794_v27  ;;  %v805_v33 = vmul.f32 %v1486_v2, %v1486_v2 }
  0xe4   : > { %v1217_v44 = vpack.c.bf16 %v624_v43, %v622_v42  ;;  %v795_v38 = vmul.f32 %v624_v43, %v624_v43 }
  0xe6   : > { %1281 = vst [vmem:[%s1481_s30 + $0x18] sm:$0xff] %v1217_v44   ;;  %v574_v46 = vpop.f32.mrf.mxu2  ;;  %v756_v44 = vadd.f32 %v755_v37, %v624_v43  ;;  %v826_v14 = vadd.f32 %v825_v41, %v795_v38 }
  0xe7   : > { %v663_v47 = vpop.f32.mrf.mxu3 }
  0xe8   : > { %v537_v48 = vpop.f32.mrf.mxu0  ;;  %v1517_v50 = vadd.f32 %v663_v47, %v574_v46 }
  0xe9   : > { %v626_v49 = vpop.f32.mrf.mxu1 }
  0xea   : > { %v1257_v51 = vpack.c.bf16 %v1517_v50, %v1515_v45  ;;  %v627_v56 = vadd.f32 %v626_v49, %v537_v48 }
  0xec   : > { %1289 = vst [vmem:[%s1481_s30 + $0x58] sm:$0xff] %v1257_v51   ;;  %v796_v46 = vmul.f32 %v627_v56, %v627_v56  ;;  %v757_v28 = vadd.f32 %v756_v44, %v627_v56 }
  0xee   : > { %v577_v52 = vpop.f32.mrf.mxu2  ;;  %v827_v48 = vadd.f32 %v826_v14, %v796_v46 }
  0xef   : > { %v666_v53 = vpop.f32.mrf.mxu3 }
  0xf0   : > { %v539_v54 = vpop.f32.mrf.mxu0  ;;  %v1523_v59 = vadd.f32 %v666_v53, %v577_v52 }
  0xf1   : > { %v628_v55 = vpop.f32.mrf.mxu1 }
  0xf2   : > { %v629_v57 = vadd.f32 %v628_v55, %v539_v54 }
  0xf4   : > { %v1222_v58 = vpack.c.bf16 %v629_v57, %v627_v56  ;;  %v797_v16 = vmul.f32 %v629_v57, %v629_v57  ;;  %v758_v49 = vadd.f32 %v757_v28, %v629_v57 }
  0xf6   : > { %1282 = vst [vmem:[%s1481_s30 + $0x20] sm:$0xff] %v1222_v58   ;;  %v579_v60 = vpop.f32.mrf.mxu2  ;;  %v828_v58 = vadd.f32 %v827_v48, %v797_v16  ;;  %v809_v48 = vmul.f32 %v1509_v36, %v1509_v36 }
  0xf7   : > { %v668_v62 = vpop.f32.mrf.mxu3 }
  0xf8   : > { %v542_v63 = vpop.f32.mrf.mxu0  ;;  %v1525_v1 = vadd.f32 %v668_v62, %v579_v60 }
  0xf9   : > { %v631_v0 = vpop.f32.mrf.mxu1 }
  0xfa   : > { %v1262_v3 = vpack.c.bf16 %v1525_v1, %v1523_v59  ;;  %v632_v8 = vadd.f32 %v631_v0, %v542_v63 }
  0xfc   : > { %1290 = vst [vmem:[%s1481_s30 + $0x60] sm:$0xff] %v1262_v3   ;;  %v798_v51 = vmul.f32 %v632_v8, %v632_v8  ;;  %v759_v43 = vadd.f32 %v758_v49, %v632_v8 }
  0xfe   : > { %v582_v4 = vpop.f32.mrf.mxu2  ;;  %v829_v62 = vadd.f32 %v828_v58, %v798_v51  ;;  %v810_v51 = vmul.f32 %v1515_v45, %v1515_v45 }
  0xff   : > { %v671_v5 = vpop.f32.mrf.mxu3 }
 0x100   : > { %v544_v6 = vpop.f32.mrf.mxu0  ;;  %v1531_v11 = vadd.f32 %v671_v5, %v582_v4 }
 0x101   : > { %v633_v7 = vpop.f32.mrf.mxu1 }
 0x102   : > { %v634_v9 = vadd.f32 %v633_v7, %v544_v6 }
 0x104   : > { %v1227_v10 = vpack.c.bf16 %v634_v9, %v632_v8  ;;  %v799_v60 = vmul.f32 %v634_v9, %v634_v9  ;;  %v760_v63 = vadd.f32 %v759_v43, %v634_v9 }
 0x106   : > { %1283 = vst [vmem:[%s1481_s30 + $0x28] sm:$0xff] %v1227_v10   ;;  %v584_v12 = vpop.f32.mrf.mxu2  ;;  %v830_v4 = vadd.f32 %v829_v62, %v799_v60 }
 0x107   : > { %v673_v13 = vpop.f32.mrf.mxu3 }
 0x108   : > { %v547_v15 = vpop.f32.mrf.mxu0  ;;  %v1533_v19 = vadd.f32 %v673_v13, %v584_v12 }
 0x109   : > { %v636_v18 = vpop.f32.mrf.mxu1 }
 0x10a   : > { %v1267_v21 = vpack.c.bf16 %v1533_v19, %v1531_v11  ;;  %v637_v39 = vadd.f32 %v636_v18, %v547_v15 }
 0x10c   : > { %1291 = vst [vmem:[%s1481_s30 + $0x68] sm:$0xff] %v1267_v21   ;;  %v800_v0 = vmul.f32 %v637_v39, %v637_v39  ;;  %v761_v57 = vadd.f32 %v760_v63, %v637_v39  ;;  %v815_v63 = vmul.f32 %v1533_v19, %v1533_v19 }
 0x10e   : > { %v587_v30 = vpop.f32.mrf.mxu2  ;;  %v831_v6 = vadd.f32 %v830_v4, %v800_v0 }
 0x10f   : > { %v676_v32 = vpop.f32.mrf.mxu3 }
 0x110   : > { %v549_v34 = vpop.f32.mrf.mxu0  ;;  %v1544_v29 = vadd.f32 %v676_v32, %v587_v30 }
 0x111   : > { %v638_v35 = vpop.f32.mrf.mxu1 }
 0x112   : > { %v639_v40 = vadd.f32 %v638_v35, %v549_v34 }
 0x114   : > { %v1232_v47 = vpack.c.bf16 %v639_v40, %v637_v39  ;;  %v801_v5 = vmul.f32 %v639_v40, %v639_v40  ;;  %v762_v7 = vadd.f32 %v761_v57, %v639_v40  ;;  %v806_v40 = vmul.f32 %v1496_v17, %v1496_v17 }
 0x116   : > { %1284 = vst [vmem:[%s1481_s30 + $0x30] sm:$0xff] %v1232_v47   ;;  %v589_v52 = vpop.f32.mrf.mxu2  ;;  %v832_v18 = vadd.f32 %v831_v6, %v801_v5 }
 0x117   : > { %v678_v53 = vpop.f32.mrf.mxu3 }
 0x118   : > { %v552_v42 = vpop.f32.mrf.mxu0  ;;  %v1546_v55 = vadd.f32 %v678_v53, %v589_v52  ;;  %v811_v53 = vmul.f32 %v1517_v50, %v1517_v50 }
 0x119   : > { %v641_v54 = vpop.f32.mrf.mxu1 }
 0x11a   : > { %v1272_v56 = vpack.c.bf16 %v1546_v55, %v1544_v29  ;;  %v642_v3 = vadd.f32 %v641_v54, %v552_v42 }
 0x11c   : > { %1292 = vst [vmem:[%s1481_s30 + $0x70] sm:$0xff] %v1272_v56   ;;  %v802_v10 = vmul.f32 %v642_v3, %v642_v3  ;;  %v763_v20 = vadd.f32 %v762_v7, %v642_v3 }
 0x11e   : > { %v592_v12 = vpop.f32.mrf.mxu2  ;;  %v833_v23 = vadd.f32 %v832_v18, %v802_v10 }
 0x11f   : > { %v681_v13 = vpop.f32.mrf.mxu3 }
 0x120   : > { %v554_v15 = vpop.f32.mrf.mxu0  ;;  %v682_v32 = vadd.f32 %v681_v13, %v592_v12 }
 0x121   : > { %v643_v8 = vpop.f32.mrf.mxu1 }
 0x122   : > { %v644_v21 = vadd.f32 %v643_v8, %v554_v15  ;;  %v818_v10 = vmul.f32 %v682_v32, %v682_v32 }
 0x124   : > { %v1237_v24 = vpack.c.bf16 %v644_v21, %v642_v3  ;;  %v764_v9 = vadd.f32 %v763_v20, %v644_v21  ;;  %v803_v25 = vmul.f32 %v644_v21, %v644_v21 }
 0x126   : > { %1285 = vst [vmem:[%s1481_s30 + $0x38] sm:$0xff] %v1237_v24   ;;  %v765_v27 = vadd.f32 %v764_v9, %v1484_v61  ;;  %v834_v30 = vadd.f32 %v833_v23, %v803_v25  ;;  %v594_v37 = vpop.f32.mrf.mxu2  ;;  %v807_v61 = vmul.f32 %v1498_v22, %v1498_v22 }
 0x127   : > { %v683_v38 = vpop.f32.mrf.mxu3 }
 0x128   : > { %v766_v34 = vadd.f32 %v765_v27, %v1486_v2  ;;  %v835_v35 = vadd.f32 %v834_v30, %v804_v26  ;;  %v684_v39 = vadd.f32 %v683_v38, %v594_v37  ;;  %v808_v2 = vmul.f32 %v1507_v31, %v1507_v31 }
 0x12a   : > { %v767_v41 = vadd.f32 %v766_v34, %v1496_v17  ;;  %v836_v44 = vadd.f32 %v835_v35, %v805_v33  ;;  %v1277_v46 = vpack.c.bf16 %v684_v39, %v682_v32  ;;  %v819_v13 = vmul.f32 %v684_v39, %v684_v39 }
 0x12c   : > { %v768_v47 = vadd.f32 %v767_v41, %v1498_v22  ;;  %v837_v14 = vadd.f32 %v836_v44, %v806_v40  ;;  %1293 = vst [vmem:[%s1481_s30 + $0x78] sm:$0xff] %v1277_v46  }
 0x12e   : > { %v769_v28 = vadd.f32 %v768_v47, %v1507_v31  ;;  %v838_v16 = vadd.f32 %v837_v14, %v807_v61  ;;  %v812_v31 = vmul.f32 %v1523_v59, %v1523_v59 }
 0x130   : > { %v770_v17 = vadd.f32 %v769_v28, %v1509_v36  ;;  %v839_v49 = vadd.f32 %v838_v16, %v808_v2  ;;  %v813_v36 = vmul.f32 %v1525_v1, %v1525_v1 }
 0x132   : > { %v840_v52 = vadd.f32 %v839_v49, %v809_v48  ;;  %v771_v22 = vadd.f32 %v770_v17, %v1515_v45  ;;  %v814_v45 = vmul.f32 %v1531_v11, %v1531_v11 }
 0x134   : > { %v772_v42 = vadd.f32 %v771_v22, %v1517_v50  ;;  %v841_v54 = vadd.f32 %v840_v52, %v810_v51 }
 0x136   : > { %v773_v58 = vadd.f32 %v772_v42, %v1523_v59  ;;  %v842_v43 = vadd.f32 %v841_v54, %v811_v53 }
 0x138   : > { %v774_v60 = vadd.f32 %v773_v58, %v1525_v1  ;;  %v843_v56 = vadd.f32 %v842_v43, %v812_v31  ;;  %v816_v1 = vmul.f32 %v1544_v29, %v1544_v29 }
 0x13a   : > { %v775_v62 = vadd.f32 %v774_v60, %v1531_v11  ;;  %v844_v50 = vadd.f32 %v843_v56, %v813_v36  ;;  %v817_v11 = vmul.f32 %v1546_v55, %v1546_v55 }
 0x13c   : > { %v776_v0 = vadd.f32 %v775_v62, %v1533_v19  ;;  %v845_v59 = vadd.f32 %v844_v50, %v814_v45 }
 0x13e   : > { %v777_v3 = vadd.f32 %v776_v0, %v1544_v29  ;;  %v846_v4 = vadd.f32 %v845_v59, %v815_v63 }
 0x140   : > { %v847_v57 = vadd.f32 %v846_v4, %v816_v1  ;;  %v778_v5 = vadd.f32 %v777_v3, %v1546_v55 }
 0x142   : > { %v848_v6 = vadd.f32 %v847_v57, %v817_v11  ;;  %v779_v7 = vadd.f32 %v778_v5, %v682_v32 }
 0x144   : > { %v849_v12 = vadd.f32 %v848_v6, %v818_v10  ;;  %v780_v19 = vadd.f32 %v779_v7, %v684_v39 }
 0x146   : > { %v781_v15 = vrot.slane %v780_v19, 4  ;;  %v850_v8 = vadd.f32 %v849_v12, %v819_v13 }
 0x148   : > { %v782_v18 = vadd.f32 %v781_v15, %v780_v19  ;;  %v851_v20 = vrot.slane %v850_v8, 4 }
 0x14a   : > { %v783_v29 = vrot.slane %v782_v18, 2  ;;  %v852_v21 = vadd.f32 %v851_v20, %v850_v8 }
 0x14c   : > { %v784_v23 = vadd.f32 %v783_v29, %v782_v18  ;;  %v853_v24 = vrot.slane %v852_v21, 2 }
 0x14e   : > { %v785_v9 = vrot.slane %v784_v23, 1  ;;  %v854_v25 = vadd.f32 %v853_v24, %v852_v21 }
 0x150   : > { %v786_v55 = vadd.f32 %v785_v9, %v784_v23  ;;  %v855_v26 = vrot.slane %v854_v25, 1 }
 0x152   : > { %787 = vst [vmem:[%s187_s6] sm:$0x1] %v786_v55  ;;  %v856_v27 = vadd.f32 %v855_v26, %v854_v25 }
 0x154   : > { %857 = vst [vmem:[%s187_s6 + $0x1] sm:$0x1] %v856_v27 }
 0x155 PF: > { %s14_s12 = sadd.s32 1, %s1324_s12  }
 0x156   : > { %p11_p5 = scmp.ge.s32.totalorder %s14_s12, 4  }
 0x158   :  { %13 = sbr.rel (!%p11_p5) target bundleno = 1 (0x1), region = 70 }

// kernel: _lambda_.25
= control target key start
LH: loop header
LB: loop body
LE: loop exit
PB: predicated region body
PF: predicated region fallthrough
CT: control target
= control target key end

     0   :  { %s545_s1 = inlined_call_operand.vmem [shape: bf16[128,128], index: 1, kind: input, shape index: {}]   ;;  %s546_s0 = inlined_call_operand.vmem [shape: bf16[128,128], index: 0, kind: input, shape index: {}]   ;;  %s547_s2 = inlined_call_operand.vmem [shape: bf16[128,128], index: 2, kind: output, shape index: {0}]   ;;  %s548_s3 = inlined_call_operand.vmem [shape: f32[1,8,128], index: 3, kind: output, shape index: {1}]  }
   0x1   :  { %v369_v0 = vld [vmem:[%s545_s1 + $0x38] sm:$0xff]  ;;  %v368_v1 = vld [vmem:[%s545_s1 + $0x30] sm:$0xff]  ;;  %v367_v2 = vld [vmem:[%s545_s1 + $0x28] sm:$0xff] }
   0x2   :  { %141 = vmatpush.bf16.msra.mxu0 %v369_v0  ;;  %417 = vmatpush.bf16.msra.mxu1 %v369_v0  ;;  %v366_v3 = vld [vmem:[%s545_s1 + $0x20] sm:$0xff]  ;;  %v365_v4 = vld [vmem:[%s545_s1 + $0x18] sm:$0xff]  ;;  %v364_v5 = vld [vmem:[%s545_s1 + $0x10] sm:$0xff] }
   0x3   :  { %418 = vmatpush.bf16.msra.mxu2 %v369_v0  ;;  %419 = vmatpush.bf16.msra.mxu3 %v369_v0  ;;  %v363_v6 = vld [vmem:[%s545_s1 + $0x8] sm:$0xff]  ;;  %v362_v7 = vld [vmem:[%s545_s1] sm:$0xff]  ;;  %v356_v9 = vld [vmem:[%s546_s0 + $0x10] sm:$0xff] }
   0x4   :  { %v354_v8 = vld [vmem:[%s546_s0] sm:$0xff]  ;;  %v360_v11 = vld [vmem:[%s546_s0 + $0x30] sm:$0xff]  ;;  %v355_v12 = vld [vmem:[%s546_s0 + $0x8] sm:$0xff] }
   0x5   :  { %v358_v10 = vld [vmem:[%s546_s0 + $0x20] sm:$0xff]  ;;  %v357_v13 = vld [vmem:[%s546_s0 + $0x18] sm:$0xff]  ;;  %v359_v14 = vld [vmem:[%s546_s0 + $0x28] sm:$0xff] }
   0x6   :  { %142 = vmatpush.bf16.msra.mxu0 %v368_v1  ;;  %420 = vmatpush.bf16.msra.mxu1 %v368_v1  ;;  %v361_v15 = vld [vmem:[%s546_s0 + $0x38] sm:$0xff] }
   0x7   :  { %421 = vmatpush.bf16.msra.mxu2 %v368_v1  ;;  %422 = vmatpush.bf16.msra.mxu3 %v368_v1 }
   0xa   :  { %143 = vmatpush.bf16.msra.mxu0 %v367_v2  ;;  %423 = vmatpush.bf16.msra.mxu1 %v367_v2 }
   0xb   :  { %424 = vmatpush.bf16.msra.mxu2 %v367_v2  ;;  %425 = vmatpush.bf16.msra.mxu3 %v367_v2 }
   0xe   :  { %144 = vmatpush.bf16.msra.mxu0 %v366_v3  ;;  %426 = vmatpush.bf16.msra.mxu1 %v366_v3 }
   0xf   :  { %427 = vmatpush.bf16.msra.mxu2 %v366_v3  ;;  %428 = vmatpush.bf16.msra.mxu3 %v366_v3 }
  0x12   :  { %145 = vmatpush.bf16.msra.mxu0 %v365_v4  ;;  %429 = vmatpush.bf16.msra.mxu1 %v365_v4 }
  0x13   :  { %430 = vmatpush.bf16.msra.mxu2 %v365_v4  ;;  %431 = vmatpush.bf16.msra.mxu3 %v365_v4 }
  0x16   :  { %146 = vmatpush.bf16.msra.mxu0 %v364_v5  ;;  %432 = vmatpush.bf16.msra.mxu1 %v364_v5 }
  0x17   :  { %433 = vmatpush.bf16.msra.mxu2 %v364_v5  ;;  %434 = vmatpush.bf16.msra.mxu3 %v364_v5 }
  0x1a   :  { %147 = vmatpush.bf16.msra.mxu0 %v363_v6  ;;  %435 = vmatpush.bf16.msra.mxu1 %v363_v6 }
  0x1b   :  { %436 = vmatpush.bf16.msra.mxu2 %v363_v6  ;;  %437 = vmatpush.bf16.msra.mxu3 %v363_v6 }
  0x1e   :  { %148 = vmatpush.bf16.msra.mxu0 %v362_v7  ;;  %438 = vmatpush.bf16.msra.mxu1 %v362_v7 }
  0x1f   :  { %439 = vmatpush.bf16.msra.mxu2 %v362_v7  ;;  %440 = vmatpush.bf16.msra.mxu3 %v362_v7 }
  0x21   :  { %149 = vmatmul.bf16.vlgmr.msra.gmra.mxu0 %v354_v8  ;;  %159 = vmatmul.bf16.vlgmr.msra.gmra.mxu1 %v356_v9 }
  0x22   :  { %169 = vmatmul.bf16.vlgmr.msra.gmra.mxu2 %v358_v10  ;;  %179 = vmatmul.bf16.vlgmr.msra.gmra.mxu3 %v360_v11 }
  0x31   :  { %154 = vmatmul.bf16.gmra.mxu0 %v355_v12  ;;  %164 = vmatmul.bf16.gmra.mxu1 %v357_v13 }
  0x32   :  { %174 = vmatmul.bf16.gmra.mxu2 %v359_v14  ;;  %184 = vmatmul.bf16.gmra.mxu3 %v361_v15 }
  0x9e   :  { %v150_v16 = vpop.f32.mrf.mxu0  ;;  %v160_v17 = vpop.f32.mrf.mxu1 }
  0x9f   :  { %v244_v31 = vmul.f32 %v150_v16, %v150_v16  ;;  %v248_v45 = vmul.f32 %v160_v17, %v160_v17 }
  0xa5   :  { %v170_v18 = vpop.f32.mrf.mxu2  ;;  %v509_v19 = vpop.f32.mrf.mxu3 }
  0xa6   :  { %v152_v20 = vpop.f32.mrf.mxu0  ;;  %v162_v21 = vpop.f32.mrf.mxu1  ;;  %v252_v61 = vmul.f32 %v170_v18, %v170_v18  ;;  %v256_v9 = vmul.f32 %v509_v19, %v509_v19 }
  0xa7   :  { %v373_v22 = vpack.c.bf16 %v152_v20, %v150_v16  ;;  %v383_v23 = vpack.c.bf16 %v162_v21, %v160_v17  ;;  %v245_v30 = vmul.f32 %v152_v20, %v152_v20  ;;  %v222_v33 = vadd.f32 %v152_v20, %v150_v16 }
  0xa8   :  { %v249_v48 = vmul.f32 %v162_v21, %v162_v21 }
  0xa9   :  { %374 = vst [vmem:[%s547_s2] sm:$0xff] %v373_v22   ;;  %v260_v34 = vadd.f32 %v245_v30, %v244_v31 }
  0xaa   :  { %411 = vst [vmem:[%s547_s2 + $0x10] sm:$0xff] %v383_v23  }
  0xad   :  { %v172_v24 = vpop.f32.mrf.mxu2  ;;  %v182_v25 = vpop.f32.mrf.mxu3 }
  0xae   :  { %v155_v26 = vpop.f32.mrf.mxu0  ;;  %v165_v27 = vpop.f32.mrf.mxu1  ;;  %v393_v28 = vpack.c.bf16 %v172_v24, %v170_v18  ;;  %v403_v29 = vpack.c.bf16 %v182_v25, %v509_v19  ;;  %v253_v0 = vmul.f32 %v172_v24, %v172_v24  ;;  %v257_v12 = vmul.f32 %v182_v25, %v182_v25 }
  0xaf   :  { %v246_v32 = vmul.f32 %v155_v26, %v155_v26  ;;  %v223_v35 = vadd.f32 %v222_v33, %v155_v26  ;;  %v250_v51 = vmul.f32 %v165_v27, %v165_v27 }
  0xb0   :  { %413 = vst [vmem:[%s547_s2 + $0x20] sm:$0xff] %v393_v28  }
  0xb1   :  { %415 = vst [vmem:[%s547_s2 + $0x30] sm:$0xff] %v403_v29   ;;  %v261_v38 = vadd.f32 %v260_v34, %v246_v32 }
  0xb5   :  { %v175_v36 = vpop.f32.mrf.mxu2  ;;  %v185_v37 = vpop.f32.mrf.mxu3 }
  0xb6   :  { %v157_v39 = vpop.f32.mrf.mxu0  ;;  %v167_v40 = vpop.f32.mrf.mxu1  ;;  %v254_v4 = vmul.f32 %v175_v36, %v175_v36  ;;  %v258_v16 = vmul.f32 %v185_v37, %v185_v37 }
  0xb7   :  { %v378_v41 = vpack.c.bf16 %v157_v39, %v155_v26  ;;  %v224_v42 = vadd.f32 %v223_v35, %v157_v39  ;;  %v247_v43 = vmul.f32 %v157_v39, %v157_v39  ;;  %v388_v44 = vpack.c.bf16 %v167_v40, %v165_v27 }
  0xb8   :  { %v251_v59 = vmul.f32 %v167_v40, %v167_v40 }
  0xb9   :  { %410 = vst [vmem:[%s547_s2 + $0x8] sm:$0xff] %v378_v41   ;;  %v225_v46 = vadd.f32 %v224_v42, %v160_v17  ;;  %v262_v47 = vadd.f32 %v261_v38, %v247_v43 }
  0xba   :  { %412 = vst [vmem:[%s547_s2 + $0x18] sm:$0xff] %v388_v44  }
  0xbb   :  { %v263_v49 = vadd.f32 %v262_v47, %v248_v45  ;;  %v226_v50 = vadd.f32 %v225_v46, %v162_v21 }
  0xbd   :  { %v227_v52 = vadd.f32 %v226_v50, %v165_v27  ;;  %v264_v53 = vadd.f32 %v263_v49, %v249_v48  ;;  %v177_v54 = vpop.f32.mrf.mxu2  ;;  %v187_v55 = vpop.f32.mrf.mxu3 }
  0xbe   :  { %v398_v56 = vpack.c.bf16 %v177_v54, %v175_v36  ;;  %v408_v57 = vpack.c.bf16 %v187_v55, %v185_v37  ;;  %v255_v8 = vmul.f32 %v177_v54, %v177_v54  ;;  %v259_v21 = vmul.f32 %v187_v55, %v187_v55 }
  0xbf   :  { %v228_v58 = vadd.f32 %v227_v52, %v167_v40  ;;  %v265_v60 = vadd.f32 %v264_v53, %v250_v51 }
  0xc0   :  { %414 = vst [vmem:[%s547_s2 + $0x28] sm:$0xff] %v398_v56  }
  0xc1   :  { %v229_v62 = vadd.f32 %v228_v58, %v170_v18  ;;  %v266_v63 = vadd.f32 %v265_v60, %v251_v59  ;;  %416 = vst [vmem:[%s547_s2 + $0x38] sm:$0xff] %v408_v57  }
  0xc3   :  { %v267_v1 = vadd.f32 %v266_v63, %v252_v61  ;;  %v230_v2 = vadd.f32 %v229_v62, %v172_v24 }
  0xc5   :  { %v231_v3 = vadd.f32 %v230_v2, %v175_v36  ;;  %v268_v5 = vadd.f32 %v267_v1, %v253_v0 }
  0xc7   :  { %v269_v6 = vadd.f32 %v268_v5, %v254_v4  ;;  %v232_v7 = vadd.f32 %v231_v3, %v177_v54 }
  0xc9   :  { %v233_v10 = vadd.f32 %v232_v7, %v509_v19  ;;  %v270_v11 = vadd.f32 %v269_v6, %v255_v8 }
  0xcb   :  { %v271_v13 = vadd.f32 %v270_v11, %v256_v9  ;;  %v234_v14 = vadd.f32 %v233_v10, %v182_v25 }
  0xcd   :  { %v235_v15 = vadd.f32 %v234_v14, %v185_v37  ;;  %v272_v17 = vadd.f32 %v271_v13, %v257_v12 }
  0xcf   :  { %v273_v18 = vadd.f32 %v272_v17, %v258_v16  ;;  %v236_v20 = vadd.f32 %v235_v15, %v187_v55 }
  0xd1   :  { %v237_v22 = vrot.slane %v236_v20, 4  ;;  %v274_v23 = vadd.f32 %v273_v18, %v259_v21 }
  0xd3   :  { %v238_v24 = vadd.f32 %v237_v22, %v236_v20  ;;  %v275_v26 = vrot.slane %v274_v23, 4 }
  0xd5   :  { %v239_v27 = vrot.slane %v238_v24, 2  ;;  %v276_v28 = vadd.f32 %v275_v26, %v274_v23 }
  0xd7   :  { %v240_v29 = vadd.f32 %v239_v27, %v238_v24  ;;  %v277_v30 = vrot.slane %v276_v28, 2 }
  0xd9   :  { %v241_v31 = vrot.slane %v240_v29, 1  ;;  %v278_v19 = vadd.f32 %v277_v30, %v276_v28 }
  0xdb   :  { %v242_v32 = vadd.f32 %v241_v31, %v240_v29  ;;  %v279_v33 = vrot.slane %v278_v19, 1 }
  0xdd   :  { %243 = vst [vmem:[%s548_s3] sm:$0x1] %v242_v32  ;;  %v280_v25 = vadd.f32 %v279_v33, %v278_v19 }
  0xdf   :  { %281 = vst [vmem:[%s548_s3 + $0x1] sm:$0x1] %v280_v25 }

// kernel: _lambda_.26
= control target key start
LH: loop header
LB: loop body
LE: loop exit
PB: predicated region body
PF: predicated region fallthrough
CT: control target
= control target key end

     0   :  { %s343_s1 = inlined_call_operand.vmem [shape: f32[1,8,128], index: 1, kind: input, shape index: {}]   ;;  %s344_s0 = inlined_call_operand.vmem [shape: bf16[128,128], index: 0, kind: input, shape index: {}]   ;;  %s345_s2 = inlined_call_operand.vmem [shape: f32[1,128], index: 2, kind: input, shape index: {}]   ;;  %s346_s3 = inlined_call_operand.vmem [shape: f32[1,128], index: 3, kind: input, shape index: {}]   ;;  %s347_s4 = inlined_call_operand.vmem [shape: bf16[128,128], index: 4, kind: output, shape index: {}]  }
   0x1   :  { %v17_v0 = vld [vmem:[%s343_s1] sm:$0xff]  ;;  %v241_v15 = vld [vmem:[%s344_s0 + $0x8] sm:$0xff]   ;;  %v242_v17 = vld [vmem:[%s344_s0 + $0x10] sm:$0xff]  }
   0x2   :  { %v19_v1 = vmul.f32 0.0078125, %v17_v0  ;;  %v170_v14 = vld [vmem:[%s344_s0] sm:$0xff]   ;;  %v243_v18 = vld [vmem:[%s344_s0 + $0x18] sm:$0xff]   ;;  %v175_v23 = vunpack.c.l.bf16 %v241_v15  ;;  %v245_v24 = vld [vmem:[%s344_s0 + $0x28] sm:$0xff]   ;;  %v176_v26 = vunpack.c.h.bf16 %v241_v15  ;;  %v179_v27 = vunpack.c.l.bf16 %v242_v17 }
   0x3   :  { %v26_v16 = vld [vmem:[%s345_s2] sm:$0x1]  ;;  %v171_v21 = vunpack.c.l.bf16 %v170_v14  ;;  %v172_v22 = vunpack.c.h.bf16 %v170_v14  ;;  %v180_v28 = vunpack.c.h.bf16 %v242_v17  ;;  %v246_v29 = vld [vmem:[%s344_s0 + $0x30] sm:$0xff]   ;;  %v312_v30 = vld [vmem:[%s344_s0 + $0x38] sm:$0xff]   ;;  %v183_v32 = vunpack.c.l.bf16 %v243_v18 }
   0x4   :  { %v20_v2 = vmul.f32 %v19_v1, %v19_v1  ;;  %v244_v19 = vld [vmem:[%s344_s0 + $0x20] sm:$0xff]   ;;  %v184_v33 = vunpack.c.h.bf16 %v243_v18  ;;  %v191_v38 = vunpack.c.l.bf16 %v245_v24  ;;  %v192_v39 = vunpack.c.h.bf16 %v245_v24 }
   0x5   :  { %v44_v31 = vld [vmem:[%s346_s3] sm:$0x1]  ;;  %v187_v34 = vunpack.c.l.bf16 %v244_v19  ;;  %v188_v35 = vunpack.c.h.bf16 %v244_v19  ;;  %v195_v40 = vunpack.c.l.bf16 %v246_v29  ;;  %v196_v41 = vunpack.c.h.bf16 %v246_v29 }
   0x6   :  { %v22_v3 = vrot.slane %v20_v2, 7  ;;  %v199_v42 = vunpack.c.l.bf16 %v312_v30  ;;  %v200_v43 = vunpack.c.h.bf16 %v312_v30 }
   0x8   :  { %v24_v4 = vsub.f32 %v19_v1, %v22_v3 }
   0xa   :  { %v25_v5 = vmax.f32 %v24_v4, 0.0 }
   0xc   :  { %v27_v6 = vadd.f32 1e-05, %v25_v5 }
   0xe   :  { %255 = vrsqrt.f32 %v27_v6  ;;  %vm34_vm0 = vweird.f32 %v27_v6 }
  0x14   :  { %v256_v7 = vpop.eup %255 }
  0x15   :  { %v29_v8 = vmul.f32 %v256_v7, %v27_v6  ;;  %vm35_vm1 = vweird.f32 %v256_v7 }
  0x16   :  { %vm36_vm2 = vmor %vm34_vm0, %vm35_vm1 }
  0x17   :  { %v30_v9 = vmul.f32 %v256_v7, %v29_v8 }
  0x19   :  { %v31_v10 = vmul.f32 0.5, %v30_v9 }
  0x1b   :  { %v32_v11 = vsub.f32 1.5, %v31_v10 }
  0x1d   :  { %v33_v12 = vmul.f32 %v256_v7, %v32_v11 }
  0x1f   :  { %v37_v13 = vsel %vm36_vm2, %v256_v7, %v33_v12 }
  0x20   :  { %39 = vst [vmem:[#allocation1] sm:$0xff] %v37_v13 }
  0x27   :  { %v41_v20 = vld [vmem:[#allocation1 + $0x1] ss:$9 sm:$0xff] }
  0x28   :  { %v43_v25 = vmul.f32 %v41_v20, %v26_v16 }
  0x2a   :  { %v45_v36 = vmul.f32 %v43_v25, %v19_v1  ;;  %v80_v37 = vperm.slane %v43_v25, 0 }
  0x2c   :  { %v46_v44 = vsub.f32 %v44_v31, %v45_v36  ;;  %v82_v45 = vmul.f32 %v171_v21, %v80_v37  ;;  %v83_v46 = vmul.f32 %v172_v22, %v80_v37  ;;  %v84_v47 = vmul.f32 %v175_v23, %v80_v37 }
  0x2d   :  { %v85_v48 = vmul.f32 %v176_v26, %v80_v37  ;;  %v86_v49 = vmul.f32 %v179_v27, %v80_v37  ;;  %v87_v50 = vmul.f32 %v180_v28, %v80_v37  ;;  %v88_v51 = vmul.f32 %v183_v32, %v80_v37 }
  0x2e   :  { %v99_v52 = vperm.slane %v46_v44, 0  ;;  %v89_v53 = vmul.f32 %v184_v33, %v80_v37  ;;  %v90_v54 = vmul.f32 %v187_v34, %v80_v37  ;;  %v91_v55 = vmul.f32 %v188_v35, %v80_v37 }
  0x2f   :  { %v92_v56 = vmul.f32 %v191_v38, %v80_v37  ;;  %v93_v57 = vmul.f32 %v192_v39, %v80_v37  ;;  %v94_v58 = vmul.f32 %v195_v40, %v80_v37  ;;  %v95_v59 = vmul.f32 %v196_v41, %v80_v37 }
  0x30   :  { %v101_v60 = vadd.f32 %v99_v52, %v82_v45  ;;  %v102_v61 = vadd.f32 %v99_v52, %v83_v46  ;;  %v103_v62 = vadd.f32 %v99_v52, %v84_v47  ;;  %v104_v63 = vadd.f32 %v99_v52, %v85_v48 }
  0x31   :  { %v105_v0 = vadd.f32 %v99_v52, %v86_v49  ;;  %v106_v1 = vadd.f32 %v99_v52, %v87_v50  ;;  %v107_v2 = vadd.f32 %v99_v52, %v88_v51  ;;  %v108_v3 = vadd.f32 %v99_v52, %v89_v53 }
  0x32   :  { %v117_v4 = vmax.f32 %v101_v60, 0.0  ;;  %v118_v5 = vmax.f32 %v102_v61, 0.0  ;;  %v119_v6 = vmax.f32 %v103_v62, 0.0  ;;  %v120_v7 = vmax.f32 %v104_v63, 0.0 }
  0x33   :  { %v121_v8 = vmax.f32 %v105_v0, 0.0  ;;  %v122_v9 = vmax.f32 %v106_v1, 0.0  ;;  %v123_v10 = vmax.f32 %v107_v2, 0.0  ;;  %v124_v11 = vmax.f32 %v108_v3, 0.0 }
  0x34   :  { %v204_v12 = vpack.c.bf16 %v118_v5, %v117_v4  ;;  %v209_v13 = vpack.c.bf16 %v120_v7, %v119_v6  ;;  %v109_v14 = vadd.f32 %v99_v52, %v90_v54  ;;  %v110_v15 = vadd.f32 %v99_v52, %v91_v55 }
  0x35   :  { %v214_v16 = vpack.c.bf16 %v122_v9, %v121_v8  ;;  %v219_v17 = vpack.c.bf16 %v124_v11, %v123_v10  ;;  %v111_v18 = vadd.f32 %v99_v52, %v92_v56  ;;  %v112_v19 = vadd.f32 %v99_v52, %v93_v57 }
  0x36   :  { %205 = vst [vmem:[%s347_s4] sm:$0xff] %v204_v12   ;;  %v125_v20 = vmax.f32 %v109_v14, 0.0  ;;  %v126_v21 = vmax.f32 %v110_v15, 0.0  ;;  %v113_v22 = vadd.f32 %v99_v52, %v94_v58  ;;  %v114_v23 = vadd.f32 %v99_v52, %v95_v59 }
  0x37   :  { %248 = vst [vmem:[%s347_s4 + $0x8] sm:$0xff] %v209_v13   ;;  %v127_v24 = vmax.f32 %v111_v18, 0.0  ;;  %v128_v25 = vmax.f32 %v112_v19, 0.0  ;;  %v96_v26 = vmul.f32 %v199_v42, %v80_v37  ;;  %v97_v27 = vmul.f32 %v200_v43, %v80_v37 }
  0x38   :  { %249 = vst [vmem:[%s347_s4 + $0x10] sm:$0xff] %v214_v16   ;;  %v224_v28 = vpack.c.bf16 %v126_v21, %v125_v20  ;;  %v129_v29 = vmax.f32 %v113_v22, 0.0  ;;  %v130_v30 = vmax.f32 %v114_v23, 0.0 }
  0x39   :  { %250 = vst [vmem:[%s347_s4 + $0x18] sm:$0xff] %v219_v17   ;;  %v229_v31 = vpack.c.bf16 %v128_v25, %v127_v24  ;;  %v115_v32 = vadd.f32 %v99_v52, %v96_v26  ;;  %v116_v33 = vadd.f32 %v99_v52, %v97_v27 }
  0x3a   :  { %251 = vst [vmem:[%s347_s4 + $0x20] sm:$0xff] %v224_v28   ;;  %v234_v34 = vpack.c.bf16 %v130_v30, %v129_v29 }
  0x3b   :  { %252 = vst [vmem:[%s347_s4 + $0x28] sm:$0xff] %v229_v31   ;;  %v131_v35 = vmax.f32 %v115_v32, 0.0  ;;  %v132_v36 = vmax.f32 %v116_v33, 0.0 }
  0x3c   :  { %253 = vst [vmem:[%s347_s4 + $0x30] sm:$0xff] %v234_v34  }
  0x3d   :  { %v239_v37 = vpack.c.bf16 %v132_v36, %v131_v35 }
  0x3f   :  { %254 = vst [vmem:[%s347_s4 + $0x38] sm:$0xff] %v239_v37  }

// kernel: _lambda_.28
= control target key start
LH: loop header
LB: loop body
LE: loop exit
PB: predicated region body
PF: predicated region fallthrough
CT: control target
= control target key end

     0   :  { %s153_s1 = inlined_call_operand.vmem [shape: f32[1,8,128], index: 1, kind: input, shape index: {}]   ;;  %s154_s2 = inlined_call_operand.vmem [shape: f32[1,128], index: 2, kind: input, shape index: {}]   ;;  %s155_s0 = inlined_call_operand.vmem [shape: bf16[32,128], index: 0, kind: input, shape index: {}]   ;;  %s156_s3 = inlined_call_operand.vmem [shape: f32[1,128], index: 3, kind: input, shape index: {}]   ;;  %s157_s4 = inlined_call_operand.vmem [shape: bf16[32,128], index: 4, kind: output, shape index: {}]  }
   0x1   :  { %v17_v0 = vld [vmem:[%s153_s1] sm:$0xff]  ;;  %v103_v17 = vld [vmem:[%s155_s0 + $0x8] sm:$0xff]  }
   0x2   :  { %v19_v1 = vmul.f32 0.03125, %v17_v0  ;;  %v26_v14 = vld [vmem:[%s154_s2] sm:$0x1]  ;;  %v91_v24 = vunpack.c.l.bf16 %v103_v17  ;;  %v92_v25 = vunpack.c.h.bf16 %v103_v17 }
   0x3   :  { %v86_v15 = vld [vmem:[%s155_s0] sm:$0xff]  }
   0x4   :  { %v20_v2 = vmul.f32 %v19_v1, %v19_v1  ;;  %v44_v19 = vld [vmem:[%s156_s3] sm:$0x1]  ;;  %v87_v20 = vunpack.c.l.bf16 %v86_v15  ;;  %v88_v21 = vunpack.c.h.bf16 %v86_v15 }
   0x6   :  { %v22_v3 = vrot.slane %v20_v2, 7 }
   0x8   :  { %v24_v4 = vsub.f32 %v19_v1, %v22_v3 }
   0xa   :  { %v25_v5 = vmax.f32 %v24_v4, 0.0 }
   0xc   :  { %v27_v6 = vadd.f32 1e-05, %v25_v5 }
   0xe   :  { %105 = vrsqrt.f32 %v27_v6  ;;  %vm34_vm0 = vweird.f32 %v27_v6 }
  0x14   :  { %v106_v7 = vpop.eup %105 }
  0x15   :  { %v29_v8 = vmul.f32 %v106_v7, %v27_v6  ;;  %vm35_vm1 = vweird.f32 %v106_v7 }
  0x16   :  { %vm36_vm2 = vmor %vm34_vm0, %vm35_vm1 }
  0x17   :  { %v30_v9 = vmul.f32 %v106_v7, %v29_v8 }
  0x19   :  { %v31_v10 = vmul.f32 0.5, %v30_v9 }
  0x1b   :  { %v32_v11 = vsub.f32 1.5, %v31_v10 }
  0x1d   :  { %v33_v12 = vmul.f32 %v106_v7, %v32_v11 }
  0x1f   :  { %v37_v13 = vsel %vm36_vm2, %v106_v7, %v33_v12 }
  0x20   :  { %39 = vst [vmem:[#allocation1] sm:$0xff] %v37_v13 }
  0x27   :  { %v41_v16 = vld [vmem:[#allocation1 + $0x1] ss:$9 sm:$0xff] }
  0x28   :  { %v43_v18 = vmul.f32 %v41_v16, %v26_v14 }
  0x2a   :  { %v45_v22 = vmul.f32 %v43_v18, %v19_v1  ;;  %v56_v23 = vperm.slane %v43_v18, 0 }
  0x2c   :  { %v46_v26 = vsub.f32 %v44_v19, %v45_v22  ;;  %v58_v27 = vmul.f32 %v87_v20, %v56_v23  ;;  %v59_v28 = vmul.f32 %v88_v21, %v56_v23  ;;  %v60_v30 = vmul.f32 %v91_v24, %v56_v23 }
  0x2d   :  { %v61_v31 = vmul.f32 %v92_v25, %v56_v23 }
  0x2e   :  { %v63_v29 = vperm.slane %v46_v26, 0 }
  0x30   :  { %v65_v32 = vadd.f32 %v63_v29, %v58_v27  ;;  %v66_v33 = vadd.f32 %v63_v29, %v59_v28  ;;  %v67_v34 = vadd.f32 %v63_v29, %v60_v30  ;;  %v68_v35 = vadd.f32 %v63_v29, %v61_v31 }
  0x32   :  { %v69_v36 = vmax.f32 %v65_v32, 0.0  ;;  %v70_v37 = vmax.f32 %v66_v33, 0.0  ;;  %v71_v38 = vmax.f32 %v67_v34, 0.0  ;;  %v72_v39 = vmax.f32 %v68_v35, 0.0 }
  0x34   :  { %v96_v40 = vpack.c.bf16 %v70_v37, %v69_v36  ;;  %v101_v41 = vpack.c.bf16 %v72_v39, %v71_v38 }
  0x36   :  { %97 = vst [vmem:[%s157_s4] sm:$0xff] %v96_v40  }
  0x37   :  { %104 = vst [vmem:[%s157_s4 + $0x8] sm:$0xff] %v101_v41  }

// kernel: _lambda_.27
= control target key start
LH: loop header
LB: loop body
LE: loop exit
PB: predicated region body
PF: predicated region fallthrough
CT: control target
= control target key end

     0   :  { %s474_s1 = inlined_call_operand.vmem [shape: bf16[256,128], index: 1, kind: input, shape index: {}]   ;;  %s475_s0 = inlined_call_operand.vmem [shape: bf16[32,256], index: 0, kind: input, shape index: {}]   ;;  %s476_s2 = inlined_call_operand.vmem [shape: bf16[32,128], index: 2, kind: output, shape index: {0}]   ;;  %s477_s3 = inlined_call_operand.vmem [shape: f32[1,8,128], index: 3, kind: output, shape index: {1}]  }
   0x1   :  { %v334_v0 = vld [vmem:[%s474_s1 + $0x38] sm:$0xff]  ;;  %v333_v2 = vld [vmem:[%s474_s1 + $0x30] sm:$0xff]  ;;  %v332_v4 = vld [vmem:[%s474_s1 + $0x28] sm:$0xff] }
   0x2   :  { %v342_v1 = vld [vmem:[%s474_s1 + $0x78] sm:$0xff]  ;;  %165 = vmatpush.bf16.msra.mxu0 %v334_v0  ;;  %354 = vmatpush.bf16.msra.mxu2 %v334_v0  ;;  %v341_v3 = vld [vmem:[%s474_s1 + $0x70] sm:$0xff]  ;;  %v340_v5 = vld [vmem:[%s474_s1 + $0x68] sm:$0xff] }
   0x3   :  { %184 = vmatpush.bf16.msra.mxu1 %v342_v1  ;;  %362 = vmatpush.bf16.msra.mxu3 %v342_v1  ;;  %v331_v6 = vld [vmem:[%s474_s1 + $0x20] sm:$0xff]  ;;  %v330_v8 = vld [vmem:[%s474_s1 + $0x18] sm:$0xff]  ;;  %v329_v10 = vld [vmem:[%s474_s1 + $0x10] sm:$0xff] }
   0x4   :  { %v339_v7 = vld [vmem:[%s474_s1 + $0x60] sm:$0xff]  ;;  %v338_v9 = vld [vmem:[%s474_s1 + $0x58] sm:$0xff]  ;;  %v337_v11 = vld [vmem:[%s474_s1 + $0x50] sm:$0xff] }
   0x5   :  { %v328_v12 = vld [vmem:[%s474_s1 + $0x8] sm:$0xff]  ;;  %v327_v14 = vld [vmem:[%s474_s1] sm:$0xff]  ;;  %v253_v18 = vld [vmem:[%s475_s0 + $0x10] sm:$0xf] }
   0x6   :  { %166 = vmatpush.bf16.msra.mxu0 %v333_v2  ;;  %355 = vmatpush.bf16.msra.mxu2 %v333_v2  ;;  %v336_v13 = vld [vmem:[%s474_s1 + $0x48] sm:$0xff]  ;;  %v335_v15 = vld [vmem:[%s474_s1 + $0x40] sm:$0xff]  ;;  %v326_v19 = vld [vmem:[%s475_s0 + $0x14] sm:$0xf0] }
   0x7   :  { %185 = vmatpush.bf16.msra.mxu1 %v341_v3  ;;  %363 = vmatpush.bf16.msra.mxu3 %v341_v3  ;;  %v245_v16 = vld [vmem:[%s475_s0] sm:$0xf]  ;;  %v324_v17 = vld [vmem:[%s475_s0 + $0x4] sm:$0xf0]  ;;  %v323_v20 = vld [vmem:[%s475_s0 + $0x4] sm:$0xf]  ;;  %v254_v25 = vor.u32 %v326_v19, %v253_v18 }
   0x8   :  { %v247_v21 = vld [vmem:[%s475_s0 + $0x8] sm:$0xf0]  ;;  %v325_v22 = vld [vmem:[%s475_s0 + $0x14] sm:$0xf]  ;;  %v255_v23 = vld [vmem:[%s475_s0 + $0x18] sm:$0xf0]  ;;  %v246_v24 = vor.u32 %v324_v17, %v245_v16 }
   0x9   :  { %v250_v26 = vor.u32 %v323_v20, %v247_v21  ;;  %v258_v27 = vor.u32 %v325_v22, %v255_v23 }
   0xa   :  { %167 = vmatpush.bf16.msra.mxu0 %v332_v4  ;;  %356 = vmatpush.bf16.msra.mxu2 %v332_v4 }
   0xb   :  { %186 = vmatpush.bf16.msra.mxu1 %v340_v5  ;;  %364 = vmatpush.bf16.msra.mxu3 %v340_v5 }
   0xe   :  { %168 = vmatpush.bf16.msra.mxu0 %v331_v6  ;;  %357 = vmatpush.bf16.msra.mxu2 %v331_v6 }
   0xf   :  { %187 = vmatpush.bf16.msra.mxu1 %v339_v7  ;;  %365 = vmatpush.bf16.msra.mxu3 %v339_v7 }
  0x12   :  { %169 = vmatpush.bf16.msra.mxu0 %v330_v8  ;;  %358 = vmatpush.bf16.msra.mxu2 %v330_v8 }
  0x13   :  { %188 = vmatpush.bf16.msra.mxu1 %v338_v9  ;;  %366 = vmatpush.bf16.msra.mxu3 %v338_v9 }
  0x16   :  { %170 = vmatpush.bf16.msra.mxu0 %v329_v10  ;;  %359 = vmatpush.bf16.msra.mxu2 %v329_v10 }
  0x17   :  { %189 = vmatpush.bf16.msra.mxu1 %v337_v11  ;;  %367 = vmatpush.bf16.msra.mxu3 %v337_v11 }
  0x1a   :  { %171 = vmatpush.bf16.msra.mxu0 %v328_v12  ;;  %360 = vmatpush.bf16.msra.mxu2 %v328_v12 }
  0x1b   :  { %190 = vmatpush.bf16.msra.mxu1 %v336_v13  ;;  %368 = vmatpush.bf16.msra.mxu3 %v336_v13 }
  0x1e   :  { %172 = vmatpush.bf16.msra.mxu0 %v327_v14  ;;  %361 = vmatpush.bf16.msra.mxu2 %v327_v14 }
  0x1f   :  { %191 = vmatpush.bf16.msra.mxu1 %v335_v15  ;;  %369 = vmatpush.bf16.msra.mxu3 %v335_v15 }
  0x21   :  { %173 = vmatmul.bf16.vlgmr.msra.gmra.mxu0 %v246_v24  ;;  %178 = vmatmul.bf16.vlgmr.msra.gmra.mxu2 %v254_v25 }
  0x22   :  { %192 = vmatmul.bf16.vlgmr.msra.gmra.mxu1 %v250_v26  ;;  %197 = vmatmul.bf16.vlgmr.msra.gmra.mxu3 %v258_v27 }
  0x9e   :  { %v174_v28 = vpop.f32.mrf.mxu0 }
  0x9f   :  { %v193_v29 = vpop.f32.mrf.mxu1 }
  0xa0   :  { %v194_v31 = vadd.f32 %v193_v29, %v174_v28 }
  0xa2   :  { %v221_v36 = vmul.f32 %v194_v31, %v194_v31 }
  0xa4   :  { %v179_v30 = vpop.f32.mrf.mxu2 }
  0xa5   :  { %v198_v32 = vpop.f32.mrf.mxu3 }
  0xa6   :  { %v176_v33 = vpop.f32.mrf.mxu0  ;;  %v199_v37 = vadd.f32 %v198_v32, %v179_v30 }
  0xa7   :  { %v195_v34 = vpop.f32.mrf.mxu1 }
  0xa8   :  { %v196_v35 = vadd.f32 %v195_v34, %v176_v33  ;;  %v223_v44 = vmul.f32 %v199_v37, %v199_v37 }
  0xaa   :  { %v346_v38 = vpack.c.bf16 %v196_v35, %v194_v31  ;;  %v211_v39 = vadd.f32 %v196_v35, %v194_v31  ;;  %v222_v40 = vmul.f32 %v196_v35, %v196_v35 }
  0xac   :  { %347 = vst [vmem:[%s476_s2] sm:$0xff] %v346_v38   ;;  %v225_v41 = vadd.f32 %v222_v40, %v221_v36  ;;  %v181_v42 = vpop.f32.mrf.mxu2  ;;  %v212_v46 = vadd.f32 %v211_v39, %v199_v37 }
  0xad   :  { %v200_v43 = vpop.f32.mrf.mxu3 }
  0xae   :  { %v201_v45 = vadd.f32 %v200_v43, %v181_v42  ;;  %v226_v50 = vadd.f32 %v225_v41, %v223_v44 }
  0xb0   :  { %v351_v47 = vpack.c.bf16 %v201_v45, %v199_v37  ;;  %v213_v48 = vadd.f32 %v212_v46, %v201_v45  ;;  %v224_v49 = vmul.f32 %v201_v45, %v201_v45 }
  0xb2   :  { %353 = vst [vmem:[%s476_s2 + $0x8] sm:$0xff] %v351_v47   ;;  %v214_v51 = vrot.slane %v213_v48, 4  ;;  %v227_v52 = vadd.f32 %v226_v50, %v224_v49 }
  0xb4   :  { %v215_v53 = vadd.f32 %v214_v51, %v213_v48  ;;  %v228_v54 = vrot.slane %v227_v52, 4 }
  0xb6   :  { %v216_v55 = vrot.slane %v215_v53, 2  ;;  %v229_v56 = vadd.f32 %v228_v54, %v227_v52 }
  0xb8   :  { %v217_v57 = vadd.f32 %v216_v55, %v215_v53  ;;  %v230_v58 = vrot.slane %v229_v56, 2 }
  0xba   :  { %v218_v59 = vrot.slane %v217_v57, 1  ;;  %v231_v60 = vadd.f32 %v230_v58, %v229_v56 }
  0xbc   :  { %v219_v61 = vadd.f32 %v218_v59, %v217_v57  ;;  %v232_v62 = vrot.slane %v231_v60, 1 }
  0xbe   :  { %220 = vst [vmem:[%s477_s3] sm:$0x1] %v219_v61  ;;  %v233_v63 = vadd.f32 %v232_v62, %v231_v60 }
  0xc0   :  { %234 = vst [vmem:[%s477_s3 + $0x1] sm:$0x1] %v233_v63 }

// kernel: _lambda_.30
= control target key start
LH: loop header
LB: loop body
LE: loop exit
PB: predicated region body
PF: predicated region fallthrough
CT: control target
= control target key end

     0   :  { %s106_s1 = inlined_call_operand.vmem [shape: f32[1,8,128], index: 1, kind: input, shape index: {}]   ;;  %s107_s2 = inlined_call_operand.vmem [shape: f32[1,128], index: 2, kind: input, shape index: {}]   ;;  %s108_s0 = inlined_call_operand.vmem [shape: bf16[8,128], index: 0, kind: input, shape index: {}]   ;;  %s109_s3 = inlined_call_operand.vmem [shape: f32[1,128], index: 3, kind: input, shape index: {}]   ;;  %s110_s4 = inlined_call_operand.vmem [shape: bf16[8,128], index: 4, kind: output, shape index: {}]  }
   0x1   :  { %v17_v0 = vld [vmem:[%s106_s1] sm:$0xff] }
   0x2   :  { %v19_v1 = vmul.f32 0.125, %v17_v0  ;;  %v26_v14 = vld [vmem:[%s107_s2] sm:$0x1] }
   0x3   :  { %v47_v16 = vld [vmem:[%s108_s0] sm:$0xf] }
   0x4   :  { %v20_v2 = vmul.f32 %v19_v1, %v19_v1  ;;  %v44_v18 = vld [vmem:[%s109_s3] sm:$0x1]  ;;  %v48_v20 = vunpack.c.l.bf16 %v47_v16 }
   0x6   :  { %v22_v3 = vrot.slane %v20_v2, 7 }
   0x8   :  { %v24_v4 = vsub.f32 %v19_v1, %v22_v3 }
   0xa   :  { %v25_v5 = vmax.f32 %v24_v4, 0.0 }
   0xc   :  { %v27_v6 = vadd.f32 1e-05, %v25_v5 }
   0xe   :  { %64 = vrsqrt.f32 %v27_v6  ;;  %vm34_vm0 = vweird.f32 %v27_v6 }
  0x14   :  { %v65_v7 = vpop.eup %64 }
  0x15   :  { %v29_v8 = vmul.f32 %v65_v7, %v27_v6  ;;  %vm35_vm1 = vweird.f32 %v65_v7 }
  0x16   :  { %vm36_vm2 = vmor %vm34_vm0, %vm35_vm1 }
  0x17   :  { %v30_v9 = vmul.f32 %v65_v7, %v29_v8 }
  0x19   :  { %v31_v10 = vmul.f32 0.5, %v30_v9 }
  0x1b   :  { %v32_v11 = vsub.f32 1.5, %v31_v10 }
  0x1d   :  { %v33_v12 = vmul.f32 %v65_v7, %v32_v11 }
  0x1f   :  { %v37_v13 = vsel %vm36_vm2, %v65_v7, %v33_v12 }
  0x20   :  { %39 = vst [vmem:[#allocation1] sm:$0xff] %v37_v13 }
  0x27   :  { %v41_v15 = vld [vmem:[#allocation1 + $0x1] ss:$9 sm:$0xff] }
  0x28   :  { %v43_v17 = vmul.f32 %v41_v15, %v26_v14 }
  0x2a   :  { %v45_v19 = vmul.f32 %v43_v17, %v19_v1  ;;  %v50_v21 = vperm.slane %v43_v17, 0 }
  0x2c   :  { %v46_v22 = vsub.f32 %v44_v18, %v45_v19  ;;  %v52_v23 = vmul.f32 %v50_v21, %v48_v20 }
  0x2e   :  { %v54_v24 = vperm.slane %v46_v22, 0 }
  0x30   :  { %v56_v25 = vadd.f32 %v54_v24, %v52_v23 }
  0x32   :  { %v57_v26 = vmax.f32 %v56_v25, 0.0 }
  0x34   :  { %v58_v27 = vpack.c.bf16 %v57_v26, %v57_v26 }
  0x36   :  { %59 = vst [vmem:[%s110_s4] sm:$0xf] %v58_v27 }

// kernel: _lambda_.29
= control target key start
LH: loop header
LB: loop body
LE: loop exit
PB: predicated region body
PF: predicated region fallthrough
CT: control target
= control target key end

     0   :  { %s509_s1 = inlined_call_operand.vmem [shape: bf16[384,128], index: 1, kind: input, shape index: {}]   ;;  %s510_s0 = inlined_call_operand.vmem [shape: bf16[8,384], index: 0, kind: input, shape index: {}]   ;;  %s511_s2 = inlined_call_operand.vmem [shape: bf16[8,128], index: 2, kind: output, shape index: {0}]   ;;  %s512_s3 = inlined_call_operand.vmem [shape: f32[1,8,128], index: 3, kind: output, shape index: {1}]  }
   0x1   :  { %v385_v0 = vld [vmem:[%s509_s1 + $0x38] sm:$0xff]  ;;  %v384_v3 = vld [vmem:[%s509_s1 + $0x30] sm:$0xff]  ;;  %v383_v6 = vld [vmem:[%s509_s1 + $0x28] sm:$0xff] }
   0x2   :  { %v393_v1 = vld [vmem:[%s509_s1 + $0x78] sm:$0xff]  ;;  %218 = vmatpush.bf16.msra.mxu0 %v385_v0  ;;  %v392_v4 = vld [vmem:[%s509_s1 + $0x70] sm:$0xff]  ;;  %v391_v7 = vld [vmem:[%s509_s1 + $0x68] sm:$0xff] }
   0x3   :  { %v401_v2 = vld [vmem:[%s509_s1 + $0xb8] sm:$0xff]  ;;  %231 = vmatpush.bf16.msra.mxu1 %v393_v1  ;;  %v400_v5 = vld [vmem:[%s509_s1 + $0xb0] sm:$0xff]  ;;  %v399_v8 = vld [vmem:[%s509_s1 + $0xa8] sm:$0xff] }
   0x4   :  { %244 = vmatpush.bf16.msra.mxu2 %v401_v2  ;;  %v382_v9 = vld [vmem:[%s509_s1 + $0x20] sm:$0xff]  ;;  %v381_v12 = vld [vmem:[%s509_s1 + $0x18] sm:$0xff]  ;;  %v380_v15 = vld [vmem:[%s509_s1 + $0x10] sm:$0xff] }
   0x5   :  { %v390_v10 = vld [vmem:[%s509_s1 + $0x60] sm:$0xff]  ;;  %v389_v13 = vld [vmem:[%s509_s1 + $0x58] sm:$0xff]  ;;  %v388_v16 = vld [vmem:[%s509_s1 + $0x50] sm:$0xff] }
   0x6   :  { %219 = vmatpush.bf16.msra.mxu0 %v384_v3  ;;  %v398_v11 = vld [vmem:[%s509_s1 + $0xa0] sm:$0xff]  ;;  %v397_v14 = vld [vmem:[%s509_s1 + $0x98] sm:$0xff]  ;;  %v396_v17 = vld [vmem:[%s509_s1 + $0x90] sm:$0xff] }
   0x7   :  { %232 = vmatpush.bf16.msra.mxu1 %v392_v4  ;;  %v379_v18 = vld [vmem:[%s509_s1 + $0x8] sm:$0xff]  ;;  %v13_v20 = vld [vmem:[%s510_s0] sm:$0xff] }
   0x8   :  { %245 = vmatpush.bf16.msra.mxu2 %v400_v5  ;;  %v387_v19 = vld [vmem:[%s509_s1 + $0x48] sm:$0xff]  ;;  %v65_v23 = vunpack.c.l.b16 %v13_v20  ;;  %v66_v24 = vunpack.c.h.b16 %v13_v20  ;;  %v378_v25 = vld [vmem:[%s509_s1] sm:$0xff] }
   0x9   :  { %v395_v21 = vld [vmem:[%s509_s1 + $0x88] sm:$0xff]  ;;  %v386_v26 = vld [vmem:[%s509_s1 + $0x40] sm:$0xff] }
   0xa   :  { %220 = vmatpush.bf16.msra.mxu0 %v383_v6  ;;  %v14_v22 = vld [vmem:[%s510_s0 + $0x8] sm:$0xf]  ;;  %v394_v28 = vld [vmem:[%s509_s1 + $0x80] sm:$0xff]  ;;  %v68_v29 = vpack.c.b16 %v65_v23, %v65_v23  ;;  %v69_v30 = vpack.c.b16 %v66_v24, %v66_v24 }
   0xb   :  { %233 = vmatpush.bf16.msra.mxu1 %v391_v7  ;;  %v67_v27 = vunpack.c.l.b16 %v14_v22 }
   0xc   :  { %246 = vmatpush.bf16.msra.mxu2 %v399_v8 }
   0xd   :  { %v70_v31 = vpack.c.b16 %v67_v27, %v67_v27 }
   0xe   :  { %221 = vmatpush.bf16.msra.mxu0 %v382_v9 }
   0xf   :  { %234 = vmatpush.bf16.msra.mxu1 %v390_v10 }
  0x10   :  { %247 = vmatpush.bf16.msra.mxu2 %v398_v11 }
  0x12   :  { %222 = vmatpush.bf16.msra.mxu0 %v381_v12 }
  0x13   :  { %235 = vmatpush.bf16.msra.mxu1 %v389_v13 }
  0x14   :  { %248 = vmatpush.bf16.msra.mxu2 %v397_v14 }
  0x16   :  { %223 = vmatpush.bf16.msra.mxu0 %v380_v15 }
  0x17   :  { %236 = vmatpush.bf16.msra.mxu1 %v388_v16 }
  0x18   :  { %249 = vmatpush.bf16.msra.mxu2 %v396_v17 }
  0x1a   :  { %224 = vmatpush.bf16.msra.mxu0 %v379_v18 }
  0x1b   :  { %237 = vmatpush.bf16.msra.mxu1 %v387_v19 }
  0x1c   :  { %250 = vmatpush.bf16.msra.mxu2 %v395_v21 }
  0x1e   :  { %225 = vmatpush.bf16.msra.mxu0 %v378_v25 }
  0x1f   :  { %238 = vmatpush.bf16.msra.mxu1 %v386_v26 }
  0x20   :  { %251 = vmatpush.bf16.msra.mxu2 %v394_v28 }
  0x21   :  { %226 = vmatmul.bf16.vlgmr.msra.gmra.mxu0 %v68_v29 }
  0x22   :  { %239 = vmatmul.bf16.vlgmr.msra.gmra.mxu1 %v69_v30 }
  0x23   :  { %252 = vmatmul.bf16.vlgmr.msra.gmra.mxu2 %v70_v31 }
  0x9e   :  { %v227_v32 = vpop.f32.mrf.mxu0 }
  0x9f   :  { %v240_v33 = vpop.f32.mrf.mxu1 }
  0xa0   :  { %v241_v34 = vadd.f32 %v240_v33, %v227_v32 }
  0xa6   :  { %v253_v35 = vpop.f32.mrf.mxu2  ;;  %v229_v37 = vpop.f32.mrf.mxu0 }
  0xa7   :  { %v254_v36 = vadd.f32 %v253_v35, %v241_v34  ;;  %v242_v38 = vpop.f32.mrf.mxu1 }
  0xa9   :  { %v257_v39 = vpack.c.bf16 %v254_v36, %v254_v36  ;;  %v259_v40 = vrot.slane %v254_v36, 4  ;;  %v266_v41 = vmul.f32 %v254_v36, %v254_v36 }
  0xab   :  { %258 = vst [vmem:[%s511_s2] sm:$0xf] %v257_v39  ;;  %v260_v42 = vadd.f32 %v259_v40, %v254_v36  ;;  %v267_v43 = vrot.slane %v266_v41, 4 }
  0xad   :  { %v261_v44 = vrot.slane %v260_v42, 2  ;;  %v268_v45 = vadd.f32 %v267_v43, %v266_v41 }
  0xae   :  { %v255_v46 = vpop.f32.mrf.mxu2 }
  0xaf   :  { %v262_v47 = vadd.f32 %v261_v44, %v260_v42  ;;  %v269_v48 = vrot.slane %v268_v45, 2 }
  0xb1   :  { %v263_v49 = vrot.slane %v262_v47, 1  ;;  %v270_v50 = vadd.f32 %v269_v48, %v268_v45 }
  0xb3   :  { %v264_v51 = vadd.f32 %v263_v49, %v262_v47  ;;  %v271_v52 = vrot.slane %v270_v50, 1 }
  0xb5   :  { %265 = vst [vmem:[%s512_s3] sm:$0x1] %v264_v51  ;;  %v272_v53 = vadd.f32 %v271_v52, %v270_v50 }
  0xb7   :  { %273 = vst [vmem:[%s512_s3 + $0x1] sm:$0x1] %v272_v53 }

// kernel: _lambda_.34
= control target key start
LH: loop header
LB: loop body
LE: loop exit
PB: predicated region body
PF: predicated region fallthrough
CT: control target
= control target key end

     0   :  { %s119_s2 = inlined_call_operand.vmem [shape: f32[1,8,128], index: 2, kind: input, shape index: {}]   ;;  %s120_s3 = inlined_call_operand.vmem [shape: f32[1,128], index: 3, kind: input, shape index: {}]   ;;  %s121_s0 = inlined_call_operand.vmem [shape: bf16[8,128], index: 0, kind: input, shape index: {}]   ;;  %s122_s4 = inlined_call_operand.vmem [shape: f32[1,128], index: 4, kind: input, shape index: {}]   ;;  %s123_s1 = inlined_call_operand.vmem [shape: bf16[8,128], index: 1, kind: input, shape index: {}]   ;;  %s124_s5 = inlined_call_operand.vmem [shape: bf16[8,128], index: 5, kind: output, shape index: {}]  }
   0x1   :  { %v20_v0 = vld [vmem:[%s119_s2] sm:$0xff] }
   0x2   :  { %v22_v1 = vmul.f32 0.125, %v20_v0  ;;  %v29_v14 = vld [vmem:[%s120_s3] sm:$0x1] }
   0x3   :  { %v50_v16 = vld [vmem:[%s121_s0] sm:$0xf] }
   0x4   :  { %v23_v2 = vmul.f32 %v22_v1, %v22_v1  ;;  %v47_v18 = vld [vmem:[%s122_s4] sm:$0x1]  ;;  %v51_v20 = vunpack.c.l.bf16 %v50_v16 }
   0x5   :  { %v60_v22 = vld [vmem:[%s123_s1] sm:$0xf] }
   0x6   :  { %v25_v3 = vrot.slane %v23_v2, 7  ;;  %v61_v26 = vunpack.c.l.bf16 %v60_v22 }
   0x8   :  { %v27_v4 = vsub.f32 %v22_v1, %v25_v3 }
   0xa   :  { %v28_v5 = vmax.f32 %v27_v4, 0.0 }
   0xc   :  { %v30_v6 = vadd.f32 1e-05, %v28_v5 }
   0xe   :  { %69 = vrsqrt.f32 %v30_v6  ;;  %vm37_vm0 = vweird.f32 %v30_v6 }
  0x14   :  { %v70_v7 = vpop.eup %69 }
  0x15   :  { %v32_v8 = vmul.f32 %v70_v7, %v30_v6  ;;  %vm38_vm1 = vweird.f32 %v70_v7 }
  0x16   :  { %vm39_vm2 = vmor %vm37_vm0, %vm38_vm1 }
  0x17   :  { %v33_v9 = vmul.f32 %v70_v7, %v32_v8 }
  0x19   :  { %v34_v10 = vmul.f32 0.5, %v33_v9 }
  0x1b   :  { %v35_v11 = vsub.f32 1.5, %v34_v10 }
  0x1d   :  { %v36_v12 = vmul.f32 %v70_v7, %v35_v11 }
  0x1f   :  { %v40_v13 = vsel %vm39_vm2, %v70_v7, %v36_v12 }
  0x20   :  { %42 = vst [vmem:[#allocation1] sm:$0xff] %v40_v13 }
  0x27   :  { %v44_v15 = vld [vmem:[#allocation1 + $0x1] ss:$9 sm:$0xff] }
  0x28   :  { %v46_v17 = vmul.f32 %v44_v15, %v29_v14 }
  0x2a   :  { %v48_v19 = vmul.f32 %v46_v17, %v22_v1  ;;  %v53_v21 = vperm.slane %v46_v17, 0 }
  0x2c   :  { %v49_v23 = vsub.f32 %v47_v18, %v48_v19  ;;  %v55_v24 = vmul.f32 %v53_v21, %v51_v20 }
  0x2e   :  { %v57_v25 = vperm.slane %v49_v23, 0 }
  0x30   :  { %v59_v27 = vadd.f32 %v57_v25, %v55_v24 }
  0x32   :  { %v62_v28 = vadd.f32 %v61_v26, %v59_v27 }
  0x34   :  { %v63_v29 = vpack.c.bf16 %v62_v28, %v62_v28 }
  0x36   :  { %64 = vst [vmem:[%s124_s5] sm:$0xf] %v63_v29 }

// kernel: tile.37
= control target key start
LH: loop header
LB: loop body
LE: loop exit
PB: predicated region body
PF: predicated region fallthrough
CT: control target
= control target key end

     0   :  { %s22_s0 = inlined_call_operand.vmem [shape: f32[32], index: 0, kind: input, shape index: {}]   ;;  %s23_s1 = inlined_call_operand.vmem [shape: f32[4,32], index: 1, kind: output, shape index: {}]  }
   0x1   :  { %v4_v0 = vld [vmem:[%s22_s0] ss:$0 sm:$0xff] }
   0x2   :  { %5 = vst [vmem:[%s23_s1] sm:$0xf] %v4_v0 }

// kernel: tile.39
= control target key start
LH: loop header
LB: loop body
LE: loop exit
PB: predicated region body
PF: predicated region fallthrough
CT: control target
= control target key end

     0   :  { %s37_s8 = smov 32   ;;  %s38_s9 = smov 64   ;;  %vm7_vm0 = vcmask 261120   ;;  %vm13_vm1 = vcmask 1048320   ;;  %vm19_vm2 = vcmask 785920   ;;  %vm25_vm3 = vcmask 523520   ;;  %s55_s0 = inlined_call_operand.vmem [shape: f32[4,32], index: 0, kind: input, shape index: {}]   ;;  %s56_s1 = inlined_call_operand.vmem [shape: f32[1,128], index: 1, kind: output, shape index: {}]  }
   0x1   :  { %v4_v0 = vld [vmem:[%s55_s0] sm:$0xf]  ;;  %s36_s0 = smov 96  }
   0x2   :  { %5 = vst [vmem:[#allocation1] sm:$0xf] %v4_v0 }
   0x9   :  { %v10_v1 = vld [vmem:[#allocation1 + $0x3] sm:$0x1]   ;;  %v22_v2 = vld [vmem:[#allocation1 + $0x1] sm:$0x1]   ;;  %v16_v3 = vld [vmem:[#allocation1 + $0x2] sm:$0x1]  }
   0xa   :  { %11 = vrot.lane.b32.xlu0 %v10_v1, %s36_s0  ;;  %23 = vrot.lane.b32.xlu1 %v22_v2, %s37_s8  ;;  %v6_v4 = vld [vmem:[#allocation1] sm:$0x1]  }
   0xb   :  { %8 = vst.msk [vmem:[#allocation0] sm:$0x1] %vm7_vm0, %v6_v4  }
  0x12   :  { %17 = vrot.lane.b32.xlu0 %v16_v3, %s38_s9 }
  0x7c   :  { %v12_v5 = vpop.permute.xlu0 %11   ;;  %v24_v6 = vpop.permute.xlu1 %23  }
  0x7d   :  { %14 = vst.msk [vmem:[#allocation0] sm:$0x1] %vm13_vm1, %v12_v5  }
  0x84   :  { %v18_v7 = vpop.permute.xlu0 %17  }
  0x85   :  { %20 = vst.msk [vmem:[#allocation0] sm:$0x1] %vm19_vm2, %v18_v7  }
  0x86   :  { %26 = vst.msk [vmem:[#allocation0] sm:$0x1] %vm25_vm3, %v24_v6  }
  0x8d   :  { %v29_v8 = vld [vmem:[#allocation0] sm:$0x1] }
  0x8e   :  { %32 = vst [vmem:[%s56_s1] sm:$0x1] %v29_v8 }

// kernel: _lambda_.31
= control target key start
LH: loop header
LB: loop body
LE: loop exit
PB: predicated region body
PF: predicated region fallthrough
CT: control target
= control target key end

     0   :  { %s802_s1 = inlined_call_operand.vmem [shape: bf16[640,128], index: 1, kind: input, shape index: {}]   ;;  %s803_s0 = inlined_call_operand.vmem [shape: bf16[8,640], index: 0, kind: input, shape index: {}]   ;;  %s804_s2 = inlined_call_operand.vmem [shape: bf16[8,128], index: 2, kind: output, shape index: {0}]   ;;  %s805_s3 = inlined_call_operand.vmem [shape: f32[1,8,128], index: 3, kind: output, shape index: {1}]  }
   0x1   :  { %v611_v0 = vld [vmem:[%s802_s1 + $0x38] sm:$0xff]  ;;  %v610_v3 = vld [vmem:[%s802_s1 + $0x30] sm:$0xff]  ;;  %v609_v8 = vld [vmem:[%s802_s1 + $0x28] sm:$0xff] }
   0x2   :  { %v627_v1 = vld [vmem:[%s802_s1 + $0xb8] sm:$0xff]  ;;  %354 = vmatpush.bf16.msra.mxu0 %v611_v0  ;;  %v626_v5 = vld [vmem:[%s802_s1 + $0xb0] sm:$0xff]  ;;  %v625_v9 = vld [vmem:[%s802_s1 + $0xa8] sm:$0xff] }
   0x3   :  { %v635_v2 = vld [vmem:[%s802_s1 + $0xf8] sm:$0xff]  ;;  %380 = vmatpush.bf16.msra.mxu2 %v627_v1  ;;  %v634_v6 = vld [vmem:[%s802_s1 + $0xf0] sm:$0xff]  ;;  %v633_v10 = vld [vmem:[%s802_s1 + $0xe8] sm:$0xff] }
   0x4   :  { %v619_v4 = vld [vmem:[%s802_s1 + $0x78] sm:$0xff]  ;;  %393 = vmatpush.bf16.msra.mxu3 %v635_v2  ;;  %v618_v7 = vld [vmem:[%s802_s1 + $0x70] sm:$0xff]  ;;  %v617_v11 = vld [vmem:[%s802_s1 + $0x68] sm:$0xff] }
   0x5   :  { %367 = vmatpush.bf16.msra.mxu1 %v619_v4  ;;  %v608_v12 = vld [vmem:[%s802_s1 + $0x20] sm:$0xff]  ;;  %v607_v16 = vld [vmem:[%s802_s1 + $0x18] sm:$0xff]  ;;  %v606_v20 = vld [vmem:[%s802_s1 + $0x10] sm:$0xff] }
   0x6   :  { %355 = vmatpush.bf16.msra.mxu0 %v610_v3  ;;  %v624_v13 = vld [vmem:[%s802_s1 + $0xa0] sm:$0xff]  ;;  %v623_v17 = vld [vmem:[%s802_s1 + $0x98] sm:$0xff]  ;;  %v622_v21 = vld [vmem:[%s802_s1 + $0x90] sm:$0xff] }
   0x7   :  { %381 = vmatpush.bf16.msra.mxu2 %v626_v5  ;;  %v632_v14 = vld [vmem:[%s802_s1 + $0xe0] sm:$0xff]  ;;  %v631_v18 = vld [vmem:[%s802_s1 + $0xd8] sm:$0xff]  ;;  %v630_v22 = vld [vmem:[%s802_s1 + $0xd0] sm:$0xff] }
   0x8   :  { %394 = vmatpush.bf16.msra.mxu3 %v634_v6  ;;  %v616_v15 = vld [vmem:[%s802_s1 + $0x60] sm:$0xff]  ;;  %v615_v19 = vld [vmem:[%s802_s1 + $0x58] sm:$0xff]  ;;  %v614_v23 = vld [vmem:[%s802_s1 + $0x50] sm:$0xff] }
   0x9   :  { %368 = vmatpush.bf16.msra.mxu1 %v618_v7  ;;  %v605_v24 = vld [vmem:[%s802_s1 + $0x8] sm:$0xff]  ;;  %v13_v25 = vld [vmem:[%s803_s0] sm:$0xff]  ;;  %v643_v33 = vld [vmem:[%s802_s1 + $0x138] sm:$0xff] }
   0xa   :  { %356 = vmatpush.bf16.msra.mxu0 %v609_v8  ;;  %v621_v26 = vld [vmem:[%s802_s1 + $0x88] sm:$0xff]  ;;  %v99_v30 = vunpack.c.l.b16 %v13_v25  ;;  %v604_v31 = vld [vmem:[%s802_s1] sm:$0xff]  ;;  %v100_v38 = vunpack.c.h.b16 %v13_v25  ;;  %v642_v41 = vld [vmem:[%s802_s1 + $0x130] sm:$0xff] }
   0xb   :  { %382 = vmatpush.bf16.msra.mxu2 %v625_v9  ;;  %v629_v27 = vld [vmem:[%s802_s1 + $0xc8] sm:$0xff]  ;;  %v620_v34 = vld [vmem:[%s802_s1 + $0x80] sm:$0xff]  ;;  %v639_v46 = vld [vmem:[%s802_s1 + $0x118] sm:$0xff] }
   0xc   :  { %395 = vmatpush.bf16.msra.mxu3 %v633_v10  ;;  %v14_v28 = vld [vmem:[%s803_s0 + $0x8] sm:$0xff]  ;;  %v628_v36 = vld [vmem:[%s802_s1 + $0xc0] sm:$0xff]  ;;  %v104_v39 = vpack.c.b16 %v99_v30, %v99_v30  ;;  %v105_v43 = vpack.c.b16 %v100_v38, %v100_v38  ;;  %v638_v47 = vld [vmem:[%s802_s1 + $0x110] sm:$0xff] }
   0xd   :  { %369 = vmatpush.bf16.msra.mxu1 %v617_v11  ;;  %v613_v29 = vld [vmem:[%s802_s1 + $0x48] sm:$0xff]  ;;  %v101_v32 = vunpack.c.l.b16 %v14_v28  ;;  %v102_v35 = vunpack.c.h.b16 %v14_v28  ;;  %v612_v37 = vld [vmem:[%s802_s1 + $0x40] sm:$0xff]  ;;  %v15_v49 = vld [vmem:[%s803_s0 + $0x10] sm:$0xf] }
   0xe   :  { %357 = vmatpush.bf16.msra.mxu0 %v608_v12  ;;  %v641_v44 = vld [vmem:[%s802_s1 + $0x128] sm:$0xff]  ;;  %v640_v45 = vld [vmem:[%s802_s1 + $0x120] sm:$0xff]  ;;  %v103_v50 = vunpack.c.l.b16 %v15_v49 }
   0xf   :  { %383 = vmatpush.bf16.msra.mxu2 %v624_v13  ;;  %v106_v40 = vpack.c.b16 %v101_v32, %v101_v32  ;;  %v107_v42 = vpack.c.b16 %v102_v35, %v102_v35  ;;  %v637_v48 = vld [vmem:[%s802_s1 + $0x108] sm:$0xff]  ;;  %v636_v51 = vld [vmem:[%s802_s1 + $0x100] sm:$0xff] }
  0x10   :  { %396 = vmatpush.bf16.msra.mxu3 %v632_v14  ;;  %v108_v52 = vpack.c.b16 %v103_v50, %v103_v50 }
  0x11   :  { %370 = vmatpush.bf16.msra.mxu1 %v616_v15 }
  0x12   :  { %358 = vmatpush.bf16.msra.mxu0 %v607_v16 }
  0x13   :  { %384 = vmatpush.bf16.msra.mxu2 %v623_v17 }
  0x14   :  { %397 = vmatpush.bf16.msra.mxu3 %v631_v18 }
  0x15   :  { %371 = vmatpush.bf16.msra.mxu1 %v615_v19 }
  0x16   :  { %359 = vmatpush.bf16.msra.mxu0 %v606_v20 }
  0x17   :  { %385 = vmatpush.bf16.msra.mxu2 %v622_v21 }
  0x18   :  { %398 = vmatpush.bf16.msra.mxu3 %v630_v22 }
  0x19   :  { %372 = vmatpush.bf16.msra.mxu1 %v614_v23 }
  0x1a   :  { %360 = vmatpush.bf16.msra.mxu0 %v605_v24 }
  0x1b   :  { %386 = vmatpush.bf16.msra.mxu2 %v621_v26 }
  0x1c   :  { %399 = vmatpush.bf16.msra.mxu3 %v629_v27 }
  0x1d   :  { %373 = vmatpush.bf16.msra.mxu1 %v613_v29 }
  0x1e   :  { %361 = vmatpush.bf16.msra.mxu0 %v604_v31 }
  0x1f   :  { %387 = vmatpush.bf16.msra.mxu2 %v620_v34 }
  0x20   :  { %400 = vmatpush.bf16.msra.mxu3 %v628_v36 }
  0x21   :  { %374 = vmatpush.bf16.msra.mxu1 %v612_v37  ;;  %362 = vmatmul.bf16.vlgmr.msra.gmra.mxu0 %v104_v39 }
  0x22   :  { %406 = vmatpush.bf16.msrb.mxu0 %v643_v33  ;;  %388 = vmatmul.bf16.vlgmr.msra.gmra.mxu2 %v106_v40 }
  0x23   :  { %401 = vmatmul.bf16.vlgmr.msra.gmra.mxu3 %v107_v42 }
  0x24   :  { %375 = vmatmul.bf16.vlgmr.msra.gmra.mxu1 %v105_v43 }
  0x26   :  { %407 = vmatpush.bf16.msrb.mxu0 %v642_v41 }
  0x2a   :  { %408 = vmatpush.bf16.msrb.mxu0 %v641_v44 }
  0x2e   :  { %409 = vmatpush.bf16.msrb.mxu0 %v640_v45 }
  0x32   :  { %410 = vmatpush.bf16.msrb.mxu0 %v639_v46 }
  0x36   :  { %411 = vmatpush.bf16.msrb.mxu0 %v638_v47 }
  0x3a   :  { %412 = vmatpush.bf16.msrb.mxu0 %v637_v48 }
  0x3e   :  { %413 = vmatpush.bf16.msrb.mxu0 %v636_v51 }
  0x41   :  { %414 = vmatmul.bf16.vlgmr.msrb.gmra.mxu0 %v108_v52 }
  0x9e   :  { %v363_v53 = vpop.f32.mrf.mxu0 }
  0xa1   :  { %v376_v54 = vpop.f32.mrf.mxu1 }
  0xa2   :  { %v377_v61 = vadd.f32 %v376_v54, %v363_v53 }
  0xa5   :  { %v389_v55 = vpop.f32.mrf.mxu2 }
  0xa6   :  { %v365_v56 = vpop.f32.mrf.mxu0  ;;  %v402_v57 = vpop.f32.mrf.mxu3  ;;  %v390_v62 = vadd.f32 %v389_v55, %v377_v61 }
  0xa8   :  { %v403_v63 = vadd.f32 %v402_v57, %v390_v62 }
  0xa9   :  { %v378_v58 = vpop.f32.mrf.mxu1 }
  0xad   :  { %v391_v59 = vpop.f32.mrf.mxu2 }
  0xae   :  { %v404_v60 = vpop.f32.mrf.mxu3 }
  0xbe   :  { %v415_v0 = vpop.f32.mrf.mxu0 }
  0xbf   :  { %v416_v1 = vadd.f32 %v415_v0, %v403_v63 }
  0xc1   :  { %v419_v2 = vpack.c.bf16 %v416_v1, %v416_v1  ;;  %v421_v3 = vrot.slane %v416_v1, 4  ;;  %v428_v4 = vmul.f32 %v416_v1, %v416_v1 }
  0xc3   :  { %420 = vst [vmem:[%s804_s2] sm:$0xf] %v419_v2  ;;  %v422_v5 = vadd.f32 %v421_v3, %v416_v1  ;;  %v429_v6 = vrot.slane %v428_v4, 4 }
  0xc5   :  { %v423_v7 = vrot.slane %v422_v5, 2  ;;  %v430_v8 = vadd.f32 %v429_v6, %v428_v4 }
  0xc6   :  { %v417_v9 = vpop.f32.mrf.mxu0 }
  0xc7   :  { %v424_v10 = vadd.f32 %v423_v7, %v422_v5  ;;  %v431_v11 = vrot.slane %v430_v8, 2 }
  0xc9   :  { %v425_v12 = vrot.slane %v424_v10, 1  ;;  %v432_v13 = vadd.f32 %v431_v11, %v430_v8 }
  0xcb   :  { %v426_v14 = vadd.f32 %v425_v12, %v424_v10  ;;  %v433_v15 = vrot.slane %v432_v13, 1 }
  0xcd   :  { %427 = vst [vmem:[%s805_s3] sm:$0x1] %v426_v14  ;;  %v434_v16 = vadd.f32 %v433_v15, %v432_v13 }
  0xcf   :  { %435 = vst [vmem:[%s805_s3 + $0x1] sm:$0x1] %v434_v16 }

// kernel: _lambda_.39
= control target key start
LH: loop header
LB: loop body
LE: loop exit
PB: predicated region body
PF: predicated region fallthrough
CT: control target
= control target key end

     0   :  { %s360_s1 = inlined_call_operand.vmem [shape: bf16[256,128], index: 1, kind: input, shape index: {}]   ;;  %s361_s0 = inlined_call_operand.vmem [shape: bf16[8,256], index: 0, kind: input, shape index: {}]   ;;  %s362_s2 = inlined_call_operand.vmem [shape: bf16[8,128], index: 2, kind: output, shape index: {0}]   ;;  %s363_s3 = inlined_call_operand.vmem [shape: f32[1,8,128], index: 3, kind: output, shape index: {1}]  }
   0x1   :  { %v271_v0 = vld [vmem:[%s360_s1 + $0x38] sm:$0xff]  ;;  %v270_v2 = vld [vmem:[%s360_s1 + $0x30] sm:$0xff]  ;;  %v269_v4 = vld [vmem:[%s360_s1 + $0x28] sm:$0xff] }
   0x2   :  { %v279_v1 = vld [vmem:[%s360_s1 + $0x78] sm:$0xff]  ;;  %149 = vmatpush.bf16.msra.mxu0 %v271_v0  ;;  %v278_v3 = vld [vmem:[%s360_s1 + $0x70] sm:$0xff]  ;;  %v277_v5 = vld [vmem:[%s360_s1 + $0x68] sm:$0xff] }
   0x3   :  { %162 = vmatpush.bf16.msra.mxu1 %v279_v1  ;;  %v268_v6 = vld [vmem:[%s360_s1 + $0x20] sm:$0xff]  ;;  %v267_v8 = vld [vmem:[%s360_s1 + $0x18] sm:$0xff]  ;;  %v266_v10 = vld [vmem:[%s360_s1 + $0x10] sm:$0xff] }
   0x4   :  { %v276_v7 = vld [vmem:[%s360_s1 + $0x60] sm:$0xff]  ;;  %v275_v9 = vld [vmem:[%s360_s1 + $0x58] sm:$0xff]  ;;  %v274_v11 = vld [vmem:[%s360_s1 + $0x50] sm:$0xff] }
   0x5   :  { %v265_v12 = vld [vmem:[%s360_s1 + $0x8] sm:$0xff]  ;;  %v13_v14 = vld [vmem:[%s361_s0] sm:$0xff] }
   0x6   :  { %150 = vmatpush.bf16.msra.mxu0 %v270_v2  ;;  %v273_v13 = vld [vmem:[%s360_s1 + $0x48] sm:$0xff]  ;;  %v47_v15 = vunpack.c.l.b16 %v13_v14  ;;  %v48_v16 = vunpack.c.h.b16 %v13_v14  ;;  %v264_v17 = vld [vmem:[%s360_s1] sm:$0xff] }
   0x7   :  { %163 = vmatpush.bf16.msra.mxu1 %v278_v3  ;;  %v272_v18 = vld [vmem:[%s360_s1 + $0x40] sm:$0xff] }
   0x8   :  { %v49_v19 = vpack.c.b16 %v47_v15, %v47_v15  ;;  %v50_v20 = vpack.c.b16 %v48_v16, %v48_v16 }
   0xa   :  { %151 = vmatpush.bf16.msra.mxu0 %v269_v4 }
   0xb   :  { %164 = vmatpush.bf16.msra.mxu1 %v277_v5 }
   0xe   :  { %152 = vmatpush.bf16.msra.mxu0 %v268_v6 }
   0xf   :  { %165 = vmatpush.bf16.msra.mxu1 %v276_v7 }
  0x12   :  { %153 = vmatpush.bf16.msra.mxu0 %v267_v8 }
  0x13   :  { %166 = vmatpush.bf16.msra.mxu1 %v275_v9 }
  0x16   :  { %154 = vmatpush.bf16.msra.mxu0 %v266_v10 }
  0x17   :  { %167 = vmatpush.bf16.msra.mxu1 %v274_v11 }
  0x1a   :  { %155 = vmatpush.bf16.msra.mxu0 %v265_v12 }
  0x1b   :  { %168 = vmatpush.bf16.msra.mxu1 %v273_v13 }
  0x1e   :  { %156 = vmatpush.bf16.msra.mxu0 %v264_v17 }
  0x1f   :  { %169 = vmatpush.bf16.msra.mxu1 %v272_v18 }
  0x21   :  { %157 = vmatmul.bf16.vlgmr.msra.gmra.mxu0 %v49_v19 }
  0x22   :  { %170 = vmatmul.bf16.vlgmr.msra.gmra.mxu1 %v50_v20 }
  0x9e   :  { %v158_v21 = vpop.f32.mrf.mxu0 }
  0x9f   :  { %v171_v22 = vpop.f32.mrf.mxu1 }
  0xa0   :  { %v172_v23 = vadd.f32 %v171_v22, %v158_v21 }
  0xa2   :  { %v175_v24 = vpack.c.bf16 %v172_v23, %v172_v23  ;;  %v177_v25 = vrot.slane %v172_v23, 4  ;;  %v184_v26 = vmul.f32 %v172_v23, %v172_v23 }
  0xa4   :  { %176 = vst [vmem:[%s362_s2] sm:$0xf] %v175_v24  ;;  %v178_v27 = vadd.f32 %v177_v25, %v172_v23  ;;  %v185_v28 = vrot.slane %v184_v26, 4 }
  0xa6   :  { %v179_v29 = vrot.slane %v178_v27, 2  ;;  %v186_v30 = vadd.f32 %v185_v28, %v184_v26  ;;  %v160_v31 = vpop.f32.mrf.mxu0 }
  0xa7   :  { %v173_v32 = vpop.f32.mrf.mxu1 }
  0xa8   :  { %v180_v33 = vadd.f32 %v179_v29, %v178_v27  ;;  %v187_v34 = vrot.slane %v186_v30, 2 }
  0xaa   :  { %v181_v35 = vrot.slane %v180_v33, 1  ;;  %v188_v36 = vadd.f32 %v187_v34, %v186_v30 }
  0xac   :  { %v182_v37 = vadd.f32 %v181_v35, %v180_v33  ;;  %v189_v38 = vrot.slane %v188_v36, 1 }
  0xae   :  { %183 = vst [vmem:[%s363_s3] sm:$0x1] %v182_v37  ;;  %v190_v39 = vadd.f32 %v189_v38, %v188_v36 }
  0xb0   :  { %191 = vst [vmem:[%s363_s3 + $0x1] sm:$0x1] %v190_v39 }

// kernel: tile.47
= control target key start
LH: loop header
LB: loop body
LE: loop exit
PB: predicated region body
PF: predicated region fallthrough
CT: control target
= control target key end

     0   :  { %s22_s0 = inlined_call_operand.vmem [shape: f32[16], index: 0, kind: input, shape index: {}]   ;;  %s23_s1 = inlined_call_operand.vmem [shape: f32[4,16], index: 1, kind: output, shape index: {}]  }
   0x1   :  { %v4_v0 = vld [vmem:[%s22_s0] ss:$0 sm:$0xff] }
   0x2   :  { %5 = vst [vmem:[%s23_s1] sm:$0xf] %v4_v0 }

// kernel: tile.49
= control target key start
LH: loop header
LB: loop body
LE: loop exit
PB: predicated region body
PF: predicated region fallthrough
CT: control target
= control target key end

     0   :  { %s37_s8 = smov 16   ;;  %s38_s9 = smov 32   ;;  %vm7_vm0 = vcmask 130048   ;;  %vm13_vm1 = vcmask 523648   ;;  %vm19_vm2 = vcmask 392448   ;;  %vm25_vm3 = vcmask 261248   ;;  %s55_s0 = inlined_call_operand.vmem [shape: f32[4,16], index: 0, kind: input, shape index: {}]   ;;  %s56_s1 = inlined_call_operand.vmem [shape: f32[1,64], index: 1, kind: output, shape index: {}]  }
   0x1   :  { %v4_v0 = vld [vmem:[%s55_s0] sm:$0xf]  ;;  %s36_s0 = smov 48  }
   0x2   :  { %5 = vst [vmem:[#allocation1] sm:$0xf] %v4_v0 }
   0x9   :  { %v10_v1 = vld [vmem:[#allocation1 + $0x3] sm:$0x1]   ;;  %v22_v2 = vld [vmem:[#allocation1 + $0x1] sm:$0x1]   ;;  %v16_v3 = vld [vmem:[#allocation1 + $0x2] sm:$0x1]  }
   0xa   :  { %11 = vrot.lane.b32.xlu0 %v10_v1, %s36_s0  ;;  %23 = vrot.lane.b32.xlu1 %v22_v2, %s37_s8  ;;  %v6_v4 = vld [vmem:[#allocation1] sm:$0x1]  }
   0xb   :  { %8 = vst.msk [vmem:[#allocation0] sm:$0x1] %vm7_vm0, %v6_v4  }
  0x12   :  { %17 = vrot.lane.b32.xlu0 %v16_v3, %s38_s9 }
  0x7c   :  { %v12_v5 = vpop.permute.xlu0 %11   ;;  %v24_v6 = vpop.permute.xlu1 %23  }
  0x7d   :  { %14 = vst.msk [vmem:[#allocation0] sm:$0x1] %vm13_vm1, %v12_v5  }
  0x84   :  { %v18_v7 = vpop.permute.xlu0 %17  }
  0x85   :  { %20 = vst.msk [vmem:[#allocation0] sm:$0x1] %vm19_vm2, %v18_v7  }
  0x86   :  { %26 = vst.msk [vmem:[#allocation0] sm:$0x1] %vm25_vm3, %v24_v6  }
  0x8d   :  { %v29_v8 = vld [vmem:[#allocation0] sm:$0x1] }
  0x8e   :  { %32 = vst [vmem:[%s56_s1] sm:$0x1] %v29_v8 }

// kernel: _lambda_.40
= control target key start
LH: loop header
LB: loop body
LE: loop exit
PB: predicated region body
PF: predicated region fallthrough
CT: control target
= control target key end

     0   :  { %s67_s0 = inlined_call_operand.vmem [shape: bf16[8,128], index: 0, kind: input, shape index: {}]   ;;  %s68_s1 = inlined_call_operand.vmem [shape: f32[1,128], index: 1, kind: input, shape index: {}]   ;;  %s69_s2 = inlined_call_operand.vmem [shape: f32[1,128], index: 2, kind: input, shape index: {}]   ;;  %s70_s3 = inlined_call_operand.vmem [shape: bf16[8,128], index: 3, kind: output, shape index: {}]  }
   0x1   :  { %v14_v0 = vld [vmem:[%s67_s0] sm:$0xf] }
   0x2   :  { %v33_v1 = vld [vmem:[%s68_s1] ss:$0 sm:$0xff]  ;;  %v15_v2 = vunpack.c.l.bf16 %v14_v0 }
   0x3   :  { %v34_v3 = vld [vmem:[%s69_s2] ss:$0 sm:$0xff] }
   0x4   :  { %v20_v4 = vmul.f32 %v33_v1, %v15_v2 }
   0x6   :  { %v25_v5 = vadd.f32 %v34_v3, %v20_v4 }
   0x8   :  { %v26_v6 = vmax.f32 %v25_v5, 0.0 }
   0xa   :  { %v27_v7 = vpack.c.bf16 %v26_v6, %v26_v6 }
   0xc   :  { %28 = vst [vmem:[%s70_s3] sm:$0xf] %v27_v7 }

// kernel: _lambda_.41
= control target key start
LH: loop header
LB: loop body
LE: loop exit
PB: predicated region body
PF: predicated region fallthrough
CT: control target
= control target key end

     0   :  { %s283_s1 = inlined_call_operand.vmem [shape: bf16[128,128], index: 1, kind: input, shape index: {}]   ;;  %s284_s0 = inlined_call_operand.vmem [shape: bf16[32,128], index: 0, kind: input, shape index: {}]   ;;  %s285_s2 = inlined_call_operand.vmem [shape: bf16[32,128], index: 2, kind: output, shape index: {0}]   ;;  %s286_s3 = inlined_call_operand.vmem [shape: f32[1,8,128], index: 3, kind: output, shape index: {1}]  }
   0x1   :  { %v201_v0 = vld [vmem:[%s283_s1 + $0x38] sm:$0xff]  ;;  %v200_v1 = vld [vmem:[%s283_s1 + $0x30] sm:$0xff]  ;;  %v199_v2 = vld [vmem:[%s283_s1 + $0x28] sm:$0xff] }
   0x2   :  { %93 = vmatpush.bf16.msra.mxu0 %v201_v0  ;;  %213 = vmatpush.bf16.msra.mxu1 %v201_v0  ;;  %v198_v3 = vld [vmem:[%s283_s1 + $0x20] sm:$0xff]  ;;  %v197_v4 = vld [vmem:[%s283_s1 + $0x18] sm:$0xff]  ;;  %v196_v5 = vld [vmem:[%s283_s1 + $0x10] sm:$0xff] }
   0x3   :  { %v195_v6 = vld [vmem:[%s283_s1 + $0x8] sm:$0xff]  ;;  %v194_v7 = vld [vmem:[%s283_s1] sm:$0xff] }
   0x4   :  { %v192_v8 = vld [vmem:[%s284_s0] sm:$0xff]  ;;  %v193_v9 = vld [vmem:[%s284_s0 + $0x8] sm:$0xff] }
   0x6   :  { %94 = vmatpush.bf16.msra.mxu0 %v200_v1  ;;  %214 = vmatpush.bf16.msra.mxu1 %v200_v1 }
   0xa   :  { %95 = vmatpush.bf16.msra.mxu0 %v199_v2  ;;  %215 = vmatpush.bf16.msra.mxu1 %v199_v2 }
   0xe   :  { %96 = vmatpush.bf16.msra.mxu0 %v198_v3  ;;  %216 = vmatpush.bf16.msra.mxu1 %v198_v3 }
  0x12   :  { %97 = vmatpush.bf16.msra.mxu0 %v197_v4  ;;  %217 = vmatpush.bf16.msra.mxu1 %v197_v4 }
  0x16   :  { %98 = vmatpush.bf16.msra.mxu0 %v196_v5  ;;  %218 = vmatpush.bf16.msra.mxu1 %v196_v5 }
  0x1a   :  { %99 = vmatpush.bf16.msra.mxu0 %v195_v6  ;;  %219 = vmatpush.bf16.msra.mxu1 %v195_v6 }
  0x1e   :  { %100 = vmatpush.bf16.msra.mxu0 %v194_v7  ;;  %220 = vmatpush.bf16.msra.mxu1 %v194_v7 }
  0x21   :  { %101 = vmatmul.bf16.vlgmr.msra.gmra.mxu0 %v192_v8  ;;  %106 = vmatmul.bf16.vlgmr.msra.gmra.mxu1 %v193_v9 }
  0x9e   :  { %v102_v10 = vpop.f32.mrf.mxu0  ;;  %v107_v11 = vpop.f32.mrf.mxu1 }
  0x9f   :  { %v130_v12 = vmul.f32 %v102_v10, %v102_v10  ;;  %v132_v19 = vmul.f32 %v107_v11, %v107_v11 }
  0xa6   :  { %v104_v13 = vpop.f32.mrf.mxu0  ;;  %v109_v14 = vpop.f32.mrf.mxu1 }
  0xa7   :  { %v205_v15 = vpack.c.bf16 %v104_v13, %v102_v10  ;;  %v120_v16 = vadd.f32 %v104_v13, %v102_v10  ;;  %v131_v17 = vmul.f32 %v104_v13, %v104_v13  ;;  %v210_v18 = vpack.c.bf16 %v109_v14, %v107_v11 }
  0xa8   :  { %v133_v23 = vmul.f32 %v109_v14, %v109_v14 }
  0xa9   :  { %206 = vst [vmem:[%s285_s2] sm:$0xff] %v205_v15   ;;  %v134_v20 = vadd.f32 %v131_v17, %v130_v12  ;;  %v121_v21 = vadd.f32 %v120_v16, %v107_v11 }
  0xaa   :  { %212 = vst [vmem:[%s285_s2 + $0x8] sm:$0xff] %v210_v18  }
  0xab   :  { %v122_v22 = vadd.f32 %v121_v21, %v109_v14  ;;  %v135_v24 = vadd.f32 %v134_v20, %v132_v19 }
  0xad   :  { %v123_v25 = vrot.slane %v122_v22, 4  ;;  %v136_v26 = vadd.f32 %v135_v24, %v133_v23 }
  0xaf   :  { %v124_v27 = vadd.f32 %v123_v25, %v122_v22  ;;  %v137_v28 = vrot.slane %v136_v26, 4 }
  0xb1   :  { %v125_v29 = vrot.slane %v124_v27, 2  ;;  %v138_v30 = vadd.f32 %v137_v28, %v136_v26 }
  0xb3   :  { %v126_v31 = vadd.f32 %v125_v29, %v124_v27  ;;  %v139_v32 = vrot.slane %v138_v30, 2 }
  0xb5   :  { %v127_v33 = vrot.slane %v126_v31, 1  ;;  %v140_v34 = vadd.f32 %v139_v32, %v138_v30 }
  0xb7   :  { %v128_v35 = vadd.f32 %v127_v33, %v126_v31  ;;  %v141_v36 = vrot.slane %v140_v34, 1 }
  0xb9   :  { %129 = vst [vmem:[%s286_s3] sm:$0x1] %v128_v35  ;;  %v142_v37 = vadd.f32 %v141_v36, %v140_v34 }
  0xbb   :  { %143 = vst [vmem:[%s286_s3 + $0x1] sm:$0x1] %v142_v37 }

// kernel: tile.57
= control target key start
LH: loop header
LB: loop body
LE: loop exit
PB: predicated region body
PF: predicated region fallthrough
CT: control target
= control target key end

     0   :  { %s22_s0 = inlined_call_operand.vmem [shape: f32[8], index: 0, kind: input, shape index: {}]   ;;  %s23_s1 = inlined_call_operand.vmem [shape: f32[4,8], index: 1, kind: output, shape index: {}]  }
   0x1   :  { %v4_v0 = vld [vmem:[%s22_s0] ss:$0 sm:$0xff] }
   0x2   :  { %5 = vst [vmem:[%s23_s1] sm:$0xf] %v4_v0 }

// kernel: tile.59
= control target key start
LH: loop header
LB: loop body
LE: loop exit
PB: predicated region body
PF: predicated region fallthrough
CT: control target
= control target key end

     0   :  { %s37_s8 = smov 8   ;;  %s38_s9 = smov 16   ;;  %vm7_vm0 = vcmask 64512   ;;  %vm13_vm1 = vcmask 261312   ;;  %vm19_vm2 = vcmask 195712   ;;  %vm25_vm3 = vcmask 130112   ;;  %s55_s0 = inlined_call_operand.vmem [shape: f32[4,8], index: 0, kind: input, shape index: {}]   ;;  %s56_s1 = inlined_call_operand.vmem [shape: f32[1,32], index: 1, kind: output, shape index: {}]  }
   0x1   :  { %v4_v0 = vld [vmem:[%s55_s0] sm:$0xf]  ;;  %s36_s0 = smov 24  }
   0x2   :  { %5 = vst [vmem:[#allocation1] sm:$0xf] %v4_v0 }
   0x9   :  { %v10_v1 = vld [vmem:[#allocation1 + $0x3] sm:$0x1]   ;;  %v22_v2 = vld [vmem:[#allocation1 + $0x1] sm:$0x1]   ;;  %v16_v3 = vld [vmem:[#allocation1 + $0x2] sm:$0x1]  }
   0xa   :  { %11 = vrot.lane.b32.xlu0 %v10_v1, %s36_s0  ;;  %23 = vrot.lane.b32.xlu1 %v22_v2, %s37_s8  ;;  %v6_v4 = vld [vmem:[#allocation1] sm:$0x1]  }
   0xb   :  { %8 = vst.msk [vmem:[#allocation0] sm:$0x1] %vm7_vm0, %v6_v4  }
  0x12   :  { %17 = vrot.lane.b32.xlu0 %v16_v3, %s38_s9 }
  0x7c   :  { %v12_v5 = vpop.permute.xlu0 %11   ;;  %v24_v6 = vpop.permute.xlu1 %23  }
  0x7d   :  { %14 = vst.msk [vmem:[#allocation0] sm:$0x1] %vm13_vm1, %v12_v5  }
  0x84   :  { %v18_v7 = vpop.permute.xlu0 %17  }
  0x85   :  { %20 = vst.msk [vmem:[#allocation0] sm:$0x1] %vm19_vm2, %v18_v7  }
  0x86   :  { %26 = vst.msk [vmem:[#allocation0] sm:$0x1] %vm25_vm3, %v24_v6  }
  0x8d   :  { %v29_v8 = vld [vmem:[#allocation0] sm:$0x1] }
  0x8e   :  { %32 = vst [vmem:[%s56_s1] sm:$0x1] %v29_v8 }

// kernel: _lambda_.42
= control target key start
LH: loop header
LB: loop body
LE: loop exit
PB: predicated region body
PF: predicated region fallthrough
CT: control target
= control target key end

     0   :  { %s114_s0 = inlined_call_operand.vmem [shape: bf16[32,128], index: 0, kind: input, shape index: {}]   ;;  %s115_s1 = inlined_call_operand.vmem [shape: f32[1,128], index: 1, kind: input, shape index: {}]   ;;  %s116_s2 = inlined_call_operand.vmem [shape: f32[1,128], index: 2, kind: input, shape index: {}]   ;;  %s117_s3 = inlined_call_operand.vmem [shape: bf16[32,128], index: 3, kind: output, shape index: {}]  }
   0x1   :  { %v55_v0 = vld [vmem:[%s114_s0] sm:$0xff]   ;;  %v72_v5 = vld [vmem:[%s114_s0 + $0x8] sm:$0xff]  }
   0x2   :  { %v74_v1 = vld [vmem:[%s115_s1] ss:$0 sm:$0xff]  ;;  %v56_v2 = vunpack.c.l.bf16 %v55_v0  ;;  %v57_v3 = vunpack.c.h.bf16 %v55_v0  ;;  %v60_v6 = vunpack.c.l.bf16 %v72_v5  ;;  %v61_v7 = vunpack.c.h.bf16 %v72_v5 }
   0x3   :  { %v75_v4 = vld [vmem:[%s116_s2] ss:$0 sm:$0xff] }
   0x4   :  { %v26_v8 = vmul.f32 %v74_v1, %v56_v2  ;;  %v27_v9 = vmul.f32 %v74_v1, %v57_v3  ;;  %v28_v10 = vmul.f32 %v74_v1, %v60_v6  ;;  %v29_v11 = vmul.f32 %v74_v1, %v61_v7 }
   0x6   :  { %v34_v12 = vadd.f32 %v75_v4, %v26_v8  ;;  %v35_v13 = vadd.f32 %v75_v4, %v27_v9  ;;  %v36_v14 = vadd.f32 %v75_v4, %v28_v10  ;;  %v37_v15 = vadd.f32 %v75_v4, %v29_v11 }
   0x8   :  { %v38_v16 = vmax.f32 %v34_v12, 0.0  ;;  %v39_v17 = vmax.f32 %v35_v13, 0.0  ;;  %v40_v18 = vmax.f32 %v36_v14, 0.0  ;;  %v41_v19 = vmax.f32 %v37_v15, 0.0 }
   0xa   :  { %v65_v20 = vpack.c.bf16 %v39_v17, %v38_v16  ;;  %v70_v21 = vpack.c.bf16 %v41_v19, %v40_v18 }
   0xc   :  { %66 = vst [vmem:[%s117_s3] sm:$0xff] %v65_v20  }
   0xd   :  { %73 = vst [vmem:[%s117_s3 + $0x8] sm:$0xff] %v70_v21  }

// kernel: _lambda_.44
= control target key start
LH: loop header
LB: loop body
LE: loop exit
PB: predicated region body
PF: predicated region fallthrough
CT: control target
= control target key end

     0   :  { %s336_s0 = inlined_call_operand.vmem [shape: bf16[128,128], index: 0, kind: input, shape index: {}]   ;;  %s337_s1 = inlined_call_operand.vmem [shape: f32[1,128], index: 1, kind: input, shape index: {}]   ;;  %s338_s2 = inlined_call_operand.vmem [shape: f32[1,128], index: 2, kind: input, shape index: {}]   ;;  %s339_s3 = inlined_call_operand.vmem [shape: bf16[128,128], index: 3, kind: output, shape index: {}]  }
   0x1   :  { %v139_v0 = vld [vmem:[%s336_s0] sm:$0xff]   ;;  %v210_v5 = vld [vmem:[%s336_s0 + $0x8] sm:$0xff]   ;;  %v211_v8 = vld [vmem:[%s336_s0 + $0x10] sm:$0xff]  }
   0x2   :  { %v252_v1 = vld [vmem:[%s337_s1] ss:$0 sm:$0xff]  ;;  %v140_v2 = vunpack.c.l.bf16 %v139_v0  ;;  %v141_v3 = vunpack.c.h.bf16 %v139_v0  ;;  %v144_v6 = vunpack.c.l.bf16 %v210_v5  ;;  %v145_v7 = vunpack.c.h.bf16 %v210_v5  ;;  %v212_v9 = vld [vmem:[%s336_s0 + $0x18] sm:$0xff]   ;;  %v214_v35 = vld [vmem:[%s336_s0 + $0x28] sm:$0xff]  }
   0x3   :  { %v257_v4 = vld [vmem:[%s338_s2] ss:$0 sm:$0xff]  ;;  %v148_v12 = vunpack.c.l.bf16 %v211_v8  ;;  %v149_v13 = vunpack.c.h.bf16 %v211_v8  ;;  %v152_v16 = vunpack.c.l.bf16 %v212_v9  ;;  %v153_v17 = vunpack.c.h.bf16 %v212_v9  ;;  %v215_v40 = vld [vmem:[%s336_s0 + $0x30] sm:$0xff]   ;;  %v216_v45 = vld [vmem:[%s336_s0 + $0x38] sm:$0xff]  }
   0x4   :  { %v50_v10 = vmul.f32 %v252_v1, %v140_v2  ;;  %v51_v11 = vmul.f32 %v252_v1, %v141_v3  ;;  %v52_v14 = vmul.f32 %v252_v1, %v144_v6  ;;  %v53_v15 = vmul.f32 %v252_v1, %v145_v7  ;;  %v213_v26 = vld [vmem:[%s336_s0 + $0x20] sm:$0xff]  }
   0x5   :  { %v54_v20 = vmul.f32 %v252_v1, %v148_v12  ;;  %v55_v21 = vmul.f32 %v252_v1, %v149_v13  ;;  %v56_v24 = vmul.f32 %v252_v1, %v152_v16  ;;  %v57_v25 = vmul.f32 %v252_v1, %v153_v17 }
   0x6   :  { %v70_v18 = vadd.f32 %v257_v4, %v50_v10  ;;  %v71_v19 = vadd.f32 %v257_v4, %v51_v11  ;;  %v72_v22 = vadd.f32 %v257_v4, %v52_v14  ;;  %v73_v23 = vadd.f32 %v257_v4, %v53_v15 }
   0x7   :  { %v74_v29 = vadd.f32 %v257_v4, %v54_v20  ;;  %v75_v30 = vadd.f32 %v257_v4, %v55_v21  ;;  %v76_v33 = vadd.f32 %v257_v4, %v56_v24  ;;  %v77_v34 = vadd.f32 %v257_v4, %v57_v25 }
   0x8   :  { %v86_v27 = vmax.f32 %v70_v18, 0.0  ;;  %v87_v28 = vmax.f32 %v71_v19, 0.0  ;;  %v88_v31 = vmax.f32 %v72_v22, 0.0  ;;  %v89_v32 = vmax.f32 %v73_v23, 0.0 }
   0x9   :  { %v90_v37 = vmax.f32 %v74_v29, 0.0  ;;  %v91_v38 = vmax.f32 %v75_v30, 0.0  ;;  %v156_v39 = vunpack.c.l.bf16 %v213_v26  ;;  %v92_v42 = vmax.f32 %v76_v33, 0.0 }
   0xa   :  { %v173_v36 = vpack.c.bf16 %v87_v28, %v86_v27  ;;  %v178_v41 = vpack.c.bf16 %v89_v32, %v88_v31  ;;  %v93_v43 = vmax.f32 %v77_v34, 0.0  ;;  %v157_v44 = vunpack.c.h.bf16 %v213_v26 }
   0xb   :  { %v183_v46 = vpack.c.bf16 %v91_v38, %v90_v37  ;;  %v58_v47 = vmul.f32 %v252_v1, %v156_v39  ;;  %v160_v48 = vunpack.c.l.bf16 %v214_v35  ;;  %v161_v49 = vunpack.c.h.bf16 %v214_v35 }
   0xc   :  { %174 = vst [vmem:[%s339_s3] sm:$0xff] %v173_v36   ;;  %v188_v50 = vpack.c.bf16 %v93_v43, %v92_v42  ;;  %v59_v51 = vmul.f32 %v252_v1, %v157_v44  ;;  %v164_v52 = vunpack.c.l.bf16 %v215_v40  ;;  %v165_v53 = vunpack.c.h.bf16 %v215_v40 }
   0xd   :  { %217 = vst [vmem:[%s339_s3 + $0x8] sm:$0xff] %v178_v41   ;;  %v78_v54 = vadd.f32 %v257_v4, %v58_v47  ;;  %v60_v55 = vmul.f32 %v252_v1, %v160_v48  ;;  %v61_v56 = vmul.f32 %v252_v1, %v161_v49  ;;  %v168_v57 = vunpack.c.l.bf16 %v216_v45 }
   0xe   :  { %218 = vst [vmem:[%s339_s3 + $0x10] sm:$0xff] %v183_v46   ;;  %v79_v58 = vadd.f32 %v257_v4, %v59_v51  ;;  %v62_v59 = vmul.f32 %v252_v1, %v164_v52  ;;  %v63_v60 = vmul.f32 %v252_v1, %v165_v53  ;;  %v169_v61 = vunpack.c.h.bf16 %v216_v45 }
   0xf   :  { %219 = vst [vmem:[%s339_s3 + $0x18] sm:$0xff] %v188_v50   ;;  %v94_v62 = vmax.f32 %v78_v54, 0.0  ;;  %v80_v63 = vadd.f32 %v257_v4, %v60_v55  ;;  %v81_v0 = vadd.f32 %v257_v4, %v61_v56  ;;  %v64_v2 = vmul.f32 %v252_v1, %v168_v57 }
  0x10   :  { %v95_v3 = vmax.f32 %v79_v58, 0.0  ;;  %v82_v5 = vadd.f32 %v257_v4, %v62_v59  ;;  %v83_v6 = vadd.f32 %v257_v4, %v63_v60  ;;  %v65_v7 = vmul.f32 %v252_v1, %v169_v61 }
  0x11   :  { %v96_v8 = vmax.f32 %v80_v63, 0.0  ;;  %v97_v9 = vmax.f32 %v81_v0, 0.0  ;;  %v84_v10 = vadd.f32 %v257_v4, %v64_v2 }
  0x12   :  { %v193_v11 = vpack.c.bf16 %v95_v3, %v94_v62  ;;  %v98_v12 = vmax.f32 %v82_v5, 0.0  ;;  %v99_v13 = vmax.f32 %v83_v6, 0.0  ;;  %v85_v14 = vadd.f32 %v257_v4, %v65_v7 }
  0x13   :  { %v198_v15 = vpack.c.bf16 %v97_v9, %v96_v8  ;;  %v100_v16 = vmax.f32 %v84_v10, 0.0 }
  0x14   :  { %220 = vst [vmem:[%s339_s3 + $0x20] sm:$0xff] %v193_v11   ;;  %v203_v17 = vpack.c.bf16 %v99_v13, %v98_v12  ;;  %v101_v18 = vmax.f32 %v85_v14, 0.0 }
  0x15   :  { %221 = vst [vmem:[%s339_s3 + $0x28] sm:$0xff] %v198_v15  }
  0x16   :  { %222 = vst [vmem:[%s339_s3 + $0x30] sm:$0xff] %v203_v17   ;;  %v208_v1 = vpack.c.bf16 %v101_v18, %v100_v16 }
  0x18   :  { %223 = vst [vmem:[%s339_s3 + $0x38] sm:$0xff] %v208_v1  }

// kernel: _lambda_.45
= control target key start
LH: loop header
LB: loop body
LE: loop exit
PB: predicated region body
PF: predicated region fallthrough
CT: control target
= control target key end

     0   :  { %s1891_s12 = smov 0   ;;  %s2209_s0 = inlined_call_operand.vmem [shape: bf16[512,512], index: 0, kind: input, shape index: {}]   ;;  %s2210_s1 = inlined_call_operand.vmem [shape: bf16[512,128], index: 1, kind: input, shape index: {}]   ;;  %s2211_s2 = inlined_call_operand.vmem [shape: f32[1,128], index: 2, kind: input, shape index: {}]   ;;  %s2212_s3 = inlined_call_operand.vmem [shape: f32[512,128], index: 3, kind: output, shape index: {}]  }
   0x1 LB: > { %s1297_s13 = sadd.s32 4294967295, %s1869_s12   ;;  %p1301_p0 = scmp.ge.s32.totalorder %s1869_s12, 1  ;;  %s1869_s12 = sphi %s1891_s12, %s13_s12  }
   0x2   : > { %p139_p1 = scmp.lt.s32.totalorder %s1869_s12, 3 }
   0x4   : > { %p140_p2 = pnand %p1301_p0, %p139_p1 }
   0x5   : > { %s1302_s11 = sshll.u32 (!%p140_p2), %s1297_s13, 5 }
   0x6   : > { %143 = sbr.rel (%p140_p2) target bundleno = 437 (0x1b5), region = 32  ;;  %p165_p3 = scmp.lt.s32.totalorder (!%p140_p2), %s1302_s11, 63 }
   0xb   : > { %v1765_v0 = vld [vmem:[%s2210_s1 + $0x38] sm:$0xff]  ;;  %v1764_v4 = vld [vmem:[%s2210_s1 + $0x30] sm:$0xff]  ;;  %v1763_v8 = vld [vmem:[%s2210_s1 + $0x28] sm:$0xff]  ;;  %s2214_s11 = smov (!%p165_p3, %s1302_s11), 63 }
   0xc   : > { %v1773_v1 = vld [vmem:[%s2210_s1 + $0x78] sm:$0xff]  ;;  %821 = vmatpush.bf16.msra.mxu0 %v1765_v0  ;;  %v1772_v5 = vld [vmem:[%s2210_s1 + $0x70] sm:$0xff]  ;;  %v1771_v9 = vld [vmem:[%s2210_s1 + $0x68] sm:$0xff]  ;;  %s1693_s10 = sshll.u32 %s2214_s11, 4  ;;  %s1306_s7 = sshll.u32 %s2214_s11, 3 }
   0xd   : > { %v1781_v2 = vld [vmem:[%s2210_s1 + $0xb8] sm:$0xff]  ;;  %910 = vmatpush.bf16.msra.mxu1 %v1773_v1  ;;  %v1780_v6 = vld [vmem:[%s2210_s1 + $0xb0] sm:$0xff]  ;;  %v1779_v10 = vld [vmem:[%s2210_s1 + $0xa8] sm:$0xff]  ;;  %s1983_s20 = scalar_lea.vmem %s2209_s0, %s1693_s10  ;;  %s2094_s10 = scalar_lea.vmem %s2212_s3, %s1306_s7 }
   0xe   : > { %v1789_v3 = vld [vmem:[%s2210_s1 + $0xf8] sm:$0xff]  ;;  %999 = vmatpush.bf16.msra.mxu2 %v1781_v2  ;;  %v1788_v7 = vld [vmem:[%s2210_s1 + $0xf0] sm:$0xff]  ;;  %v1787_v11 = vld [vmem:[%s2210_s1 + $0xe8] sm:$0xff] }
   0xf   : > { %1088 = vmatpush.bf16.msra.mxu3 %v1789_v3  ;;  %v1762_v12 = vld [vmem:[%s2210_s1 + $0x20] sm:$0xff]  ;;  %v1761_v16 = vld [vmem:[%s2210_s1 + $0x18] sm:$0xff]  ;;  %v1760_v20 = vld [vmem:[%s2210_s1 + $0x10] sm:$0xff] }
  0x10   : > { %822 = vmatpush.bf16.msra.mxu0 %v1764_v4  ;;  %v1770_v13 = vld [vmem:[%s2210_s1 + $0x60] sm:$0xff]  ;;  %v1769_v17 = vld [vmem:[%s2210_s1 + $0x58] sm:$0xff]  ;;  %v1768_v21 = vld [vmem:[%s2210_s1 + $0x50] sm:$0xff] }
  0x11   : > { %911 = vmatpush.bf16.msra.mxu1 %v1772_v5  ;;  %v1778_v14 = vld [vmem:[%s2210_s1 + $0xa0] sm:$0xff]  ;;  %v1777_v18 = vld [vmem:[%s2210_s1 + $0x98] sm:$0xff]  ;;  %v1776_v22 = vld [vmem:[%s2210_s1 + $0x90] sm:$0xff] }
  0x12   : > { %1000 = vmatpush.bf16.msra.mxu2 %v1780_v6  ;;  %v1786_v15 = vld [vmem:[%s2210_s1 + $0xe0] sm:$0xff]  ;;  %v1785_v19 = vld [vmem:[%s2210_s1 + $0xd8] sm:$0xff]  ;;  %v1784_v23 = vld [vmem:[%s2210_s1 + $0xd0] sm:$0xff] }
  0x13   : > { %1089 = vmatpush.bf16.msra.mxu3 %v1788_v7  ;;  %v1759_v24 = vld [vmem:[%s2210_s1 + $0x8] sm:$0xff]  ;;  %v1758_v28 = vld [vmem:[%s2210_s1] sm:$0xff]  ;;  %v1696_v33 = vld [vmem:[%s1983_s20 + $0xc] sm:$0xf0] }
  0x14   : > { %823 = vmatpush.bf16.msra.mxu0 %v1763_v8  ;;  %v1767_v25 = vld [vmem:[%s2210_s1 + $0x48] sm:$0xff]  ;;  %v1766_v29 = vld [vmem:[%s2210_s1 + $0x40] sm:$0xff]  ;;  %v1311_v35 = vld [vmem:[%s1983_s20 + $0x10] sm:$0xf0] }
  0x15   : > { %912 = vmatpush.bf16.msra.mxu1 %v1771_v9  ;;  %v1775_v26 = vld [vmem:[%s2210_s1 + $0x88] sm:$0xff]  ;;  %v1774_v30 = vld [vmem:[%s2210_s1 + $0x80] sm:$0xff]  ;;  %v1697_v37 = vld [vmem:[%s1983_s20 + $0x14] sm:$0xf0] }
  0x16   : > { %1001 = vmatpush.bf16.msra.mxu2 %v1779_v10  ;;  %v1783_v27 = vld [vmem:[%s2210_s1 + $0xc8] sm:$0xff]  ;;  %v1782_v31 = vld [vmem:[%s2210_s1 + $0xc0] sm:$0xff]  ;;  %v1319_v39 = vld [vmem:[%s1983_s20 + $0x18] sm:$0xf0] }
  0x17   : > { %1090 = vmatpush.bf16.msra.mxu3 %v1787_v11  ;;  %v1309_v32 = vld [vmem:[%s1983_s20] sm:$0xf]  ;;  %v1694_v34 = vld [vmem:[%s1983_s20 + $0x4] sm:$0xf]  ;;  %v1317_v36 = vld [vmem:[%s1983_s20 + $0x8] sm:$0xf] }
  0x18   : > { %824 = vmatpush.bf16.msra.mxu0 %v1762_v12  ;;  %v1695_v38 = vld [vmem:[%s1983_s20 + $0xc] sm:$0xf]  ;;  %v1310_v40 = vor.u32 %v1696_v33, %v1309_v32  ;;  %v1314_v41 = vor.u32 %v1694_v34, %v1311_v35  ;;  %v1318_v42 = vor.u32 %v1697_v37, %v1317_v36  ;;  %v1325_v44 = vld [vmem:[%s1983_s20 + $0x20] sm:$0xf]  ;;  %v1700_v45 = vld [vmem:[%s1983_s20 + $0x2c] sm:$0xf0] }
  0x19   : > { %913 = vmatpush.bf16.msra.mxu1 %v1770_v13  ;;  %v1322_v43 = vor.u32 %v1695_v38, %v1319_v39  ;;  %v1698_v46 = vld [vmem:[%s1983_s20 + $0x24] sm:$0xf]  ;;  %v1327_v47 = vld [vmem:[%s1983_s20 + $0x30] sm:$0xf0]  ;;  %v1333_v48 = vld [vmem:[%s1983_s20 + $0x28] sm:$0xf]  ;;  %v1326_v52 = vor.u32 %v1700_v45, %v1325_v44 }
  0x1a   : > { %1002 = vmatpush.bf16.msra.mxu2 %v1778_v14  ;;  %v1701_v49 = vld [vmem:[%s1983_s20 + $0x34] sm:$0xf0]  ;;  %v1699_v50 = vld [vmem:[%s1983_s20 + $0x2c] sm:$0xf]  ;;  %v1335_v51 = vld [vmem:[%s1983_s20 + $0x38] sm:$0xf0]  ;;  %v1330_v53 = vor.u32 %v1698_v46, %v1327_v47 }
  0x1b   : > { %1091 = vmatpush.bf16.msra.mxu3 %v1786_v15  ;;  %v1334_v54 = vor.u32 %v1701_v49, %v1333_v48  ;;  %v1338_v55 = vor.u32 %v1699_v50, %v1335_v51  ;;  %v1341_v56 = vld [vmem:[%s1983_s20 + $0x40] sm:$0xf]  ;;  %v1704_v57 = vld [vmem:[%s1983_s20 + $0x4c] sm:$0xf0]  ;;  %v1702_v58 = vld [vmem:[%s1983_s20 + $0x44] sm:$0xf] }
  0x1c   : > { %825 = vmatpush.bf16.msra.mxu0 %v1761_v16  ;;  %v1343_v59 = vld [vmem:[%s1983_s20 + $0x50] sm:$0xf0]  ;;  %v1349_v60 = vld [vmem:[%s1983_s20 + $0x48] sm:$0xf]  ;;  %v1705_v61 = vld [vmem:[%s1983_s20 + $0x54] sm:$0xf0]  ;;  %v1342_v0 = vor.u32 %v1704_v57, %v1341_v56 }
  0x1d   : > { %914 = vmatpush.bf16.msra.mxu1 %v1769_v17  ;;  %v1703_v62 = vld [vmem:[%s1983_s20 + $0x4c] sm:$0xf]  ;;  %v1351_v63 = vld [vmem:[%s1983_s20 + $0x58] sm:$0xf0]  ;;  %v1346_v1 = vor.u32 %v1702_v58, %v1343_v59  ;;  %v1350_v2 = vor.u32 %v1705_v61, %v1349_v60  ;;  %v1357_v4 = vld [vmem:[%s1983_s20 + $0x60] sm:$0xf] }
  0x1e   : > { %1003 = vmatpush.bf16.msra.mxu2 %v1777_v18  ;;  %v1354_v3 = vor.u32 %v1703_v62, %v1351_v63  ;;  %v1708_v5 = vld [vmem:[%s1983_s20 + $0x6c] sm:$0xf0]  ;;  %v1706_v6 = vld [vmem:[%s1983_s20 + $0x64] sm:$0xf]  ;;  %v1359_v7 = vld [vmem:[%s1983_s20 + $0x70] sm:$0xf0] }
  0x1f   : > { %1092 = vmatpush.bf16.msra.mxu3 %v1785_v19  ;;  %v1365_v8 = vld [vmem:[%s1983_s20 + $0x68] sm:$0xf]  ;;  %v1709_v9 = vld [vmem:[%s1983_s20 + $0x74] sm:$0xf0]  ;;  %v1707_v10 = vld [vmem:[%s1983_s20 + $0x6c] sm:$0xf]  ;;  %v1358_v12 = vor.u32 %v1708_v5, %v1357_v4  ;;  %v1362_v13 = vor.u32 %v1706_v6, %v1359_v7 }
  0x20   : > { %826 = vmatpush.bf16.msra.mxu0 %v1760_v20  ;;  %v1367_v11 = vld [vmem:[%s1983_s20 + $0x78] sm:$0xf0]  ;;  %v1366_v14 = vor.u32 %v1709_v9, %v1365_v8  ;;  %v1373_v16 = vld [vmem:[%s1983_s20 + $0x80] sm:$0xf]  ;;  %v1712_v17 = vld [vmem:[%s1983_s20 + $0x8c] sm:$0xf0] }
  0x21   : > { %915 = vmatpush.bf16.msra.mxu1 %v1768_v21  ;;  %v1370_v15 = vor.u32 %v1707_v10, %v1367_v11  ;;  %v1710_v18 = vld [vmem:[%s1983_s20 + $0x84] sm:$0xf]  ;;  %v1375_v19 = vld [vmem:[%s1983_s20 + $0x90] sm:$0xf0]  ;;  %v1381_v20 = vld [vmem:[%s1983_s20 + $0x88] sm:$0xf] }
  0x22   : > { %1004 = vmatpush.bf16.msra.mxu2 %v1776_v22  ;;  %v1713_v21 = vld [vmem:[%s1983_s20 + $0x94] sm:$0xf0]  ;;  %v1711_v22 = vld [vmem:[%s1983_s20 + $0x8c] sm:$0xf]  ;;  %v1397_v32 = vld [vmem:[%s1983_s20 + $0xa8] sm:$0xf] }
  0x23   : > { %1093 = vmatpush.bf16.msra.mxu3 %v1784_v23  ;;  %v1383_v23 = vld [vmem:[%s1983_s20 + $0x98] sm:$0xf0]  ;;  %v1717_v33 = vld [vmem:[%s1983_s20 + $0xb4] sm:$0xf0]  ;;  %v1715_v34 = vld [vmem:[%s1983_s20 + $0xac] sm:$0xf] }
  0x24   : > { %827 = vmatpush.bf16.msra.mxu0 %v1759_v24  ;;  %v1374_v24 = vor.u32 %v1712_v17, %v1373_v16  ;;  %v1399_v35 = vld [vmem:[%s1983_s20 + $0xb8] sm:$0xf0]  ;;  %v1398_v38 = vor.u32 %v1717_v33, %v1397_v32  ;;  %v1413_v44 = vld [vmem:[%s1983_s20 + $0xc8] sm:$0xf]  ;;  %v1721_v45 = vld [vmem:[%s1983_s20 + $0xd4] sm:$0xf0] }
  0x25   : > { %916 = vmatpush.bf16.msra.mxu1 %v1767_v25  ;;  %v1378_v25 = vor.u32 %v1710_v18, %v1375_v19  ;;  %v1402_v39 = vor.u32 %v1715_v34, %v1399_v35  ;;  %v1719_v46 = vld [vmem:[%s1983_s20 + $0xcc] sm:$0xf]  ;;  %v1415_v47 = vld [vmem:[%s1983_s20 + $0xd8] sm:$0xf0]  ;;  %v1414_v50 = vor.u32 %v1721_v45, %v1413_v44  ;;  %v1429_v56 = vld [vmem:[%s1983_s20 + $0xe8] sm:$0xf] }
  0x26   : > { %1005 = vmatpush.bf16.msra.mxu2 %v1775_v26  ;;  %v1382_v26 = vor.u32 %v1713_v21, %v1381_v20  ;;  %v1418_v51 = vor.u32 %v1719_v46, %v1415_v47  ;;  %v1725_v57 = vld [vmem:[%s1983_s20 + $0xf4] sm:$0xf0]  ;;  %v1723_v58 = vld [vmem:[%s1983_s20 + $0xec] sm:$0xf]  ;;  %v1431_v59 = vld [vmem:[%s1983_s20 + $0xf8] sm:$0xf0] }
  0x27   : > { %1094 = vmatpush.bf16.msra.mxu3 %v1783_v27  ;;  %v1386_v27 = vor.u32 %v1711_v22, %v1383_v23  ;;  %v1430_v62 = vor.u32 %v1725_v57, %v1429_v56  ;;  %v1434_v63 = vor.u32 %v1723_v58, %v1431_v59  ;;  %v1439_v4 = vld [vmem:[%s1983_s20 + $0x110] sm:$0xf0]  ;;  %v1445_v5 = vld [vmem:[%s1983_s20 + $0x108] sm:$0xf]  ;;  %v1729_v6 = vld [vmem:[%s1983_s20 + $0x114] sm:$0xf0] }
  0x28   : > { %828 = vmatpush.bf16.msra.mxu0 %v1758_v28  ;;  %v1389_v28 = vld [vmem:[%s1983_s20 + $0xa0] sm:$0xf]  ;;  %v1727_v7 = vld [vmem:[%s1983_s20 + $0x10c] sm:$0xf]  ;;  %v1447_v8 = vld [vmem:[%s1983_s20 + $0x118] sm:$0xf0] }
  0x29   : > { %917 = vmatpush.bf16.msra.mxu1 %v1766_v29  ;;  %v1716_v29 = vld [vmem:[%s1983_s20 + $0xac] sm:$0xf0]  ;;  %v1734_v56 = vld [vmem:[%s1983_s20 + $0x144] sm:$0xf]  ;;  %v1471_v57 = vld [vmem:[%s1983_s20 + $0x150] sm:$0xf0] }
  0x2a   : > { %1006 = vmatpush.bf16.msra.mxu2 %v1774_v30  ;;  %v1714_v30 = vld [vmem:[%s1983_s20 + $0xa4] sm:$0xf]  ;;  %v1390_v36 = vor.u32 %v1716_v29, %v1389_v28  ;;  %v1461_v28 = vld [vmem:[%s1983_s20 + $0x128] sm:$0xf]  ;;  %v1733_v29 = vld [vmem:[%s1983_s20 + $0x134] sm:$0xf0] }
  0x2b   : > { %1095 = vmatpush.bf16.msra.mxu3 %v1782_v31  ;;  %829 = vmatmul.bf16.vlgmr.msra.gmra.mxu0 %v1310_v40  ;;  %v1391_v31 = vld [vmem:[%s1983_s20 + $0xb0] sm:$0xf0]  ;;  %v1405_v40 = vld [vmem:[%s1983_s20 + $0xc0] sm:$0xf]  ;;  %v1477_v58 = vld [vmem:[%s1983_s20 + $0x148] sm:$0xf] }
  0x2c   : > { %918 = vmatmul.bf16.vlgmr.msra.gmra.mxu1 %v1314_v41  ;;  %v1394_v37 = vor.u32 %v1714_v30, %v1391_v31  ;;  %v1720_v41 = vld [vmem:[%s1983_s20 + $0xcc] sm:$0xf0]  ;;  %v1731_v30 = vld [vmem:[%s1983_s20 + $0x12c] sm:$0xf]  ;;  %v1463_v31 = vld [vmem:[%s1983_s20 + $0x138] sm:$0xf0] }
  0x2d   : > { %1007 = vmatmul.bf16.vlgmr.msra.gmra.mxu2 %v1318_v42  ;;  %v1718_v42 = vld [vmem:[%s1983_s20 + $0xc4] sm:$0xf]  ;;  %v1406_v48 = vor.u32 %v1720_v41, %v1405_v40  ;;  %v1462_v40 = vor.u32 %v1733_v29, %v1461_v28  ;;  %v1466_v41 = vor.u32 %v1731_v30, %v1463_v31  ;;  %v1737_v59 = vld [vmem:[%s1983_s20 + $0x154] sm:$0xf0]  ;;  %v1495_v28 = vld [vmem:[%s1983_s20 + $0x178] sm:$0xf0] }
  0x2e   : > { %1096 = vmatmul.bf16.vlgmr.msra.gmra.mxu3 %v1322_v43  ;;  %v1407_v43 = vld [vmem:[%s1983_s20 + $0xd0] sm:$0xf0] }
  0x2f   : > { %v1410_v49 = vor.u32 %v1718_v42, %v1407_v43 }
  0x3b   : > { %834 = vmatmul.bf16.gmra.mxu0 %v1326_v52  ;;  %v1421_v52 = vld [vmem:[%s1983_s20 + $0xe0] sm:$0xf] }
  0x3c   : > { %923 = vmatmul.bf16.gmra.mxu1 %v1330_v53  ;;  %v1724_v53 = vld [vmem:[%s1983_s20 + $0xec] sm:$0xf0] }
  0x3d   : > { %1012 = vmatmul.bf16.gmra.mxu2 %v1334_v54  ;;  %v1722_v54 = vld [vmem:[%s1983_s20 + $0xe4] sm:$0xf]  ;;  %v1422_v60 = vor.u32 %v1724_v53, %v1421_v52 }
  0x3e   : > { %1101 = vmatmul.bf16.gmra.mxu3 %v1338_v55  ;;  %v1423_v55 = vld [vmem:[%s1983_s20 + $0xf0] sm:$0xf0] }
  0x3f   : > { %v1426_v61 = vor.u32 %v1722_v54, %v1423_v55  ;;  %v1469_v54 = vld [vmem:[%s1983_s20 + $0x140] sm:$0xf]  ;;  %v1736_v55 = vld [vmem:[%s1983_s20 + $0x14c] sm:$0xf0] }
  0x4b   : > { %839 = vmatmul.bf16.gmra.mxu0 %v1342_v0  ;;  %v2070_v0 = vld [vmem:[%s2211_s2] ss:$0 sm:$0xff] }
  0x4c   : > { %928 = vmatmul.bf16.gmra.mxu1 %v1346_v1  ;;  %v1437_v1 = vld [vmem:[%s1983_s20 + $0x100] sm:$0xf] }
  0x4d   : > { %1017 = vmatmul.bf16.gmra.mxu2 %v1350_v2  ;;  %v1728_v2 = vld [vmem:[%s1983_s20 + $0x10c] sm:$0xf0] }
  0x4e   : > { %1106 = vmatmul.bf16.gmra.mxu3 %v1354_v3  ;;  %v1726_v3 = vld [vmem:[%s1983_s20 + $0x104] sm:$0xf]  ;;  %v1438_v9 = vor.u32 %v1728_v2, %v1437_v1  ;;  %v1470_v2 = vor.u32 %v1736_v55, %v1469_v54  ;;  %v1503_v54 = vld [vmem:[%s1983_s20 + $0x190] sm:$0xf0]  ;;  %v1509_v55 = vld [vmem:[%s1983_s20 + $0x188] sm:$0xf] }
  0x4f   : > { %v1442_v10 = vor.u32 %v1726_v3, %v1439_v4  ;;  %v1474_v3 = vor.u32 %v1734_v56, %v1471_v57  ;;  %v1745_v56 = vld [vmem:[%s1983_s20 + $0x194] sm:$0xf0]  ;;  %v1743_v57 = vld [vmem:[%s1983_s20 + $0x18c] sm:$0xf] }
  0x5b   : > { %844 = vmatmul.bf16.gmra.mxu0 %v1358_v12 }
  0x5c   : > { %933 = vmatmul.bf16.gmra.mxu1 %v1362_v13  ;;  %v1446_v13 = vor.u32 %v1729_v6, %v1445_v5 }
  0x5d   : > { %1022 = vmatmul.bf16.gmra.mxu2 %v1366_v14  ;;  %v1450_v14 = vor.u32 %v1727_v7, %v1447_v8  ;;  %v1478_v7 = vor.u32 %v1737_v59, %v1477_v58  ;;  %v1511_v58 = vld [vmem:[%s1983_s20 + $0x198] sm:$0xf0] }
  0x5e   : > { %1111 = vmatmul.bf16.gmra.mxu3 %v1370_v15 }
  0x6b   : > { %849 = vmatmul.bf16.gmra.mxu0 %v1374_v24  ;;  %v1453_v24 = vld [vmem:[%s1983_s20 + $0x120] sm:$0xf] }
  0x6c   : > { %938 = vmatmul.bf16.gmra.mxu1 %v1378_v25  ;;  %v1732_v25 = vld [vmem:[%s1983_s20 + $0x12c] sm:$0xf0] }
  0x6d   : > { %1027 = vmatmul.bf16.gmra.mxu2 %v1382_v26  ;;  %v1730_v26 = vld [vmem:[%s1983_s20 + $0x124] sm:$0xf]  ;;  %v1454_v35 = vor.u32 %v1732_v25, %v1453_v24  ;;  %v1487_v24 = vld [vmem:[%s1983_s20 + $0x170] sm:$0xf0]  ;;  %v1493_v25 = vld [vmem:[%s1983_s20 + $0x168] sm:$0xf] }
  0x6e   : > { %1116 = vmatmul.bf16.gmra.mxu3 %v1386_v27  ;;  %v1455_v27 = vld [vmem:[%s1983_s20 + $0x130] sm:$0xf0] }
  0x7b   : > { %854 = vmatmul.bf16.gmra.mxu0 %v1390_v36  ;;  %v1458_v36 = vor.u32 %v1730_v26, %v1455_v27  ;;  %v1741_v26 = vld [vmem:[%s1983_s20 + $0x174] sm:$0xf0]  ;;  %v1739_v27 = vld [vmem:[%s1983_s20 + $0x16c] sm:$0xf] }
  0x7c   : > { %943 = vmatmul.bf16.gmra.mxu1 %v1394_v37 }
  0x7d   : > { %1032 = vmatmul.bf16.gmra.mxu2 %v1398_v38 }
  0x7e   : > { %1121 = vmatmul.bf16.gmra.mxu3 %v1402_v39 }
  0x8b   : > { %859 = vmatmul.bf16.gmra.mxu0 %v1406_v48 }
  0x8c   : > { %948 = vmatmul.bf16.gmra.mxu1 %v1410_v49 }
  0x8d   : > { %1037 = vmatmul.bf16.gmra.mxu2 %v1414_v50 }
  0x8e   : > { %1126 = vmatmul.bf16.gmra.mxu3 %v1418_v51 }
  0x9b   : > { %864 = vmatmul.bf16.gmra.mxu0 %v1422_v60  ;;  %v1735_v60 = vld [vmem:[%s1983_s20 + $0x14c] sm:$0xf] }
  0x9c   : > { %953 = vmatmul.bf16.gmra.mxu1 %v1426_v61  ;;  %v1479_v61 = vld [vmem:[%s1983_s20 + $0x158] sm:$0xf0] }
  0x9d   : > { %1042 = vmatmul.bf16.gmra.mxu2 %v1430_v62  ;;  %v1482_v8 = vor.u32 %v1735_v60, %v1479_v61 }
  0x9e   : > { %1131 = vmatmul.bf16.gmra.mxu3 %v1434_v63 }
  0xa8   : > { %v830_v11 = vpop.f32.mrf.mxu0 }
  0xa9   : > { %v919_v12 = vpop.f32.mrf.mxu1  ;;  %v831_v15 = vadd.f32 %v2070_v0, %v830_v11 }
  0xab   : > { %869 = vmatmul.bf16.gmra.mxu0 %v1438_v9  ;;  %v920_v16 = vadd.f32 %v919_v12, %v831_v15 }
  0xac   : > { %958 = vmatmul.bf16.gmra.mxu1 %v1442_v10 }
  0xad   : > { %1047 = vmatmul.bf16.gmra.mxu2 %v1446_v13 }
  0xae   : > { %1136 = vmatmul.bf16.gmra.mxu3 %v1450_v14 }
  0xb0   : > { %v1008_v17 = vpop.f32.mrf.mxu2  ;;  %v832_v20 = vpop.f32.mrf.mxu0 }
  0xb1   : > { %v1097_v18 = vpop.f32.mrf.mxu3  ;;  %v1009_v19 = vadd.f32 %v1008_v17, %v920_v16  ;;  %v921_v21 = vpop.f32.mrf.mxu1  ;;  %v833_v23 = vadd.f32 %v2070_v0, %v832_v20 }
  0xb3   : > { %v1098_v22 = vadd.f32 %v1097_v18, %v1009_v19  ;;  %v922_v32 = vadd.f32 %v921_v21, %v833_v23  ;;  %v1485_v21 = vld [vmem:[%s1983_s20 + $0x160] sm:$0xf]  ;;  %v1738_v23 = vld [vmem:[%s1983_s20 + $0x164] sm:$0xf] }
  0xb5   : > { %1799 = vtanh.f32 %v1098_v22  ;;  %v1740_v22 = vld [vmem:[%s1983_s20 + $0x16c] sm:$0xf0] }
  0xb8   : > { %v1010_v33 = vpop.f32.mrf.mxu2  ;;  %v835_v38 = vpop.f32.mrf.mxu0 }
  0xb9   : > { %v1099_v34 = vpop.f32.mrf.mxu3  ;;  %v1011_v37 = vadd.f32 %v1010_v33, %v922_v32  ;;  %v924_v39 = vpop.f32.mrf.mxu1  ;;  %v836_v42 = vadd.f32 %v2070_v0, %v835_v38  ;;  %v1486_v32 = vor.u32 %v1740_v22, %v1485_v21  ;;  %v1490_v33 = vor.u32 %v1738_v23, %v1487_v24  ;;  %v1519_v21 = vld [vmem:[%s1983_s20 + $0x1b0] sm:$0xf0]  ;;  %v1525_v22 = vld [vmem:[%s1983_s20 + $0x1a8] sm:$0xf]  ;;  %v1749_v23 = vld [vmem:[%s1983_s20 + $0x1b4] sm:$0xf0] }
  0xba   : > { %v1498_v38 = vor.u32 %v1739_v27, %v1495_v28  ;;  %v1747_v24 = vld [vmem:[%s1983_s20 + $0x1ac] sm:$0xf] }
  0xbb   : > { %v1800_v43 = vpop.eup %1799  ;;  %v1100_v44 = vadd.f32 %v1099_v34, %v1011_v37  ;;  %874 = vmatmul.bf16.gmra.mxu0 %v1454_v35  ;;  %v925_v45 = vadd.f32 %v924_v39, %v836_v42  ;;  %v1494_v37 = vor.u32 %v1741_v26, %v1493_v25  ;;  %v1527_v25 = vld [vmem:[%s1983_s20 + $0x1b8] sm:$0xf0] }
  0xbc   : > { %1209 = vst [vmem:[%s2094_s10] sm:$0xff] %v1800_v43  ;;  %963 = vmatmul.bf16.gmra.mxu1 %v1458_v36 }
  0xbd   : > { %1801 = vtanh.f32 %v1100_v44  ;;  %1052 = vmatmul.bf16.gmra.mxu2 %v1462_v40 }
  0xbe   : > { %1141 = vmatmul.bf16.gmra.mxu3 %v1466_v41 }
  0xc0   : > { %v1013_v46 = vpop.f32.mrf.mxu2  ;;  %v837_v49 = vpop.f32.mrf.mxu0 }
  0xc1   : > { %v1102_v47 = vpop.f32.mrf.mxu3  ;;  %v1014_v48 = vadd.f32 %v1013_v46, %v925_v45  ;;  %v926_v50 = vpop.f32.mrf.mxu1  ;;  %v838_v53 = vadd.f32 %v2070_v0, %v837_v49 }
  0xc3   : > { %v1802_v51 = vpop.eup %1801  ;;  %v1103_v52 = vadd.f32 %v1102_v47, %v1014_v48  ;;  %v927_v62 = vadd.f32 %v926_v50, %v838_v53  ;;  %v1742_v53 = vld [vmem:[%s1983_s20 + $0x184] sm:$0xf] }
  0xc4   : > { %1210 = vst [vmem:[%s2094_s10 + $0x8] sm:$0xff] %v1802_v51  ;;  %v1501_v51 = vld [vmem:[%s1983_s20 + $0x180] sm:$0xf] }
  0xc5   : > { %1803 = vtanh.f32 %v1103_v52  ;;  %v1744_v52 = vld [vmem:[%s1983_s20 + $0x18c] sm:$0xf0] }
  0xc8   : > { %v1015_v63 = vpop.f32.mrf.mxu2  ;;  %v840_v5 = vpop.f32.mrf.mxu0 }
  0xc9   : > { %v1104_v1 = vpop.f32.mrf.mxu3  ;;  %v1016_v4 = vadd.f32 %v1015_v63, %v927_v62  ;;  %v929_v6 = vpop.f32.mrf.mxu1  ;;  %v841_v9 = vadd.f32 %v2070_v0, %v840_v5  ;;  %v1502_v62 = vor.u32 %v1744_v52, %v1501_v51  ;;  %v1506_v63 = vor.u32 %v1742_v53, %v1503_v54  ;;  %v1535_v51 = vld [vmem:[%s1983_s20 + $0x1d0] sm:$0xf0]  ;;  %v1541_v52 = vld [vmem:[%s1983_s20 + $0x1c8] sm:$0xf]  ;;  %v1753_v53 = vld [vmem:[%s1983_s20 + $0x1d4] sm:$0xf0] }
  0xca   : > { %v1514_v5 = vor.u32 %v1743_v57, %v1511_v58  ;;  %v1751_v54 = vld [vmem:[%s1983_s20 + $0x1cc] sm:$0xf] }
  0xcb   : > { %v1804_v10 = vpop.eup %1803  ;;  %v1105_v11 = vadd.f32 %v1104_v1, %v1016_v4  ;;  %879 = vmatmul.bf16.gmra.mxu0 %v1470_v2  ;;  %v930_v12 = vadd.f32 %v929_v6, %v841_v9  ;;  %v1510_v4 = vor.u32 %v1745_v56, %v1509_v55  ;;  %v1543_v55 = vld [vmem:[%s1983_s20 + $0x1d8] sm:$0xf0] }
  0xcc   : > { %1211 = vst [vmem:[%s2094_s10 + $0x10] sm:$0xff] %v1804_v10  ;;  %968 = vmatmul.bf16.gmra.mxu1 %v1474_v3 }
  0xcd   : > { %1805 = vtanh.f32 %v1105_v11  ;;  %1057 = vmatmul.bf16.gmra.mxu2 %v1478_v7 }
  0xce   : > { %1146 = vmatmul.bf16.gmra.mxu3 %v1482_v8 }
  0xd0   : > { %v1018_v13 = vpop.f32.mrf.mxu2  ;;  %v842_v16 = vpop.f32.mrf.mxu0 }
  0xd1   : > { %v1107_v14 = vpop.f32.mrf.mxu3  ;;  %v1019_v15 = vadd.f32 %v1018_v13, %v930_v12  ;;  %v931_v17 = vpop.f32.mrf.mxu1  ;;  %v843_v20 = vadd.f32 %v2070_v0, %v842_v16 }
  0xd3   : > { %v1806_v18 = vpop.eup %1805  ;;  %v1108_v19 = vadd.f32 %v1107_v14, %v1019_v15  ;;  %v932_v29 = vadd.f32 %v931_v17, %v843_v20  ;;  %v1746_v20 = vld [vmem:[%s1983_s20 + $0x1a4] sm:$0xf] }
  0xd4   : > { %1212 = vst [vmem:[%s2094_s10 + $0x18] sm:$0xff] %v1806_v18  ;;  %v1517_v18 = vld [vmem:[%s1983_s20 + $0x1a0] sm:$0xf] }
  0xd5   : > { %1807 = vtanh.f32 %v1108_v19  ;;  %v1748_v19 = vld [vmem:[%s1983_s20 + $0x1ac] sm:$0xf0] }
  0xd8   : > { %v1020_v30 = vpop.f32.mrf.mxu2  ;;  %v845_v35 = vpop.f32.mrf.mxu0 }
  0xd9   : > { %v1109_v31 = vpop.f32.mrf.mxu3  ;;  %v1021_v34 = vadd.f32 %v1020_v30, %v932_v29  ;;  %v934_v36 = vpop.f32.mrf.mxu1  ;;  %v846_v39 = vadd.f32 %v2070_v0, %v845_v35  ;;  %v1518_v29 = vor.u32 %v1748_v19, %v1517_v18  ;;  %v1522_v30 = vor.u32 %v1746_v20, %v1519_v21  ;;  %v1551_v18 = vld [vmem:[%s1983_s20 + $0x1f0] sm:$0xf0]  ;;  %v1557_v19 = vld [vmem:[%s1983_s20 + $0x1e8] sm:$0xf]  ;;  %v1757_v20 = vld [vmem:[%s1983_s20 + $0x1f4] sm:$0xf0] }
  0xda   : > { %v1530_v35 = vor.u32 %v1747_v24, %v1527_v25  ;;  %v1755_v21 = vld [vmem:[%s1983_s20 + $0x1ec] sm:$0xf] }
  0xdb   : > { %v1808_v40 = vpop.eup %1807  ;;  %v1110_v41 = vadd.f32 %v1109_v31, %v1021_v34  ;;  %884 = vmatmul.bf16.gmra.mxu0 %v1486_v32  ;;  %v935_v42 = vadd.f32 %v934_v36, %v846_v39  ;;  %v1526_v34 = vor.u32 %v1749_v23, %v1525_v22  ;;  %v1559_v22 = vld [vmem:[%s1983_s20 + $0x1f8] sm:$0xf0] }
  0xdc   : > { %1213 = vst [vmem:[%s2094_s10 + $0x20] sm:$0xff] %v1808_v40  ;;  %973 = vmatmul.bf16.gmra.mxu1 %v1490_v33 }
  0xdd   : > { %1809 = vtanh.f32 %v1110_v41  ;;  %1062 = vmatmul.bf16.gmra.mxu2 %v1494_v37 }
  0xde   : > { %1151 = vmatmul.bf16.gmra.mxu3 %v1498_v38 }
  0xe0   : > { %v1023_v43 = vpop.f32.mrf.mxu2  ;;  %v847_v46 = vpop.f32.mrf.mxu0 }
  0xe1   : > { %v1112_v44 = vpop.f32.mrf.mxu3  ;;  %v1024_v45 = vadd.f32 %v1023_v43, %v935_v42  ;;  %v936_v47 = vpop.f32.mrf.mxu1  ;;  %v848_v50 = vadd.f32 %v2070_v0, %v847_v46 }
  0xe3   : > { %v1810_v48 = vpop.eup %1809  ;;  %v1113_v49 = vadd.f32 %v1112_v44, %v1024_v45  ;;  %v937_v59 = vadd.f32 %v936_v47, %v848_v50  ;;  %v1750_v50 = vld [vmem:[%s1983_s20 + $0x1c4] sm:$0xf] }
  0xe4   : > { %1214 = vst [vmem:[%s2094_s10 + $0x28] sm:$0xff] %v1810_v48  ;;  %v1533_v48 = vld [vmem:[%s1983_s20 + $0x1c0] sm:$0xf] }
  0xe5   : > { %1811 = vtanh.f32 %v1113_v49  ;;  %v1752_v49 = vld [vmem:[%s1983_s20 + $0x1cc] sm:$0xf0] }
  0xe8   : > { %v1025_v60 = vpop.f32.mrf.mxu2  ;;  %v850_v2 = vpop.f32.mrf.mxu0 }
  0xe9   : > { %v1114_v61 = vpop.f32.mrf.mxu3  ;;  %v1026_v1 = vadd.f32 %v1025_v60, %v937_v59  ;;  %v939_v3 = vpop.f32.mrf.mxu1  ;;  %v851_v6 = vadd.f32 %v2070_v0, %v850_v2  ;;  %v1534_v59 = vor.u32 %v1752_v49, %v1533_v48  ;;  %v1538_v60 = vor.u32 %v1750_v50, %v1535_v51 }
  0xea   : > { %v1546_v2 = vor.u32 %v1751_v54, %v1543_v55 }
  0xeb   : > { %v1812_v7 = vpop.eup %1811  ;;  %v1115_v8 = vadd.f32 %v1114_v61, %v1026_v1  ;;  %889 = vmatmul.bf16.gmra.mxu0 %v1502_v62  ;;  %v940_v9 = vadd.f32 %v939_v3, %v851_v6  ;;  %v1542_v1 = vor.u32 %v1753_v53, %v1541_v52 }
  0xec   : > { %1215 = vst [vmem:[%s2094_s10 + $0x30] sm:$0xff] %v1812_v7  ;;  %978 = vmatmul.bf16.gmra.mxu1 %v1506_v63 }
  0xed   : > { %1813 = vtanh.f32 %v1115_v8  ;;  %1067 = vmatmul.bf16.gmra.mxu2 %v1510_v4 }
  0xee   : > { %1156 = vmatmul.bf16.gmra.mxu3 %v1514_v5 }
  0xf0   : > { %v1028_v10 = vpop.f32.mrf.mxu2  ;;  %v852_v13 = vpop.f32.mrf.mxu0 }
  0xf1   : > { %v1117_v11 = vpop.f32.mrf.mxu3  ;;  %v1029_v12 = vadd.f32 %v1028_v10, %v940_v9  ;;  %v941_v14 = vpop.f32.mrf.mxu1  ;;  %v853_v17 = vadd.f32 %v2070_v0, %v852_v13 }
  0xf3   : > { %v1814_v15 = vpop.eup %1813  ;;  %v1118_v16 = vadd.f32 %v1117_v11, %v1029_v12  ;;  %v942_v26 = vadd.f32 %v941_v14, %v853_v17  ;;  %v1754_v17 = vld [vmem:[%s1983_s20 + $0x1e4] sm:$0xf] }
  0xf4   : > { %1216 = vst [vmem:[%s2094_s10 + $0x38] sm:$0xff] %v1814_v15  ;;  %v1549_v15 = vld [vmem:[%s1983_s20 + $0x1e0] sm:$0xf] }
  0xf5   : > { %1815 = vtanh.f32 %v1118_v16  ;;  %v1756_v16 = vld [vmem:[%s1983_s20 + $0x1ec] sm:$0xf0] }
  0xf8   : > { %v1030_v27 = vpop.f32.mrf.mxu2  ;;  %v855_v32 = vpop.f32.mrf.mxu0 }
  0xf9   : > { %v1119_v28 = vpop.f32.mrf.mxu3  ;;  %v1031_v31 = vadd.f32 %v1030_v27, %v942_v26  ;;  %v944_v33 = vpop.f32.mrf.mxu1  ;;  %v856_v36 = vadd.f32 %v2070_v0, %v855_v32  ;;  %v1550_v26 = vor.u32 %v1756_v16, %v1549_v15  ;;  %v1554_v27 = vor.u32 %v1754_v17, %v1551_v18 }
  0xfa   : > { %v1562_v32 = vor.u32 %v1755_v21, %v1559_v22 }
  0xfb   : > { %v1816_v37 = vpop.eup %1815  ;;  %v1120_v38 = vadd.f32 %v1119_v28, %v1031_v31  ;;  %894 = vmatmul.bf16.gmra.mxu0 %v1518_v29  ;;  %v945_v39 = vadd.f32 %v944_v33, %v856_v36  ;;  %v1558_v31 = vor.u32 %v1757_v20, %v1557_v19 }
  0xfc   : > { %1217 = vst [vmem:[%s2094_s10 + $0x40] sm:$0xff] %v1816_v37  ;;  %983 = vmatmul.bf16.gmra.mxu1 %v1522_v30 }
  0xfd   : > { %1817 = vtanh.f32 %v1120_v38  ;;  %1072 = vmatmul.bf16.gmra.mxu2 %v1526_v34 }
  0xfe   : > { %1161 = vmatmul.bf16.gmra.mxu3 %v1530_v35 }
 0x100   : > { %v1033_v40 = vpop.f32.mrf.mxu2  ;;  %v857_v43 = vpop.f32.mrf.mxu0 }
 0x101   : > { %v1122_v41 = vpop.f32.mrf.mxu3  ;;  %v1034_v42 = vadd.f32 %v1033_v40, %v945_v39  ;;  %v946_v44 = vpop.f32.mrf.mxu1  ;;  %v858_v47 = vadd.f32 %v2070_v0, %v857_v43 }
 0x103   : > { %v1818_v45 = vpop.eup %1817  ;;  %v1123_v46 = vadd.f32 %v1122_v41, %v1034_v42  ;;  %v947_v56 = vadd.f32 %v946_v44, %v858_v47 }
 0x104   : > { %1218 = vst [vmem:[%s2094_s10 + $0x48] sm:$0xff] %v1818_v45 }
 0x105   : > { %1819 = vtanh.f32 %v1123_v46 }
 0x108   : > { %v1035_v57 = vpop.f32.mrf.mxu2  ;;  %v860_v62 = vpop.f32.mrf.mxu0 }
 0x109   : > { %v1124_v58 = vpop.f32.mrf.mxu3  ;;  %v1036_v61 = vadd.f32 %v1035_v57, %v947_v56  ;;  %v949_v63 = vpop.f32.mrf.mxu1  ;;  %v861_v3 = vadd.f32 %v2070_v0, %v860_v62 }
 0x10b   : > { %v1820_v4 = vpop.eup %1819  ;;  %v1125_v5 = vadd.f32 %v1124_v58, %v1036_v61  ;;  %899 = vmatmul.bf16.gmra.mxu0 %v1534_v59  ;;  %v950_v6 = vadd.f32 %v949_v63, %v861_v3 }
 0x10c   : > { %1219 = vst [vmem:[%s2094_s10 + $0x50] sm:$0xff] %v1820_v4  ;;  %988 = vmatmul.bf16.gmra.mxu1 %v1538_v60 }
 0x10d   : > { %1821 = vtanh.f32 %v1125_v5  ;;  %1077 = vmatmul.bf16.gmra.mxu2 %v1542_v1 }
 0x10e   : > { %1166 = vmatmul.bf16.gmra.mxu3 %v1546_v2 }
 0x110   : > { %v1038_v7 = vpop.f32.mrf.mxu2  ;;  %v862_v10 = vpop.f32.mrf.mxu0 }
 0x111   : > { %v1127_v8 = vpop.f32.mrf.mxu3  ;;  %v1039_v9 = vadd.f32 %v1038_v7, %v950_v6  ;;  %v951_v11 = vpop.f32.mrf.mxu1  ;;  %v863_v14 = vadd.f32 %v2070_v0, %v862_v10 }
 0x113   : > { %v1822_v12 = vpop.eup %1821  ;;  %v1128_v13 = vadd.f32 %v1127_v8, %v1039_v9  ;;  %v952_v23 = vadd.f32 %v951_v11, %v863_v14 }
 0x114   : > { %1220 = vst [vmem:[%s2094_s10 + $0x58] sm:$0xff] %v1822_v12 }
 0x115   : > { %1823 = vtanh.f32 %v1128_v13 }
 0x118   : > { %v1040_v24 = vpop.f32.mrf.mxu2  ;;  %v865_v29 = vpop.f32.mrf.mxu0 }
 0x119   : > { %v1129_v25 = vpop.f32.mrf.mxu3  ;;  %v1041_v28 = vadd.f32 %v1040_v24, %v952_v23  ;;  %v954_v30 = vpop.f32.mrf.mxu1  ;;  %v866_v33 = vadd.f32 %v2070_v0, %v865_v29 }
 0x11b   : > { %v1824_v34 = vpop.eup %1823  ;;  %v1130_v35 = vadd.f32 %v1129_v25, %v1041_v28  ;;  %904 = vmatmul.bf16.gmra.mxu0 %v1550_v26  ;;  %v955_v36 = vadd.f32 %v954_v30, %v866_v33 }
 0x11c   : > { %1221 = vst [vmem:[%s2094_s10 + $0x60] sm:$0xff] %v1824_v34  ;;  %993 = vmatmul.bf16.gmra.mxu1 %v1554_v27 }
 0x11d   : > { %1825 = vtanh.f32 %v1130_v35  ;;  %1082 = vmatmul.bf16.gmra.mxu2 %v1558_v31 }
 0x11e   : > { %1171 = vmatmul.bf16.gmra.mxu3 %v1562_v32 }
 0x120   : > { %v1043_v37 = vpop.f32.mrf.mxu2  ;;  %v867_v40 = vpop.f32.mrf.mxu0 }
 0x121   : > { %v1132_v38 = vpop.f32.mrf.mxu3  ;;  %v1044_v39 = vadd.f32 %v1043_v37, %v955_v36  ;;  %v956_v41 = vpop.f32.mrf.mxu1  ;;  %v868_v44 = vadd.f32 %v2070_v0, %v867_v40 }
 0x123   : > { %v1826_v42 = vpop.eup %1825  ;;  %v1133_v43 = vadd.f32 %v1132_v38, %v1044_v39  ;;  %v957_v45 = vadd.f32 %v956_v41, %v868_v44 }
 0x124   : > { %1222 = vst [vmem:[%s2094_s10 + $0x68] sm:$0xff] %v1826_v42 }
 0x125   : > { %1827 = vtanh.f32 %v1133_v43 }
 0x128   : > { %v1045_v46 = vpop.f32.mrf.mxu2  ;;  %v870_v49 = vpop.f32.mrf.mxu0 }
 0x129   : > { %v1134_v47 = vpop.f32.mrf.mxu3  ;;  %v1046_v48 = vadd.f32 %v1045_v46, %v957_v45  ;;  %v959_v50 = vpop.f32.mrf.mxu1  ;;  %v871_v51 = vadd.f32 %v2070_v0, %v870_v49 }
 0x12b   : > { %v1828_v52 = vpop.eup %1827  ;;  %v1135_v53 = vadd.f32 %v1134_v47, %v1046_v48  ;;  %v960_v54 = vadd.f32 %v959_v50, %v871_v51 }
 0x12c   : > { %1223 = vst [vmem:[%s2094_s10 + $0x70] sm:$0xff] %v1828_v52 }
 0x12d   : > { %1829 = vtanh.f32 %v1135_v53 }
 0x130   : > { %v1048_v55 = vpop.f32.mrf.mxu2  ;;  %v872_v58 = vpop.f32.mrf.mxu0 }
 0x131   : > { %v1137_v56 = vpop.f32.mrf.mxu3  ;;  %v1049_v57 = vadd.f32 %v1048_v55, %v960_v54  ;;  %v961_v59 = vpop.f32.mrf.mxu1  ;;  %v873_v62 = vadd.f32 %v2070_v0, %v872_v58 }
 0x133   : > { %v1830_v60 = vpop.eup %1829  ;;  %v1138_v61 = vadd.f32 %v1137_v56, %v1049_v57  ;;  %v962_v63 = vadd.f32 %v961_v59, %v873_v62 }
 0x134   : > { %1224 = vst [vmem:[%s2094_s10 + $0x78] sm:$0xff] %v1830_v60 }
 0x135   : > { %1831 = vtanh.f32 %v1138_v61 }
 0x138   : > { %v1050_v1 = vpop.f32.mrf.mxu2  ;;  %v875_v4 = vpop.f32.mrf.mxu0 }
 0x139   : > { %v1139_v2 = vpop.f32.mrf.mxu3  ;;  %v1051_v3 = vadd.f32 %v1050_v1, %v962_v63  ;;  %v964_v5 = vpop.f32.mrf.mxu1  ;;  %v876_v6 = vadd.f32 %v2070_v0, %v875_v4 }
 0x13b   : > { %v1832_v7 = vpop.eup %1831  ;;  %v1140_v8 = vadd.f32 %v1139_v2, %v1051_v3  ;;  %v965_v9 = vadd.f32 %v964_v5, %v876_v6 }
 0x13c   : > { %1225 = vst [vmem:[%s2094_s10 + $0x80] sm:$0xff] %v1832_v7 }
 0x13d   : > { %1833 = vtanh.f32 %v1140_v8 }
 0x140   : > { %v1053_v10 = vpop.f32.mrf.mxu2  ;;  %v877_v13 = vpop.f32.mrf.mxu0 }
 0x141   : > { %v1142_v11 = vpop.f32.mrf.mxu3  ;;  %v1054_v12 = vadd.f32 %v1053_v10, %v965_v9  ;;  %v966_v14 = vpop.f32.mrf.mxu1  ;;  %v878_v17 = vadd.f32 %v2070_v0, %v877_v13 }
 0x143   : > { %v1834_v15 = vpop.eup %1833  ;;  %v1143_v16 = vadd.f32 %v1142_v11, %v1054_v12  ;;  %v967_v18 = vadd.f32 %v966_v14, %v878_v17 }
 0x144   : > { %1226 = vst [vmem:[%s2094_s10 + $0x88] sm:$0xff] %v1834_v15 }
 0x145   : > { %1835 = vtanh.f32 %v1143_v16 }
 0x148   : > { %v1055_v19 = vpop.f32.mrf.mxu2  ;;  %v880_v22 = vpop.f32.mrf.mxu0 }
 0x149   : > { %v1144_v20 = vpop.f32.mrf.mxu3  ;;  %v1056_v21 = vadd.f32 %v1055_v19, %v967_v18  ;;  %v969_v23 = vpop.f32.mrf.mxu1  ;;  %v881_v24 = vadd.f32 %v2070_v0, %v880_v22 }
 0x14b   : > { %v1836_v25 = vpop.eup %1835  ;;  %v1145_v26 = vadd.f32 %v1144_v20, %v1056_v21  ;;  %v970_v27 = vadd.f32 %v969_v23, %v881_v24 }
 0x14c   : > { %1227 = vst [vmem:[%s2094_s10 + $0x90] sm:$0xff] %v1836_v25 }
 0x14d   : > { %1837 = vtanh.f32 %v1145_v26 }
 0x150   : > { %v1058_v28 = vpop.f32.mrf.mxu2  ;;  %v882_v31 = vpop.f32.mrf.mxu0 }
 0x151   : > { %v1147_v29 = vpop.f32.mrf.mxu3  ;;  %v1059_v30 = vadd.f32 %v1058_v28, %v970_v27  ;;  %v971_v32 = vpop.f32.mrf.mxu1  ;;  %v883_v35 = vadd.f32 %v2070_v0, %v882_v31 }
 0x153   : > { %v1838_v33 = vpop.eup %1837  ;;  %v1148_v34 = vadd.f32 %v1147_v29, %v1059_v30  ;;  %v972_v36 = vadd.f32 %v971_v32, %v883_v35 }
 0x154   : > { %1228 = vst [vmem:[%s2094_s10 + $0x98] sm:$0xff] %v1838_v33 }
 0x155   : > { %1839 = vtanh.f32 %v1148_v34 }
 0x158   : > { %v1060_v37 = vpop.f32.mrf.mxu2  ;;  %v885_v40 = vpop.f32.mrf.mxu0 }
 0x159   : > { %v1149_v38 = vpop.f32.mrf.mxu3  ;;  %v1061_v39 = vadd.f32 %v1060_v37, %v972_v36  ;;  %v974_v41 = vpop.f32.mrf.mxu1  ;;  %v886_v42 = vadd.f32 %v2070_v0, %v885_v40 }
 0x15b   : > { %v1840_v43 = vpop.eup %1839  ;;  %v1150_v44 = vadd.f32 %v1149_v38, %v1061_v39  ;;  %v975_v45 = vadd.f32 %v974_v41, %v886_v42 }
 0x15c   : > { %1229 = vst [vmem:[%s2094_s10 + $0xa0] sm:$0xff] %v1840_v43 }
 0x15d   : > { %1841 = vtanh.f32 %v1150_v44 }
 0x160   : > { %v1063_v46 = vpop.f32.mrf.mxu2  ;;  %v887_v49 = vpop.f32.mrf.mxu0 }
 0x161   : > { %v1152_v47 = vpop.f32.mrf.mxu3  ;;  %v1064_v48 = vadd.f32 %v1063_v46, %v975_v45  ;;  %v976_v50 = vpop.f32.mrf.mxu1  ;;  %v888_v53 = vadd.f32 %v2070_v0, %v887_v49 }
 0x163   : > { %v1842_v51 = vpop.eup %1841  ;;  %v1153_v52 = vadd.f32 %v1152_v47, %v1064_v48  ;;  %v977_v54 = vadd.f32 %v976_v50, %v888_v53 }
 0x164   : > { %1230 = vst [vmem:[%s2094_s10 + $0xa8] sm:$0xff] %v1842_v51 }
 0x165   : > { %1843 = vtanh.f32 %v1153_v52 }
 0x168   : > { %v1065_v55 = vpop.f32.mrf.mxu2  ;;  %v890_v58 = vpop.f32.mrf.mxu0 }
 0x169   : > { %v1154_v56 = vpop.f32.mrf.mxu3  ;;  %v1066_v57 = vadd.f32 %v1065_v55, %v977_v54  ;;  %v979_v59 = vpop.f32.mrf.mxu1  ;;  %v891_v60 = vadd.f32 %v2070_v0, %v890_v58 }
 0x16b   : > { %v1844_v61 = vpop.eup %1843  ;;  %v1155_v62 = vadd.f32 %v1154_v56, %v1066_v57  ;;  %v980_v63 = vadd.f32 %v979_v59, %v891_v60 }
 0x16c   : > { %1231 = vst [vmem:[%s2094_s10 + $0xb0] sm:$0xff] %v1844_v61 }
 0x16d   : > { %1845 = vtanh.f32 %v1155_v62 }
 0x170   : > { %v1068_v1 = vpop.f32.mrf.mxu2  ;;  %v892_v4 = vpop.f32.mrf.mxu0 }
 0x171   : > { %v1157_v2 = vpop.f32.mrf.mxu3  ;;  %v1069_v3 = vadd.f32 %v1068_v1, %v980_v63  ;;  %v981_v5 = vpop.f32.mrf.mxu1  ;;  %v893_v8 = vadd.f32 %v2070_v0, %v892_v4 }
 0x173   : > { %v1846_v6 = vpop.eup %1845  ;;  %v1158_v7 = vadd.f32 %v1157_v2, %v1069_v3  ;;  %v982_v9 = vadd.f32 %v981_v5, %v893_v8 }
 0x174   : > { %1232 = vst [vmem:[%s2094_s10 + $0xb8] sm:$0xff] %v1846_v6 }
 0x175   : > { %1847 = vtanh.f32 %v1158_v7 }
 0x178   : > { %v1070_v10 = vpop.f32.mrf.mxu2  ;;  %v895_v13 = vpop.f32.mrf.mxu0 }
 0x179   : > { %v1159_v11 = vpop.f32.mrf.mxu3  ;;  %v1071_v12 = vadd.f32 %v1070_v10, %v982_v9  ;;  %v984_v14 = vpop.f32.mrf.mxu1  ;;  %v896_v15 = vadd.f32 %v2070_v0, %v895_v13 }
 0x17b   : > { %v1848_v16 = vpop.eup %1847  ;;  %v1160_v17 = vadd.f32 %v1159_v11, %v1071_v12  ;;  %v985_v18 = vadd.f32 %v984_v14, %v896_v15 }
 0x17c   : > { %1233 = vst [vmem:[%s2094_s10 + $0xc0] sm:$0xff] %v1848_v16 }
 0x17d   : > { %1849 = vtanh.f32 %v1160_v17 }
 0x180   : > { %v1073_v19 = vpop.f32.mrf.mxu2  ;;  %v897_v22 = vpop.f32.mrf.mxu0 }
 0x181   : > { %v1162_v20 = vpop.f32.mrf.mxu3  ;;  %v1074_v21 = vadd.f32 %v1073_v19, %v985_v18  ;;  %v986_v23 = vpop.f32.mrf.mxu1  ;;  %v898_v26 = vadd.f32 %v2070_v0, %v897_v22 }
 0x183   : > { %v1850_v24 = vpop.eup %1849  ;;  %v1163_v25 = vadd.f32 %v1162_v20, %v1074_v21  ;;  %v987_v27 = vadd.f32 %v986_v23, %v898_v26 }
 0x184   : > { %1234 = vst [vmem:[%s2094_s10 + $0xc8] sm:$0xff] %v1850_v24 }
 0x185   : > { %1851 = vtanh.f32 %v1163_v25 }
 0x188   : > { %v1075_v28 = vpop.f32.mrf.mxu2  ;;  %v900_v31 = vpop.f32.mrf.mxu0 }
 0x189   : > { %v1164_v29 = vpop.f32.mrf.mxu3  ;;  %v1076_v30 = vadd.f32 %v1075_v28, %v987_v27  ;;  %v989_v32 = vpop.f32.mrf.mxu1  ;;  %v901_v33 = vadd.f32 %v2070_v0, %v900_v31 }
 0x18b   : > { %v1852_v34 = vpop.eup %1851  ;;  %v1165_v35 = vadd.f32 %v1164_v29, %v1076_v30  ;;  %v990_v36 = vadd.f32 %v989_v32, %v901_v33 }
 0x18c   : > { %1235 = vst [vmem:[%s2094_s10 + $0xd0] sm:$0xff] %v1852_v34 }
 0x18d   : > { %1853 = vtanh.f32 %v1165_v35 }
 0x190   : > { %v1078_v37 = vpop.f32.mrf.mxu2  ;;  %v902_v40 = vpop.f32.mrf.mxu0 }
 0x191   : > { %v1167_v38 = vpop.f32.mrf.mxu3  ;;  %v1079_v39 = vadd.f32 %v1078_v37, %v990_v36  ;;  %v991_v41 = vpop.f32.mrf.mxu1  ;;  %v903_v44 = vadd.f32 %v2070_v0, %v902_v40 }
 0x193   : > { %v1854_v42 = vpop.eup %1853  ;;  %v1168_v43 = vadd.f32 %v1167_v38, %v1079_v39  ;;  %v992_v45 = vadd.f32 %v991_v41, %v903_v44 }
 0x194   : > { %1236 = vst [vmem:[%s2094_s10 + $0xd8] sm:$0xff] %v1854_v42 }
 0x195   : > { %1855 = vtanh.f32 %v1168_v43 }
 0x198   : > { %v1080_v46 = vpop.f32.mrf.mxu2  ;;  %v905_v49 = vpop.f32.mrf.mxu0 }
 0x199   : > { %v1169_v47 = vpop.f32.mrf.mxu3  ;;  %v1081_v48 = vadd.f32 %v1080_v46, %v992_v45  ;;  %v906_v50 = vadd.f32 %v2070_v0, %v905_v49  ;;  %v994_v53 = vpop.f32.mrf.mxu1 }
 0x19b   : > { %v1856_v51 = vpop.eup %1855  ;;  %v1170_v52 = vadd.f32 %v1169_v47, %v1081_v48  ;;  %v995_v54 = vadd.f32 %v994_v53, %v906_v50 }
 0x19c   : > { %1237 = vst [vmem:[%s2094_s10 + $0xe0] sm:$0xff] %v1856_v51 }
 0x19d   : > { %1857 = vtanh.f32 %v1170_v52 }
 0x1a0   : > { %v1083_v55 = vpop.f32.mrf.mxu2  ;;  %v907_v58 = vpop.f32.mrf.mxu0 }
 0x1a1   : > { %v1172_v56 = vpop.f32.mrf.mxu3  ;;  %v1084_v57 = vadd.f32 %v1083_v55, %v995_v54  ;;  %v908_v61 = vadd.f32 %v2070_v0, %v907_v58  ;;  %v996_v62 = vpop.f32.mrf.mxu1 }
 0x1a3   : > { %v1858_v59 = vpop.eup %1857  ;;  %v1173_v60 = vadd.f32 %v1172_v56, %v1084_v57  ;;  %v997_v63 = vadd.f32 %v996_v62, %v908_v61 }
 0x1a4   : > { %1238 = vst [vmem:[%s2094_s10 + $0xe8] sm:$0xff] %v1858_v59 }
 0x1a5   : > { %1859 = vtanh.f32 %v1173_v60 }
 0x1a8   : > { %v1085_v1 = vpop.f32.mrf.mxu2 }
 0x1a9   : > { %v1086_v2 = vadd.f32 %v1085_v1, %v997_v63  ;;  %v1174_v3 = vpop.f32.mrf.mxu3 }
 0x1ab   : > { %v1860_v4 = vpop.eup %1859  ;;  %v1175_v5 = vadd.f32 %v1174_v3, %v1086_v2 }
 0x1ac   : > { %1239 = vst [vmem:[%s2094_s10 + $0xf0] sm:$0xff] %v1860_v4 }
 0x1ad   : > { %1861 = vtanh.f32 %v1175_v5 }
 0x1b3   : > { %v1862_v6 = vpop.eup %1861 }
 0x1b4   : > { %1240 = vst [vmem:[%s2094_s10 + $0xf8] sm:$0xff] %v1862_v6 }
 0x1b5 PF: > { %s13_s12 = sadd.s32 1, %s1869_s12  }
 0x1b6   : > { %p10_p4 = scmp.ge.s32.totalorder %s13_s12, 4  }
 0x1b8   :  { %12 = sbr.rel (!%p10_p4) target bundleno = 1 (0x1), region = 62 }

</bundles_post_ra>
